<compile_context>
chip_gen: v7x
topology: tpu7x:2x2x1
jax: 0.10.0
libtpu: 0.0.40
codegen_flags: <defaults>
</compile_context>

<pallas_src>
import jax
import jax.numpy as jnp
from jax.experimental import pallas as pl
from jax.experimental.pallas import tpu as pltpu


# ----------------------------- Pallas kernel --------------------------------

def _silu(v):
    return v * jax.nn.sigmoid(v)


_FUSED_WEIGHT_KEYS = (
    "wh0", "bemb",
    "we1st", "we1r", "wea", "be1", "we2", "be2",
    "wc1", "bc1", "wc2t",
    "wn1h", "wn1g", "bn1", "wn2", "bn2",
    "wd1", "bd1", "wd2", "bd2",
    "wg1", "bg1", "wg2", "bg2",
)


def _egnn2_fused_kernel(
    h0_ref, coord_ref, xw_ref, eattr_ref, grow_ref, gcol_ref, scat_ref,
    wh0_ref, bemb_ref,
    we1st_ref, we1r_ref, wea_ref, be1_ref, we2_ref, be2_ref,
    wc1_ref, bc1_ref, wc2t_ref,
    wn1h_ref, wn1g_ref, bn1_ref, wn2_ref, bn2_ref,
    wd1_ref, bd1_ref, wd2_ref, bd2_ref,
    wg1_ref, bg1_ref, wg2_ref, bg2_ref,
    out_ref,
):
    f32 = jnp.float32
    dot = lambda a, b: jnp.dot(a, b, preferred_element_type=f32)

    h0 = h0_ref[...]
    x = coord_ref[...]
    xw_inv = 1.0 / xw_ref[...]                       # hoisted out of the layer loop
    # one-hot operands arrive as bf16 (exact 0/1); cast once, accumulate in f32.
    g_row = grow_ref[...].astype(f32)                # [E, N]  edge -> source node
    g_col = gcol_ref[...].astype(f32)                # [E, N]  edge -> target node
    scat = scat_ref[...].astype(f32)                 # [N, E]  scatter-add by source

    n_layers = we2_ref.shape[0]
    H = bemb_ref.shape[-1]

    # --- constant-input projections, one fused MXU pass each, sliced per layer ---
    h0_proj = dot(h0, wh0_ref[...])                  # [N, (1+L)*H]
    ea_proj = dot(eattr_ref[...], wea_ref[...])      # [E, L*H]

    # --- embedding ---
    h = h0_proj[:, :H] + bemb_ref[...]

    for l in range(n_layers):                        # static unroll (n_layers = 4)
        # --- coordinate renormalization (as in EGNN2.forward) ---
        x = x - jnp.min(x, axis=0, keepdims=True)
        x = x / jnp.max(x, axis=0, keepdims=True)

        # --- coord2radial ---
        x_row = dot(g_row, x)
        x_col = dot(g_col, x)
        coord_diff = x_row - x_col                                   # [E, 3]
        radial = jnp.sum(coord_diff * coord_diff, axis=1, keepdims=True)

        # --- edge MLP; fused src/dst projection at node granularity, then gather
        hst = dot(h, we1st_ref[l])                                   # [N, 2H]
        pre1 = (dot(g_row, hst[:, :H]) + dot(g_col, hst[:, H:])
                + radial * we1r_ref[l]
                + ea_proj[:, l * H:(l + 1) * H]
                + be1_ref[l])
        m1 = _silu(pre1)
        edge_feat = _silu(dot(m1, we2_ref[l]) + be2_ref[l])          # [E, H]

        # --- coord MLP: Linear -> SiLU -> Linear(H, 1, bias=False) ---
        c1 = _silu(dot(edge_feat, wc1_ref[l]) + bc1_ref[l])
        escale = jnp.sum(c1 * wc2t_ref[l], axis=1, keepdims=True)    # [E, 1]
        trans = coord_diff * escale                                  # [E, 3]

        # --- unsorted_segment_sum via one-hot scatter matmul ---
        agg_coord = dot(scat, trans)                                 # [N, 3]
        agg_edge = dot(scat, edge_feat)                              # [N, H]

        x = x + agg_coord * xw_inv

        # --- node MLP with recurrent residual ---
        pren = (dot(h, wn1h_ref[l]) + dot(agg_edge, wn1g_ref[l])
                + h0_proj[:, (1 + l) * H:(2 + l) * H]
                + bn1_ref[l])
        h = h + dot(_silu(pren), wn2_ref[l]) + bn2_ref[l]

    # --- node decoder, graph decoder ---
    h = dot(_silu(dot(h, wd1_ref[...]) + bd1_ref[...]), wd2_ref[...]) + bd2_ref[...]
    out_ref[...] = (dot(_silu(dot(h, wg1_ref[...]) + bg1_ref[...]), wg2_ref[...])
                    + bg2_ref[...])


# ----------------------------- pallas_call wrapper ---------------------------

def _egnn2_cost(N, E, A, Ea, H, L, out_dim):
    mm = lambda m, k, n: 2 * m * k * n
    hoisted = mm(N, A, (1 + L) * H) + mm(E, Ea, L * H)
    per_layer = (2 * mm(E, N, 3)                  # coord gathers
                 + mm(N, H, 2 * H)                # fused hs/ht projection
                 + 2 * mm(E, N, H)                # gather of hs / ht onto edges
                 + 2 * mm(E, H, H)                # we2, wc1
                 + 2 * E * H                      # escale dot-product
                 + mm(N, E, 3) + mm(N, E, H)      # scatter-adds
                 + 3 * mm(N, H, H))               # node MLP (wn1h, wn1g, wn2)
    flops = hoisted + L * per_layer + 3 * mm(N, H, H) + mm(N, H, out_dim)
    transcendentals = L * (3 * E * H + N * H) + 2 * N * H
    return int(flops), int(transcendentals)


def egnn2_forward_pallas(fused, h0, x, edges, edge_attr, x_weights):
    row, col = edges
    N, A = h0.shape
    E = row.shape[0]
    Ea = edge_attr.shape[1]
    H = fused["bemb"].shape[1]
    L = fused["we2"].shape[0]
    out_dim = fused["wg2"].shape[1]

    # Pad the edge axis to a sublane multiple; padded edges use index -1 whose
    # one-hot row is all zeros, so they are inert in every gather/scatter.
    E_pad = max(8, -(-E // 8) * 8)
    pad = E_pad - E
    if pad:
        row = jnp.concatenate([row, jnp.full((pad,), -1, row.dtype)])
        col = jnp.concatenate([col, jnp.full((pad,), -1, col.dtype)])
        edge_attr = jnp.pad(edge_attr, ((0, pad), (0, 0)))

    # bf16 one-hot gather/scatter operands (exact 0/1); f32 accumulation in-kernel.
    g_row = jax.nn.one_hot(row, N, dtype=jnp.bfloat16)   # [E, N]
    g_col = jax.nn.one_hot(col, N, dtype=jnp.bfloat16)   # [E, N]
    scat = g_row.T                                       # [N, E]

    args = (h0, x, x_weights, edge_attr, g_row, g_col, scat) + tuple(
        fused[k] for k in _FUSED_WEIGHT_KEYS)

    flops, transc = _egnn2_cost(N, E_pad, A, Ea, H, L, out_dim)
    bytes_accessed = sum(int(a.size) * a.dtype.itemsize for a in args)
    bytes_accessed += N * out_dim * 4

    # TODO(synk): for large graphs (v7x: 64 MiB VMEM) tile the edge axis with a grid
    # + VMEM accumulator (or build one-hot tiles in-kernel from prefetched row/col
    # indices) instead of whole-array [E, N] operands.
    # TODO(synk): when batching multiple graphs, add a leading "parallel" grid axis
    # so both v7x TensorCores get work.
    return pl.pallas_call(
        _egnn2_fused_kernel,
        out_shape=jax.ShapeDtypeStruct((N, out_dim), jnp.float32),
        in_specs=[pl.BlockSpec(memory_space=pltpu.MemorySpace.VMEM) for _ in args],
        out_specs=pl.BlockSpec(memory_space=pltpu.MemorySpace.VMEM),
        cost_estimate=pl.CostEstimate(flops=flops, transcendentals=transc,
                                      bytes_accessed=bytes_accessed),
    )(*args)


# ----------------------------- parameters ------------------------------------

def _linear_params(key, fan_in, fan_out, bias=True):
    kw, kb = jax.random.split(key)
    bound = 1.0 / jnp.sqrt(jnp.float32(fan_in))
    w = jax.random.uniform(kw, (fan_in, fan_out), jnp.float32, -bound, bound)
    if not bias:
        return w
    b = jax.random.uniform(kb, (1, fan_out), jnp.float32, -bound, bound)
    return w, b


def init_egnn2_params(key, in_node_nf, in_edge_nf, hidden_nf, n_layers):
    H, A, Ea = hidden_nf, in_node_nf, in_edge_nf
    keys = jax.random.split(key, 3 + n_layers)
    params = {"embedding": _linear_params(keys[0], A, H), "layers": []}
    for i in range(n_layers):
        lk = jax.random.split(keys[3 + i], 6)
        we1, be1 = _linear_params(lk[0], 2 * H + 1 + Ea, H)
        we2, be2 = _linear_params(lk[1], H, H)
        wc1, bc1 = _linear_params(lk[2], H, H)
        xav = 0.001 * jnp.sqrt(6.0 / (H + 1))            # xavier_uniform, gain=0.001
        wc2 = jax.random.uniform(lk[3], (H, 1), jnp.float32, -xav, xav)
        wn1, bn1 = _linear_params(lk[4], H + H + A, H)
        wn2, bn2 = _linear_params(lk[5], H, H)
        params["layers"].append(dict(we1=we1, be1=be1, we2=we2, be2=be2,
                                     wc1=wc1, bc1=bc1, wc2=wc2,
                                     wn1=wn1, bn1=bn1, wn2=wn2, bn2=bn2))
    k1, k2, k3, k4 = jax.random.split(keys[1], 4)
    params["node_dec"] = (*_linear_params(k1, H, H), *_linear_params(k2, H, H))
    params["graph_dec"] = (*_linear_params(k3, H, H), *_linear_params(k4, H, 21))
    return params


def prepare_fused_params(params, hidden_nf):
    """Pre-split / pre-fuse per-layer weights once; stack along a layer axis."""
    H = hidden_nf
    layers = params["layers"]
    stack = lambda fn: jnp.stack([fn(lp) for lp in layers], axis=0)
    wemb, bemb = params["embedding"]
    # Fused constant-input weights: h0 @ [Wemb | Wn1a_l...],  edge_attr @ [We1a_l...]
    wh0 = jnp.concatenate([wemb] + [lp["wn1"][2 * H:] for lp in layers], axis=1)
    wea = jnp.concatenate([lp["we1"][2 * H + 1:] for lp in layers], axis=1)
    return dict(
        wh0=wh0, bemb=bemb,
        we1st=stack(lambda lp: jnp.concatenate(
            [lp["we1"][:H], lp["we1"][H:2 * H]], axis=1)),           # [H, 2H]
        we1r=stack(lambda lp: lp["we1"][2 * H:2 * H + 1]),
        wea=wea,
        be1=stack(lambda lp: lp["be1"]),
        we2=stack(lambda lp: lp["we2"]),
        be2=stack(lambda lp: lp["be2"]),
        wc1=stack(lambda lp: lp["wc1"]),
        bc1=stack(lambda lp: lp["bc1"]),
        wc2t=stack(lambda lp: lp["wc2"].T),
        wn1h=stack(lambda lp: lp["wn1"][:H]),
        wn1g=stack(lambda lp: lp["wn1"][H:2 * H]),
        bn1=stack(lambda lp: lp["bn1"]),
        wn2=stack(lambda lp: lp["wn2"]),
        bn2=stack(lambda lp: lp["bn2"]),
        wd1=params["node_dec"][0], bd1=params["node_dec"][1],
        wd2=params["node_dec"][2], bd2=params["node_dec"][3],
        wg1=params["graph_dec"][0], bg1=params["graph_dec"][1],
        wg2=params["graph_dec"][2], bg2=params["graph_dec"][3],
    )


# ----------------------------- reference (validation) ------------------------

def egnn2_forward_reference(params, h0, x, edges, edge_attr, x_weights):
    # Pure-JAX mirror of the PyTorch semantics with full-f32 matmuls.
    hp = jax.lax.Precision.HIGHEST
    mm = lambda a, b: jnp.dot(a, b, precision=hp)
    silu = lambda v: v * jax.nn.sigmoid(v)
    lin = lambda v, w, b: mm(v, w) + b
    row, col = edges
    N = h0.shape[0]

    h = lin(h0, *params["embedding"])
    for lp in params["layers"]:
        x = x - jnp.min(x, axis=0, keepdims=True)
        x = x / jnp.max(x, axis=0, keepdims=True)
        coord_diff = x[row] - x[col]
        radial = jnp.sum(coord_diff ** 2, axis=1, keepdims=True)
        edge_in = jnp.concatenate([h[row], h[col], radial, edge_attr], axis=1)
        edge_feat = silu(lin(silu(lin(edge_in, lp["we1"], lp["be1"])),
                             lp["we2"], lp["be2"]))
        c1 = silu(lin(edge_feat, lp["wc1"], lp["bc1"]))
        trans = coord_diff * mm(c1, lp["wc2"])
        agg_c = jnp.zeros((N, 3), jnp.float32).at[row].add(trans)
        x = x + agg_c / x_weights
        agg_e = jnp.zeros((N, h.shape[1]), jnp.float32).at[row].add(edge_feat)
        node_in = jnp.concatenate([h, agg_e, h0], axis=1)
        h = h + lin(silu(lin(node_in, lp["wn1"], lp["bn1"])), lp["wn2"], lp["bn2"])
    h = lin(silu(lin(h, params["node_dec"][0], params["node_dec"][1])),
            params["node_dec"][2], params["node_dec"][3])
    pred = lin(silu(lin(h, params["graph_dec"][0], params["graph_dec"][1])),
               params["graph_dec"][2], params["graph_dec"][3])
    return pred


# ----------------------------------- main ------------------------------------

if __name__ == "__main__":
    N = 8                   # nodes
    in_node_nf = 8
    in_edge_nf = 4
    hidden_nf = 32
    n_layers = 4

    key = jax.random.PRNGKey(0)
    kp, kh, kx, ke = jax.random.split(key, 4)

    params = init_egnn2_params(kp, in_node_nf, in_edge_nf, hidden_nf, n_layers)
    fused = prepare_fused_params(params, hidden_nf)

    # fully-connected graph without self loops: E = N*(N-1) = 56
    idx = jnp.arange(N)
    row_full = jnp.repeat(idx, N)
    col_full = jnp.tile(idx, N)
    mask = row_full != col_full
    row = row_full[mask].astype(jnp.int32)
    col = col_full[mask].astype(jnp.int32)
    edges = (row, col)
    E = int(row.shape[0])

    h0 = jax.random.normal(kh, (N, in_node_nf), jnp.float32)
    x = jax.random.normal(kx, (N, 3), jnp.float32)
    edge_attr = jax.random.normal(ke, (E, in_edge_nf), jnp.float32)
    x_weights = jnp.full((N, 1), float(N - 1), jnp.float32)

    fwd = jax.jit(egnn2_forward_pallas)
    pred = jax.block_until_ready(fwd(fused, h0, x, edges, edge_attr, x_weights))
    assert pred.shape == (N, 21), pred.shape

    ref = jax.block_until_ready(
        egnn2_forward_reference(params, h0, x, edges, edge_attr, x_weights))
    if not jnp.allclose(pred, ref, atol=5e-2, rtol=5e-2):
        err = float(jnp.max(jnp.abs(pred - ref)))
        raise AssertionError(
            f"Pallas EGNN2 mismatch vs f32 reference (max abs err {err:.3e})")

    print("KERNEL_OK")
</pallas_src>

<mosaic_0001>
module attributes {stable_mosaic.version = 11 : i64} {
  func.func @_egnn2_fused_kernel(%arg0: memref<8x8xf32, #tpu.memory_space<vmem>>, %arg1: memref<8x3xf32, #tpu.memory_space<vmem>>, %arg2: memref<8x1xf32, #tpu.memory_space<vmem>>, %arg3: memref<56x4xf32, #tpu.memory_space<vmem>>, %arg4: memref<56x8xbf16, #tpu.memory_space<vmem>>, %arg5: memref<56x8xbf16, #tpu.memory_space<vmem>>, %arg6: memref<8x56xbf16, #tpu.memory_space<vmem>>, %arg7: memref<8x160xf32, #tpu.memory_space<vmem>>, %arg8: memref<1x32xf32, #tpu.memory_space<vmem>>, %arg9: memref<4x32x64xf32, #tpu.memory_space<vmem>>, %arg10: memref<4x1x32xf32, #tpu.memory_space<vmem>>, %arg11: memref<4x128xf32, #tpu.memory_space<vmem>>, %arg12: memref<4x1x32xf32, #tpu.memory_space<vmem>>, %arg13: memref<4x32x32xf32, #tpu.memory_space<vmem>>, %arg14: memref<4x1x32xf32, #tpu.memory_space<vmem>>, %arg15: memref<4x32x32xf32, #tpu.memory_space<vmem>>, %arg16: memref<4x1x32xf32, #tpu.memory_space<vmem>>, %arg17: memref<4x1x32xf32, #tpu.memory_space<vmem>>, %arg18: memref<4x32x32xf32, #tpu.memory_space<vmem>>, %arg19: memref<4x32x32xf32, #tpu.memory_space<vmem>>, %arg20: memref<4x1x32xf32, #tpu.memory_space<vmem>>, %arg21: memref<4x32x32xf32, #tpu.memory_space<vmem>>, %arg22: memref<4x1x32xf32, #tpu.memory_space<vmem>>, %arg23: memref<32x32xf32, #tpu.memory_space<vmem>>, %arg24: memref<1x32xf32, #tpu.memory_space<vmem>>, %arg25: memref<32x32xf32, #tpu.memory_space<vmem>>, %arg26: memref<1x32xf32, #tpu.memory_space<vmem>>, %arg27: memref<32x32xf32, #tpu.memory_space<vmem>>, %arg28: memref<1x32xf32, #tpu.memory_space<vmem>>, %arg29: memref<32x21xf32, #tpu.memory_space<vmem>>, %arg30: memref<1x21xf32, #tpu.memory_space<vmem>>, %arg31: memref<8x21xf32, #tpu.memory_space<vmem>>) attributes {dimension_semantics = [], scalar_prefetch = 0 : i64, scratch_operands = 0 : i64, tpu.core_type = #tpu.core_type<tc>} {
    %c0 = arith.constant 0 : index
    %c0_0 = arith.constant 0 : index
    %0 = vector.load %arg0[%c0, %c0_0] : memref<8x8xf32, #tpu.memory_space<vmem>>, vector<8x8xf32>
    %c0_1 = arith.constant 0 : index
    %c0_2 = arith.constant 0 : index
    %1 = vector.load %arg1[%c0_1, %c0_2] : memref<8x3xf32, #tpu.memory_space<vmem>>, vector<8x3xf32>
    %c0_3 = arith.constant 0 : index
    %c0_4 = arith.constant 0 : index
    %2 = vector.load %arg2[%c0_3, %c0_4] : memref<8x1xf32, #tpu.memory_space<vmem>>, vector<8x1xf32>
    %cst = arith.constant 1.000000e+00 : f32
    %3 = vector.broadcast %cst : f32 to vector<8x1xf32>
    %4 = arith.divf %3, %2 : vector<8x1xf32>
    %c0_5 = arith.constant 0 : index
    %c0_6 = arith.constant 0 : index
    %5 = vector.load %arg4[%c0_5, %c0_6] : memref<56x8xbf16, #tpu.memory_space<vmem>>, vector<56x8xbf16>
    %6 = arith.extf %5 : vector<56x8xbf16> to vector<56x8xf32>
    %c0_7 = arith.constant 0 : index
    %c0_8 = arith.constant 0 : index
    %7 = vector.load %arg5[%c0_7, %c0_8] : memref<56x8xbf16, #tpu.memory_space<vmem>>, vector<56x8xbf16>
    %8 = arith.extf %7 : vector<56x8xbf16> to vector<56x8xf32>
    %c0_9 = arith.constant 0 : index
    %c0_10 = arith.constant 0 : index
    %9 = vector.load %arg6[%c0_9, %c0_10] : memref<8x56xbf16, #tpu.memory_space<vmem>>, vector<8x56xbf16>
    %10 = arith.extf %9 : vector<8x56xbf16> to vector<8x56xf32>
    %c0_11 = arith.constant 0 : index
    %c0_12 = arith.constant 0 : index
    %11 = vector.load %arg7[%c0_11, %c0_12] : memref<8x160xf32, #tpu.memory_space<vmem>>, vector<8x160xf32>
    %cst_13 = arith.constant dense<0.000000e+00> : vector<8x160xf32>
    %12 = tpu.matmul %0, %11, %cst_13 {dimension_numbers = #tpu.dot_dimension_numbers<[1], [0], [0], [1], [0, 0, 1, 1], [], []>} : vector<8x8xf32>, vector<8x160xf32>, vector<8x160xf32> -> vector<8x160xf32>
    %c0_14 = arith.constant 0 : index
    %c0_15 = arith.constant 0 : index
    %13 = vector.load %arg3[%c0_14, %c0_15] : memref<56x4xf32, #tpu.memory_space<vmem>>, vector<56x4xf32>
    %c0_16 = arith.constant 0 : index
    %c0_17 = arith.constant 0 : index
    %14 = vector.load %arg11[%c0_16, %c0_17] : memref<4x128xf32, #tpu.memory_space<vmem>>, vector<4x128xf32>
    %cst_18 = arith.constant dense<0.000000e+00> : vector<56x128xf32>
    %15 = tpu.matmul %13, %14, %cst_18 {dimension_numbers = #tpu.dot_dimension_numbers<[1], [0], [0], [1], [0, 0, 1, 1], [], []>} : vector<56x4xf32>, vector<4x128xf32>, vector<56x128xf32> -> vector<56x128xf32>
    %16 = vector.extract_strided_slice %12 {offsets = [0, 0], sizes = [8, 32], strides = [1, 1]} : vector<8x160xf32> to vector<8x32xf32>
    %c0_19 = arith.constant 0 : index
    %c0_20 = arith.constant 0 : index
    %17 = vector.load %arg8[%c0_19, %c0_20] : memref<1x32xf32, #tpu.memory_space<vmem>>, vector<1x32xf32>
    %18 = vector.broadcast %17 : vector<1x32xf32> to vector<8x32xf32>
    %19 = arith.addf %16, %18 : vector<8x32xf32>
    %cst_21 = arith.constant dense<0x7F800000> : vector<3xf32>
    %20 = vector.multi_reduction <minimumf>, %1, %cst_21 [0] : vector<8x3xf32> to vector<3xf32>
    %21 = vector.shape_cast %20 : vector<3xf32> to vector<1x3xf32>
    %22 = vector.broadcast %21 : vector<1x3xf32> to vector<8x3xf32>
    %23 = arith.subf %1, %22 : vector<8x3xf32>
    %cst_22 = arith.constant dense<0xFF800000> : vector<3xf32>
    %24 = vector.multi_reduction <maximumf>, %23, %cst_22 [0] : vector<8x3xf32> to vector<3xf32>
    %25 = vector.shape_cast %24 : vector<3xf32> to vector<1x3xf32>
    %26 = vector.broadcast %25 : vector<1x3xf32> to vector<8x3xf32>
    %27 = arith.divf %23, %26 : vector<8x3xf32>
    %cst_23 = arith.constant dense<0.000000e+00> : vector<56x3xf32>
    %28 = tpu.matmul %6, %27, %cst_23 {dimension_numbers = #tpu.dot_dimension_numbers<[1], [0], [0], [1], [0, 0, 1, 1], [], []>} : vector<56x8xf32>, vector<8x3xf32>, vector<56x3xf32> -> vector<56x3xf32>
    %cst_24 = arith.constant dense<0.000000e+00> : vector<56x3xf32>
    %29 = tpu.matmul %8, %27, %cst_24 {dimension_numbers = #tpu.dot_dimension_numbers<[1], [0], [0], [1], [0, 0, 1, 1], [], []>} : vector<56x8xf32>, vector<8x3xf32>, vector<56x3xf32> -> vector<56x3xf32>
    %30 = arith.subf %28, %29 : vector<56x3xf32>
    %31 = arith.mulf %30, %30 : vector<56x3xf32>
    %cst_25 = arith.constant dense<0.000000e+00> : vector<56xf32>
    %32 = vector.multi_reduction <add>, %31, %cst_25 [1] : vector<56x3xf32> to vector<56xf32>
    %33 = vector.shape_cast %32 : vector<56xf32> to vector<56x1xf32>
    %c0_26 = arith.constant 0 : index
    %c0_27 = arith.constant 0 : index
    %c0_28 = arith.constant 0 : index
    %34 = vector.load %arg9[%c0_26, %c0_27, %c0_28] : memref<4x32x64xf32, #tpu.memory_space<vmem>>, vector<1x32x64xf32>
    %35 = vector.shape_cast %34 : vector<1x32x64xf32> to vector<32x64xf32>
    %cst_29 = arith.constant dense<0.000000e+00> : vector<8x64xf32>
    %36 = tpu.matmul %19, %35, %cst_29 {dimension_numbers = #tpu.dot_dimension_numbers<[1], [0], [0], [1], [0, 0, 1, 1], [], []>} : vector<8x32xf32>, vector<32x64xf32>, vector<8x64xf32> -> vector<8x64xf32>
    %37 = vector.extract_strided_slice %36 {offsets = [0, 0], sizes = [8, 32], strides = [1, 1]} : vector<8x64xf32> to vector<8x32xf32>
    %cst_30 = arith.constant dense<0.000000e+00> : vector<56x32xf32>
    %38 = tpu.matmul %6, %37, %cst_30 {dimension_numbers = #tpu.dot_dimension_numbers<[1], [0], [0], [1], [0, 0, 1, 1], [], []>} : vector<56x8xf32>, vector<8x32xf32>, vector<56x32xf32> -> vector<56x32xf32>
    %39 = vector.extract_strided_slice %36 {offsets = [0, 32], sizes = [8, 32], strides = [1, 1]} : vector<8x64xf32> to vector<8x32xf32>
    %cst_31 = arith.constant dense<0.000000e+00> : vector<56x32xf32>
    %40 = tpu.matmul %8, %39, %cst_31 {dimension_numbers = #tpu.dot_dimension_numbers<[1], [0], [0], [1], [0, 0, 1, 1], [], []>} : vector<56x8xf32>, vector<8x32xf32>, vector<56x32xf32> -> vector<56x32xf32>
    %41 = arith.addf %38, %40 : vector<56x32xf32>
    %c0_32 = arith.constant 0 : index
    %c0_33 = arith.constant 0 : index
    %c0_34 = arith.constant 0 : index
    %42 = vector.load %arg10[%c0_32, %c0_33, %c0_34] : memref<4x1x32xf32, #tpu.memory_space<vmem>>, vector<1x1x32xf32>
    %43 = vector.shape_cast %42 : vector<1x1x32xf32> to vector<1x32xf32>
    %44 = vector.broadcast %33 : vector<56x1xf32> to vector<56x32xf32>
    %45 = vector.broadcast %43 : vector<1x32xf32> to vector<56x32xf32>
    %46 = arith.mulf %44, %45 : vector<56x32xf32>
    %47 = arith.addf %41, %46 : vector<56x32xf32>
    %48 = vector.extract_strided_slice %15 {offsets = [0, 0], sizes = [56, 32], strides = [1, 1]} : vector<56x128xf32> to vector<56x32xf32>
    %49 = arith.addf %47, %48 : vector<56x32xf32>
    %c0_35 = arith.constant 0 : index
    %c0_36 = arith.constant 0 : index
    %c0_37 = arith.constant 0 : index
    %50 = vector.load %arg12[%c0_35, %c0_36, %c0_37] : memref<4x1x32xf32, #tpu.memory_space<vmem>>, vector<1x1x32xf32>
    %51 = vector.shape_cast %50 : vector<1x1x32xf32> to vector<1x32xf32>
    %52 = vector.broadcast %51 : vector<1x32xf32> to vector<56x32xf32>
    %53 = arith.addf %49, %52 : vector<56x32xf32>
    %54 = arith.negf %53 : vector<56x32xf32>
    %55 = math.exp %54 : vector<56x32xf32>
    %cst_38 = arith.constant 1.000000e+00 : f32
    %56 = vector.broadcast %cst_38 : f32 to vector<56x32xf32>
    %57 = arith.addf %56, %55 : vector<56x32xf32>
    %58 = arith.divf %56, %57 : vector<56x32xf32>
    %59 = arith.mulf %53, %58 : vector<56x32xf32>
    %c0_39 = arith.constant 0 : index
    %c0_40 = arith.constant 0 : index
    %c0_41 = arith.constant 0 : index
    %60 = vector.load %arg13[%c0_39, %c0_40, %c0_41] : memref<4x32x32xf32, #tpu.memory_space<vmem>>, vector<1x32x32xf32>
    %61 = vector.shape_cast %60 : vector<1x32x32xf32> to vector<32x32xf32>
    %cst_42 = arith.constant dense<0.000000e+00> : vector<56x32xf32>
    %62 = tpu.matmul %59, %61, %cst_42 {dimension_numbers = #tpu.dot_dimension_numbers<[1], [0], [0], [1], [0, 0, 1, 1], [], []>} : vector<56x32xf32>, vector<32x32xf32>, vector<56x32xf32> -> vector<56x32xf32>
    %c0_43 = arith.constant 0 : index
    %c0_44 = arith.constant 0 : index
    %c0_45 = arith.constant 0 : index
    %63 = vector.load %arg14[%c0_43, %c0_44, %c0_45] : memref<4x1x32xf32, #tpu.memory_space<vmem>>, vector<1x1x32xf32>
    %64 = vector.shape_cast %63 : vector<1x1x32xf32> to vector<1x32xf32>
    %65 = vector.broadcast %64 : vector<1x32xf32> to vector<56x32xf32>
    %66 = arith.addf %62, %65 : vector<56x32xf32>
    %67 = arith.negf %66 : vector<56x32xf32>
    %68 = math.exp %67 : vector<56x32xf32>
    %cst_46 = arith.constant 1.000000e+00 : f32
    %69 = vector.broadcast %cst_46 : f32 to vector<56x32xf32>
    %70 = arith.addf %69, %68 : vector<56x32xf32>
    %71 = arith.divf %69, %70 : vector<56x32xf32>
    %72 = arith.mulf %66, %71 : vector<56x32xf32>
    %c0_47 = arith.constant 0 : index
    %c0_48 = arith.constant 0 : index
    %c0_49 = arith.constant 0 : index
    %73 = vector.load %arg15[%c0_47, %c0_48, %c0_49] : memref<4x32x32xf32, #tpu.memory_space<vmem>>, vector<1x32x32xf32>
    %74 = vector.shape_cast %73 : vector<1x32x32xf32> to vector<32x32xf32>
    %cst_50 = arith.constant dense<0.000000e+00> : vector<56x32xf32>
    %75 = tpu.matmul %72, %74, %cst_50 {dimension_numbers = #tpu.dot_dimension_numbers<[1], [0], [0], [1], [0, 0, 1, 1], [], []>} : vector<56x32xf32>, vector<32x32xf32>, vector<56x32xf32> -> vector<56x32xf32>
    %c0_51 = arith.constant 0 : index
    %c0_52 = arith.constant 0 : index
    %c0_53 = arith.constant 0 : index
    %76 = vector.load %arg16[%c0_51, %c0_52, %c0_53] : memref<4x1x32xf32, #tpu.memory_space<vmem>>, vector<1x1x32xf32>
    %77 = vector.shape_cast %76 : vector<1x1x32xf32> to vector<1x32xf32>
    %78 = vector.broadcast %77 : vector<1x32xf32> to vector<56x32xf32>
    %79 = arith.addf %75, %78 : vector<56x32xf32>
    %80 = arith.negf %79 : vector<56x32xf32>
    %81 = math.exp %80 : vector<56x32xf32>
    %cst_54 = arith.constant 1.000000e+00 : f32
    %82 = vector.broadcast %cst_54 : f32 to vector<56x32xf32>
    %83 = arith.addf %82, %81 : vector<56x32xf32>
    %84 = arith.divf %82, %83 : vector<56x32xf32>
    %85 = arith.mulf %79, %84 : vector<56x32xf32>
    %c0_55 = arith.constant 0 : index
    %c0_56 = arith.constant 0 : index
    %c0_57 = arith.constant 0 : index
    %86 = vector.load %arg17[%c0_55, %c0_56, %c0_57] : memref<4x1x32xf32, #tpu.memory_space<vmem>>, vector<1x1x32xf32>
    %87 = vector.shape_cast %86 : vector<1x1x32xf32> to vector<1x32xf32>
    %88 = vector.broadcast %87 : vector<1x32xf32> to vector<56x32xf32>
    %89 = arith.mulf %85, %88 : vector<56x32xf32>
    %cst_58 = arith.constant dense<0.000000e+00> : vector<56xf32>
    %90 = vector.multi_reduction <add>, %89, %cst_58 [1] : vector<56x32xf32> to vector<56xf32>
    %91 = vector.shape_cast %90 : vector<56xf32> to vector<56x1xf32>
    %92 = vector.broadcast %91 : vector<56x1xf32> to vector<56x3xf32>
    %93 = arith.mulf %30, %92 : vector<56x3xf32>
    %cst_59 = arith.constant dense<0.000000e+00> : vector<8x3xf32>
    %94 = tpu.matmul %10, %93, %cst_59 {dimension_numbers = #tpu.dot_dimension_numbers<[1], [0], [0], [1], [0, 0, 1, 1], [], []>} : vector<8x56xf32>, vector<56x3xf32>, vector<8x3xf32> -> vector<8x3xf32>
    %cst_60 = arith.constant dense<0.000000e+00> : vector<8x32xf32>
    %95 = tpu.matmul %10, %72, %cst_60 {dimension_numbers = #tpu.dot_dimension_numbers<[1], [0], [0], [1], [0, 0, 1, 1], [], []>} : vector<8x56xf32>, vector<56x32xf32>, vector<8x32xf32> -> vector<8x32xf32>
    %96 = vector.broadcast %4 : vector<8x1xf32> to vector<8x3xf32>
    %97 = arith.mulf %94, %96 : vector<8x3xf32>
    %98 = arith.addf %27, %97 : vector<8x3xf32>
    %c0_61 = arith.constant 0 : index
    %c0_62 = arith.constant 0 : index
    %c0_63 = arith.constant 0 : index
    %99 = vector.load %arg18[%c0_61, %c0_62, %c0_63] : memref<4x32x32xf32, #tpu.memory_space<vmem>>, vector<1x32x32xf32>
    %100 = vector.shape_cast %99 : vector<1x32x32xf32> to vector<32x32xf32>
    %cst_64 = arith.constant dense<0.000000e+00> : vector<8x32xf32>
    %101 = tpu.matmul %19, %100, %cst_64 {dimension_numbers = #tpu.dot_dimension_numbers<[1], [0], [0], [1], [0, 0, 1, 1], [], []>} : vector<8x32xf32>, vector<32x32xf32>, vector<8x32xf32> -> vector<8x32xf32>
    %c0_65 = arith.constant 0 : index
    %c0_66 = arith.constant 0 : index
    %c0_67 = arith.constant 0 : index
    %102 = vector.load %arg19[%c0_65, %c0_66, %c0_67] : memref<4x32x32xf32, #tpu.memory_space<vmem>>, vector<1x32x32xf32>
    %103 = vector.shape_cast %102 : vector<1x32x32xf32> to vector<32x32xf32>
    %cst_68 = arith.constant dense<0.000000e+00> : vector<8x32xf32>
    %104 = tpu.matmul %95, %103, %cst_68 {dimension_numbers = #tpu.dot_dimension_numbers<[1], [0], [0], [1], [0, 0, 1, 1], [], []>} : vector<8x32xf32>, vector<32x32xf32>, vector<8x32xf32> -> vector<8x32xf32>
    %105 = arith.addf %101, %104 : vector<8x32xf32>
    %106 = vector.extract_strided_slice %12 {offsets = [0, 32], sizes = [8, 32], strides = [1, 1]} : vector<8x160xf32> to vector<8x32xf32>
    %107 = arith.addf %105, %106 : vector<8x32xf32>
    %c0_69 = arith.constant 0 : index
    %c0_70 = arith.constant 0 : index
    %c0_71 = arith.constant 0 : index
    %108 = vector.load %arg20[%c0_69, %c0_70, %c0_71] : memref<4x1x32xf32, #tpu.memory_space<vmem>>, vector<1x1x32xf32>
    %109 = vector.shape_cast %108 : vector<1x1x32xf32> to vector<1x32xf32>
    %110 = vector.broadcast %109 : vector<1x32xf32> to vector<8x32xf32>
    %111 = arith.addf %107, %110 : vector<8x32xf32>
    %112 = arith.negf %111 : vector<8x32xf32>
    %113 = math.exp %112 : vector<8x32xf32>
    %cst_72 = arith.constant 1.000000e+00 : f32
    %114 = vector.broadcast %cst_72 : f32 to vector<8x32xf32>
    %115 = arith.addf %114, %113 : vector<8x32xf32>
    %116 = arith.divf %114, %115 : vector<8x32xf32>
    %117 = arith.mulf %111, %116 : vector<8x32xf32>
    %c0_73 = arith.constant 0 : index
    %c0_74 = arith.constant 0 : index
    %c0_75 = arith.constant 0 : index
    %118 = vector.load %arg21[%c0_73, %c0_74, %c0_75] : memref<4x32x32xf32, #tpu.memory_space<vmem>>, vector<1x32x32xf32>
    %119 = vector.shape_cast %118 : vector<1x32x32xf32> to vector<32x32xf32>
    %cst_76 = arith.constant dense<0.000000e+00> : vector<8x32xf32>
    %120 = tpu.matmul %117, %119, %cst_76 {dimension_numbers = #tpu.dot_dimension_numbers<[1], [0], [0], [1], [0, 0, 1, 1], [], []>} : vector<8x32xf32>, vector<32x32xf32>, vector<8x32xf32> -> vector<8x32xf32>
    %121 = arith.addf %19, %120 : vector<8x32xf32>
    %c0_77 = arith.constant 0 : index
    %c0_78 = arith.constant 0 : index
    %c0_79 = arith.constant 0 : index
    %122 = vector.load %arg22[%c0_77, %c0_78, %c0_79] : memref<4x1x32xf32, #tpu.memory_space<vmem>>, vector<1x1x32xf32>
    %123 = vector.shape_cast %122 : vector<1x1x32xf32> to vector<1x32xf32>
    %124 = vector.broadcast %123 : vector<1x32xf32> to vector<8x32xf32>
    %125 = arith.addf %121, %124 : vector<8x32xf32>
    %cst_80 = arith.constant dense<0x7F800000> : vector<3xf32>
    %126 = vector.multi_reduction <minimumf>, %98, %cst_80 [0] : vector<8x3xf32> to vector<3xf32>
    %127 = vector.shape_cast %126 : vector<3xf32> to vector<1x3xf32>
    %128 = vector.broadcast %127 : vector<1x3xf32> to vector<8x3xf32>
    %129 = arith.subf %98, %128 : vector<8x3xf32>
    %cst_81 = arith.constant dense<0xFF800000> : vector<3xf32>
    %130 = vector.multi_reduction <maximumf>, %129, %cst_81 [0] : vector<8x3xf32> to vector<3xf32>
    %131 = vector.shape_cast %130 : vector<3xf32> to vector<1x3xf32>
    %132 = vector.broadcast %131 : vector<1x3xf32> to vector<8x3xf32>
    %133 = arith.divf %129, %132 : vector<8x3xf32>
    %cst_82 = arith.constant dense<0.000000e+00> : vector<56x3xf32>
    %134 = tpu.matmul %6, %133, %cst_82 {dimension_numbers = #tpu.dot_dimension_numbers<[1], [0], [0], [1], [0, 0, 1, 1], [], []>} : vector<56x8xf32>, vector<8x3xf32>, vector<56x3xf32> -> vector<56x3xf32>
    %cst_83 = arith.constant dense<0.000000e+00> : vector<56x3xf32>
    %135 = tpu.matmul %8, %133, %cst_83 {dimension_numbers = #tpu.dot_dimension_numbers<[1], [0], [0], [1], [0, 0, 1, 1], [], []>} : vector<56x8xf32>, vector<8x3xf32>, vector<56x3xf32> -> vector<56x3xf32>
    %136 = arith.subf %134, %135 : vector<56x3xf32>
    %137 = arith.mulf %136, %136 : vector<56x3xf32>
    %cst_84 = arith.constant dense<0.000000e+00> : vector<56xf32>
    %138 = vector.multi_reduction <add>, %137, %cst_84 [1] : vector<56x3xf32> to vector<56xf32>
    %139 = vector.shape_cast %138 : vector<56xf32> to vector<56x1xf32>
    %c1 = arith.constant 1 : index
    %c0_85 = arith.constant 0 : index
    %c0_86 = arith.constant 0 : index
    %140 = vector.load %arg9[%c1, %c0_85, %c0_86] : memref<4x32x64xf32, #tpu.memory_space<vmem>>, vector<1x32x64xf32>
    %141 = vector.shape_cast %140 : vector<1x32x64xf32> to vector<32x64xf32>
    %cst_87 = arith.constant dense<0.000000e+00> : vector<8x64xf32>
    %142 = tpu.matmul %125, %141, %cst_87 {dimension_numbers = #tpu.dot_dimension_numbers<[1], [0], [0], [1], [0, 0, 1, 1], [], []>} : vector<8x32xf32>, vector<32x64xf32>, vector<8x64xf32> -> vector<8x64xf32>
    %143 = vector.extract_strided_slice %142 {offsets = [0, 0], sizes = [8, 32], strides = [1, 1]} : vector<8x64xf32> to vector<8x32xf32>
    %cst_88 = arith.constant dense<0.000000e+00> : vector<56x32xf32>
    %144 = tpu.matmul %6, %143, %cst_88 {dimension_numbers = #tpu.dot_dimension_numbers<[1], [0], [0], [1], [0, 0, 1, 1], [], []>} : vector<56x8xf32>, vector<8x32xf32>, vector<56x32xf32> -> vector<56x32xf32>
    %145 = vector.extract_strided_slice %142 {offsets = [0, 32], sizes = [8, 32], strides = [1, 1]} : vector<8x64xf32> to vector<8x32xf32>
    %cst_89 = arith.constant dense<0.000000e+00> : vector<56x32xf32>
    %146 = tpu.matmul %8, %145, %cst_89 {dimension_numbers = #tpu.dot_dimension_numbers<[1], [0], [0], [1], [0, 0, 1, 1], [], []>} : vector<56x8xf32>, vector<8x32xf32>, vector<56x32xf32> -> vector<56x32xf32>
    %147 = arith.addf %144, %146 : vector<56x32xf32>
    %c1_90 = arith.constant 1 : index
    %c0_91 = arith.constant 0 : index
    %c0_92 = arith.constant 0 : index
    %148 = vector.load %arg10[%c1_90, %c0_91, %c0_92] : memref<4x1x32xf32, #tpu.memory_space<vmem>>, vector<1x1x32xf32>
    %149 = vector.shape_cast %148 : vector<1x1x32xf32> to vector<1x32xf32>
    %150 = vector.broadcast %139 : vector<56x1xf32> to vector<56x32xf32>
    %151 = vector.broadcast %149 : vector<1x32xf32> to vector<56x32xf32>
    %152 = arith.mulf %150, %151 : vector<56x32xf32>
    %153 = arith.addf %147, %152 : vector<56x32xf32>
    %154 = vector.extract_strided_slice %15 {offsets = [0, 32], sizes = [56, 32], strides = [1, 1]} : vector<56x128xf32> to vector<56x32xf32>
    %155 = arith.addf %153, %154 : vector<56x32xf32>
    %c1_93 = arith.constant 1 : index
    %c0_94 = arith.constant 0 : index
    %c0_95 = arith.constant 0 : index
    %156 = vector.load %arg12[%c1_93, %c0_94, %c0_95] : memref<4x1x32xf32, #tpu.memory_space<vmem>>, vector<1x1x32xf32>
    %157 = vector.shape_cast %156 : vector<1x1x32xf32> to vector<1x32xf32>
    %158 = vector.broadcast %157 : vector<1x32xf32> to vector<56x32xf32>
    %159 = arith.addf %155, %158 : vector<56x32xf32>
    %160 = arith.negf %159 : vector<56x32xf32>
    %161 = math.exp %160 : vector<56x32xf32>
    %cst_96 = arith.constant 1.000000e+00 : f32
    %162 = vector.broadcast %cst_96 : f32 to vector<56x32xf32>
    %163 = arith.addf %162, %161 : vector<56x32xf32>
    %164 = arith.divf %162, %163 : vector<56x32xf32>
    %165 = arith.mulf %159, %164 : vector<56x32xf32>
    %c1_97 = arith.constant 1 : index
    %c0_98 = arith.constant 0 : index
    %c0_99 = arith.constant 0 : index
    %166 = vector.load %arg13[%c1_97, %c0_98, %c0_99] : memref<4x32x32xf32, #tpu.memory_space<vmem>>, vector<1x32x32xf32>
    %167 = vector.shape_cast %166 : vector<1x32x32xf32> to vector<32x32xf32>
    %cst_100 = arith.constant dense<0.000000e+00> : vector<56x32xf32>
    %168 = tpu.matmul %165, %167, %cst_100 {dimension_numbers = #tpu.dot_dimension_numbers<[1], [0], [0], [1], [0, 0, 1, 1], [], []>} : vector<56x32xf32>, vector<32x32xf32>, vector<56x32xf32> -> vector<56x32xf32>
    %c1_101 = arith.constant 1 : index
    %c0_102 = arith.constant 0 : index
    %c0_103 = arith.constant 0 : index
    %169 = vector.load %arg14[%c1_101, %c0_102, %c0_103] : memref<4x1x32xf32, #tpu.memory_space<vmem>>, vector<1x1x32xf32>
    %170 = vector.shape_cast %169 : vector<1x1x32xf32> to vector<1x32xf32>
    %171 = vector.broadcast %170 : vector<1x32xf32> to vector<56x32xf32>
    %172 = arith.addf %168, %171 : vector<56x32xf32>
    %173 = arith.negf %172 : vector<56x32xf32>
    %174 = math.exp %173 : vector<56x32xf32>
    %cst_104 = arith.constant 1.000000e+00 : f32
    %175 = vector.broadcast %cst_104 : f32 to vector<56x32xf32>
    %176 = arith.addf %175, %174 : vector<56x32xf32>
    %177 = arith.divf %175, %176 : vector<56x32xf32>
    %178 = arith.mulf %172, %177 : vector<56x32xf32>
    %c1_105 = arith.constant 1 : index
    %c0_106 = arith.constant 0 : index
    %c0_107 = arith.constant 0 : index
    %179 = vector.load %arg15[%c1_105, %c0_106, %c0_107] : memref<4x32x32xf32, #tpu.memory_space<vmem>>, vector<1x32x32xf32>
    %180 = vector.shape_cast %179 : vector<1x32x32xf32> to vector<32x32xf32>
    %cst_108 = arith.constant dense<0.000000e+00> : vector<56x32xf32>
    %181 = tpu.matmul %178, %180, %cst_108 {dimension_numbers = #tpu.dot_dimension_numbers<[1], [0], [0], [1], [0, 0, 1, 1], [], []>} : vector<56x32xf32>, vector<32x32xf32>, vector<56x32xf32> -> vector<56x32xf32>
    %c1_109 = arith.constant 1 : index
    %c0_110 = arith.constant 0 : index
    %c0_111 = arith.constant 0 : index
    %182 = vector.load %arg16[%c1_109, %c0_110, %c0_111] : memref<4x1x32xf32, #tpu.memory_space<vmem>>, vector<1x1x32xf32>
    %183 = vector.shape_cast %182 : vector<1x1x32xf32> to vector<1x32xf32>
    %184 = vector.broadcast %183 : vector<1x32xf32> to vector<56x32xf32>
    %185 = arith.addf %181, %184 : vector<56x32xf32>
    %186 = arith.negf %185 : vector<56x32xf32>
    %187 = math.exp %186 : vector<56x32xf32>
    %cst_112 = arith.constant 1.000000e+00 : f32
    %188 = vector.broadcast %cst_112 : f32 to vector<56x32xf32>
    %189 = arith.addf %188, %187 : vector<56x32xf32>
    %190 = arith.divf %188, %189 : vector<56x32xf32>
    %191 = arith.mulf %185, %190 : vector<56x32xf32>
    %c1_113 = arith.constant 1 : index
    %c0_114 = arith.constant 0 : index
    %c0_115 = arith.constant 0 : index
    %192 = vector.load %arg17[%c1_113, %c0_114, %c0_115] : memref<4x1x32xf32, #tpu.memory_space<vmem>>, vector<1x1x32xf32>
    %193 = vector.shape_cast %192 : vector<1x1x32xf32> to vector<1x32xf32>
    %194 = vector.broadcast %193 : vector<1x32xf32> to vector<56x32xf32>
    %195 = arith.mulf %191, %194 : vector<56x32xf32>
    %cst_116 = arith.constant dense<0.000000e+00> : vector<56xf32>
    %196 = vector.multi_reduction <add>, %195, %cst_116 [1] : vector<56x32xf32> to vector<56xf32>
    %197 = vector.shape_cast %196 : vector<56xf32> to vector<56x1xf32>
    %198 = vector.broadcast %197 : vector<56x1xf32> to vector<56x3xf32>
    %199 = arith.mulf %136, %198 : vector<56x3xf32>
    %cst_117 = arith.constant dense<0.000000e+00> : vector<8x3xf32>
    %200 = tpu.matmul %10, %199, %cst_117 {dimension_numbers = #tpu.dot_dimension_numbers<[1], [0], [0], [1], [0, 0, 1, 1], [], []>} : vector<8x56xf32>, vector<56x3xf32>, vector<8x3xf32> -> vector<8x3xf32>
    %cst_118 = arith.constant dense<0.000000e+00> : vector<8x32xf32>
    %201 = tpu.matmul %10, %178, %cst_118 {dimension_numbers = #tpu.dot_dimension_numbers<[1], [0], [0], [1], [0, 0, 1, 1], [], []>} : vector<8x56xf32>, vector<56x32xf32>, vector<8x32xf32> -> vector<8x32xf32>
    %202 = vector.broadcast %4 : vector<8x1xf32> to vector<8x3xf32>
    %203 = arith.mulf %200, %202 : vector<8x3xf32>
    %204 = arith.addf %133, %203 : vector<8x3xf32>
    %c1_119 = arith.constant 1 : index
    %c0_120 = arith.constant 0 : index
    %c0_121 = arith.constant 0 : index
    %205 = vector.load %arg18[%c1_119, %c0_120, %c0_121] : memref<4x32x32xf32, #tpu.memory_space<vmem>>, vector<1x32x32xf32>
    %206 = vector.shape_cast %205 : vector<1x32x32xf32> to vector<32x32xf32>
    %cst_122 = arith.constant dense<0.000000e+00> : vector<8x32xf32>
    %207 = tpu.matmul %125, %206, %cst_122 {dimension_numbers = #tpu.dot_dimension_numbers<[1], [0], [0], [1], [0, 0, 1, 1], [], []>} : vector<8x32xf32>, vector<32x32xf32>, vector<8x32xf32> -> vector<8x32xf32>
    %c1_123 = arith.constant 1 : index
    %c0_124 = arith.constant 0 : index
    %c0_125 = arith.constant 0 : index
    %208 = vector.load %arg19[%c1_123, %c0_124, %c0_125] : memref<4x32x32xf32, #tpu.memory_space<vmem>>, vector<1x32x32xf32>
    %209 = vector.shape_cast %208 : vector<1x32x32xf32> to vector<32x32xf32>
    %cst_126 = arith.constant dense<0.000000e+00> : vector<8x32xf32>
    %210 = tpu.matmul %201, %209, %cst_126 {dimension_numbers = #tpu.dot_dimension_numbers<[1], [0], [0], [1], [0, 0, 1, 1], [], []>} : vector<8x32xf32>, vector<32x32xf32>, vector<8x32xf32> -> vector<8x32xf32>
    %211 = arith.addf %207, %210 : vector<8x32xf32>
    %212 = vector.extract_strided_slice %12 {offsets = [0, 64], sizes = [8, 32], strides = [1, 1]} : vector<8x160xf32> to vector<8x32xf32>
    %213 = arith.addf %211, %212 : vector<8x32xf32>
    %c1_127 = arith.constant 1 : index
    %c0_128 = arith.constant 0 : index
    %c0_129 = arith.constant 0 : index
    %214 = vector.load %arg20[%c1_127, %c0_128, %c0_129] : memref<4x1x32xf32, #tpu.memory_space<vmem>>, vector<1x1x32xf32>
    %215 = vector.shape_cast %214 : vector<1x1x32xf32> to vector<1x32xf32>
    %216 = vector.broadcast %215 : vector<1x32xf32> to vector<8x32xf32>
    %217 = arith.addf %213, %216 : vector<8x32xf32>
    %218 = arith.negf %217 : vector<8x32xf32>
    %219 = math.exp %218 : vector<8x32xf32>
    %cst_130 = arith.constant 1.000000e+00 : f32
    %220 = vector.broadcast %cst_130 : f32 to vector<8x32xf32>
    %221 = arith.addf %220, %219 : vector<8x32xf32>
    %222 = arith.divf %220, %221 : vector<8x32xf32>
    %223 = arith.mulf %217, %222 : vector<8x32xf32>
    %c1_131 = arith.constant 1 : index
    %c0_132 = arith.constant 0 : index
    %c0_133 = arith.constant 0 : index
    %224 = vector.load %arg21[%c1_131, %c0_132, %c0_133] : memref<4x32x32xf32, #tpu.memory_space<vmem>>, vector<1x32x32xf32>
    %225 = vector.shape_cast %224 : vector<1x32x32xf32> to vector<32x32xf32>
    %cst_134 = arith.constant dense<0.000000e+00> : vector<8x32xf32>
    %226 = tpu.matmul %223, %225, %cst_134 {dimension_numbers = #tpu.dot_dimension_numbers<[1], [0], [0], [1], [0, 0, 1, 1], [], []>} : vector<8x32xf32>, vector<32x32xf32>, vector<8x32xf32> -> vector<8x32xf32>
    %227 = arith.addf %125, %226 : vector<8x32xf32>
    %c1_135 = arith.constant 1 : index
    %c0_136 = arith.constant 0 : index
    %c0_137 = arith.constant 0 : index
    %228 = vector.load %arg22[%c1_135, %c0_136, %c0_137] : memref<4x1x32xf32, #tpu.memory_space<vmem>>, vector<1x1x32xf32>
    %229 = vector.shape_cast %228 : vector<1x1x32xf32> to vector<1x32xf32>
    %230 = vector.broadcast %229 : vector<1x32xf32> to vector<8x32xf32>
    %231 = arith.addf %227, %230 : vector<8x32xf32>
    %cst_138 = arith.constant dense<0x7F800000> : vector<3xf32>
    %232 = vector.multi_reduction <minimumf>, %204, %cst_138 [0] : vector<8x3xf32> to vector<3xf32>
    %233 = vector.shape_cast %232 : vector<3xf32> to vector<1x3xf32>
    %234 = vector.broadcast %233 : vector<1x3xf32> to vector<8x3xf32>
    %235 = arith.subf %204, %234 : vector<8x3xf32>
    %cst_139 = arith.constant dense<0xFF800000> : vector<3xf32>
    %236 = vector.multi_reduction <maximumf>, %235, %cst_139 [0] : vector<8x3xf32> to vector<3xf32>
    %237 = vector.shape_cast %236 : vector<3xf32> to vector<1x3xf32>
    %238 = vector.broadcast %237 : vector<1x3xf32> to vector<8x3xf32>
    %239 = arith.divf %235, %238 : vector<8x3xf32>
    %cst_140 = arith.constant dense<0.000000e+00> : vector<56x3xf32>
    %240 = tpu.matmul %6, %239, %cst_140 {dimension_numbers = #tpu.dot_dimension_numbers<[1], [0], [0], [1], [0, 0, 1, 1], [], []>} : vector<56x8xf32>, vector<8x3xf32>, vector<56x3xf32> -> vector<56x3xf32>
    %cst_141 = arith.constant dense<0.000000e+00> : vector<56x3xf32>
    %241 = tpu.matmul %8, %239, %cst_141 {dimension_numbers = #tpu.dot_dimension_numbers<[1], [0], [0], [1], [0, 0, 1, 1], [], []>} : vector<56x8xf32>, vector<8x3xf32>, vector<56x3xf32> -> vector<56x3xf32>
    %242 = arith.subf %240, %241 : vector<56x3xf32>
    %243 = arith.mulf %242, %242 : vector<56x3xf32>
    %cst_142 = arith.constant dense<0.000000e+00> : vector<56xf32>
    %244 = vector.multi_reduction <add>, %243, %cst_142 [1] : vector<56x3xf32> to vector<56xf32>
    %245 = vector.shape_cast %244 : vector<56xf32> to vector<56x1xf32>
    %c2 = arith.constant 2 : index
    %c0_143 = arith.constant 0 : index
    %c0_144 = arith.constant 0 : index
    %246 = vector.load %arg9[%c2, %c0_143, %c0_144] : memref<4x32x64xf32, #tpu.memory_space<vmem>>, vector<1x32x64xf32>
    %247 = vector.shape_cast %246 : vector<1x32x64xf32> to vector<32x64xf32>
    %cst_145 = arith.constant dense<0.000000e+00> : vector<8x64xf32>
    %248 = tpu.matmul %231, %247, %cst_145 {dimension_numbers = #tpu.dot_dimension_numbers<[1], [0], [0], [1], [0, 0, 1, 1], [], []>} : vector<8x32xf32>, vector<32x64xf32>, vector<8x64xf32> -> vector<8x64xf32>
    %249 = vector.extract_strided_slice %248 {offsets = [0, 0], sizes = [8, 32], strides = [1, 1]} : vector<8x64xf32> to vector<8x32xf32>
    %cst_146 = arith.constant dense<0.000000e+00> : vector<56x32xf32>
    %250 = tpu.matmul %6, %249, %cst_146 {dimension_numbers = #tpu.dot_dimension_numbers<[1], [0], [0], [1], [0, 0, 1, 1], [], []>} : vector<56x8xf32>, vector<8x32xf32>, vector<56x32xf32> -> vector<56x32xf32>
    %251 = vector.extract_strided_slice %248 {offsets = [0, 32], sizes = [8, 32], strides = [1, 1]} : vector<8x64xf32> to vector<8x32xf32>
    %cst_147 = arith.constant dense<0.000000e+00> : vector<56x32xf32>
    %252 = tpu.matmul %8, %251, %cst_147 {dimension_numbers = #tpu.dot_dimension_numbers<[1], [0], [0], [1], [0, 0, 1, 1], [], []>} : vector<56x8xf32>, vector<8x32xf32>, vector<56x32xf32> -> vector<56x32xf32>
    %253 = arith.addf %250, %252 : vector<56x32xf32>
    %c2_148 = arith.constant 2 : index
    %c0_149 = arith.constant 0 : index
    %c0_150 = arith.constant 0 : index
    %254 = vector.load %arg10[%c2_148, %c0_149, %c0_150] : memref<4x1x32xf32, #tpu.memory_space<vmem>>, vector<1x1x32xf32>
    %255 = vector.shape_cast %254 : vector<1x1x32xf32> to vector<1x32xf32>
    %256 = vector.broadcast %245 : vector<56x1xf32> to vector<56x32xf32>
    %257 = vector.broadcast %255 : vector<1x32xf32> to vector<56x32xf32>
    %258 = arith.mulf %256, %257 : vector<56x32xf32>
    %259 = arith.addf %253, %258 : vector<56x32xf32>
    %260 = vector.extract_strided_slice %15 {offsets = [0, 64], sizes = [56, 32], strides = [1, 1]} : vector<56x128xf32> to vector<56x32xf32>
    %261 = arith.addf %259, %260 : vector<56x32xf32>
    %c2_151 = arith.constant 2 : index
    %c0_152 = arith.constant 0 : index
    %c0_153 = arith.constant 0 : index
    %262 = vector.load %arg12[%c2_151, %c0_152, %c0_153] : memref<4x1x32xf32, #tpu.memory_space<vmem>>, vector<1x1x32xf32>
    %263 = vector.shape_cast %262 : vector<1x1x32xf32> to vector<1x32xf32>
    %264 = vector.broadcast %263 : vector<1x32xf32> to vector<56x32xf32>
    %265 = arith.addf %261, %264 : vector<56x32xf32>
    %266 = arith.negf %265 : vector<56x32xf32>
    %267 = math.exp %266 : vector<56x32xf32>
    %cst_154 = arith.constant 1.000000e+00 : f32
    %268 = vector.broadcast %cst_154 : f32 to vector<56x32xf32>
    %269 = arith.addf %268, %267 : vector<56x32xf32>
    %270 = arith.divf %268, %269 : vector<56x32xf32>
    %271 = arith.mulf %265, %270 : vector<56x32xf32>
    %c2_155 = arith.constant 2 : index
    %c0_156 = arith.constant 0 : index
    %c0_157 = arith.constant 0 : index
    %272 = vector.load %arg13[%c2_155, %c0_156, %c0_157] : memref<4x32x32xf32, #tpu.memory_space<vmem>>, vector<1x32x32xf32>
    %273 = vector.shape_cast %272 : vector<1x32x32xf32> to vector<32x32xf32>
    %cst_158 = arith.constant dense<0.000000e+00> : vector<56x32xf32>
    %274 = tpu.matmul %271, %273, %cst_158 {dimension_numbers = #tpu.dot_dimension_numbers<[1], [0], [0], [1], [0, 0, 1, 1], [], []>} : vector<56x32xf32>, vector<32x32xf32>, vector<56x32xf32> -> vector<56x32xf32>
    %c2_159 = arith.constant 2 : index
    %c0_160 = arith.constant 0 : index
    %c0_161 = arith.constant 0 : index
    %275 = vector.load %arg14[%c2_159, %c0_160, %c0_161] : memref<4x1x32xf32, #tpu.memory_space<vmem>>, vector<1x1x32xf32>
    %276 = vector.shape_cast %275 : vector<1x1x32xf32> to vector<1x32xf32>
    %277 = vector.broadcast %276 : vector<1x32xf32> to vector<56x32xf32>
    %278 = arith.addf %274, %277 : vector<56x32xf32>
    %279 = arith.negf %278 : vector<56x32xf32>
    %280 = math.exp %279 : vector<56x32xf32>
    %cst_162 = arith.constant 1.000000e+00 : f32
    %281 = vector.broadcast %cst_162 : f32 to vector<56x32xf32>
    %282 = arith.addf %281, %280 : vector<56x32xf32>
    %283 = arith.divf %281, %282 : vector<56x32xf32>
    %284 = arith.mulf %278, %283 : vector<56x32xf32>
    %c2_163 = arith.constant 2 : index
    %c0_164 = arith.constant 0 : index
    %c0_165 = arith.constant 0 : index
    %285 = vector.load %arg15[%c2_163, %c0_164, %c0_165] : memref<4x32x32xf32, #tpu.memory_space<vmem>>, vector<1x32x32xf32>
    %286 = vector.shape_cast %285 : vector<1x32x32xf32> to vector<32x32xf32>
    %cst_166 = arith.constant dense<0.000000e+00> : vector<56x32xf32>
    %287 = tpu.matmul %284, %286, %cst_166 {dimension_numbers = #tpu.dot_dimension_numbers<[1], [0], [0], [1], [0, 0, 1, 1], [], []>} : vector<56x32xf32>, vector<32x32xf32>, vector<56x32xf32> -> vector<56x32xf32>
    %c2_167 = arith.constant 2 : index
    %c0_168 = arith.constant 0 : index
    %c0_169 = arith.constant 0 : index
    %288 = vector.load %arg16[%c2_167, %c0_168, %c0_169] : memref<4x1x32xf32, #tpu.memory_space<vmem>>, vector<1x1x32xf32>
    %289 = vector.shape_cast %288 : vector<1x1x32xf32> to vector<1x32xf32>
    %290 = vector.broadcast %289 : vector<1x32xf32> to vector<56x32xf32>
    %291 = arith.addf %287, %290 : vector<56x32xf32>
    %292 = arith.negf %291 : vector<56x32xf32>
    %293 = math.exp %292 : vector<56x32xf32>
    %cst_170 = arith.constant 1.000000e+00 : f32
    %294 = vector.broadcast %cst_170 : f32 to vector<56x32xf32>
    %295 = arith.addf %294, %293 : vector<56x32xf32>
    %296 = arith.divf %294, %295 : vector<56x32xf32>
    %297 = arith.mulf %291, %296 : vector<56x32xf32>
    %c2_171 = arith.constant 2 : index
    %c0_172 = arith.constant 0 : index
    %c0_173 = arith.constant 0 : index
    %298 = vector.load %arg17[%c2_171, %c0_172, %c0_173] : memref<4x1x32xf32, #tpu.memory_space<vmem>>, vector<1x1x32xf32>
    %299 = vector.shape_cast %298 : vector<1x1x32xf32> to vector<1x32xf32>
    %300 = vector.broadcast %299 : vector<1x32xf32> to vector<56x32xf32>
    %301 = arith.mulf %297, %300 : vector<56x32xf32>
    %cst_174 = arith.constant dense<0.000000e+00> : vector<56xf32>
    %302 = vector.multi_reduction <add>, %301, %cst_174 [1] : vector<56x32xf32> to vector<56xf32>
    %303 = vector.shape_cast %302 : vector<56xf32> to vector<56x1xf32>
    %304 = vector.broadcast %303 : vector<56x1xf32> to vector<56x3xf32>
    %305 = arith.mulf %242, %304 : vector<56x3xf32>
    %cst_175 = arith.constant dense<0.000000e+00> : vector<8x3xf32>
    %306 = tpu.matmul %10, %305, %cst_175 {dimension_numbers = #tpu.dot_dimension_numbers<[1], [0], [0], [1], [0, 0, 1, 1], [], []>} : vector<8x56xf32>, vector<56x3xf32>, vector<8x3xf32> -> vector<8x3xf32>
    %cst_176 = arith.constant dense<0.000000e+00> : vector<8x32xf32>
    %307 = tpu.matmul %10, %284, %cst_176 {dimension_numbers = #tpu.dot_dimension_numbers<[1], [0], [0], [1], [0, 0, 1, 1], [], []>} : vector<8x56xf32>, vector<56x32xf32>, vector<8x32xf32> -> vector<8x32xf32>
    %308 = vector.broadcast %4 : vector<8x1xf32> to vector<8x3xf32>
    %309 = arith.mulf %306, %308 : vector<8x3xf32>
    %310 = arith.addf %239, %309 : vector<8x3xf32>
    %c2_177 = arith.constant 2 : index
    %c0_178 = arith.constant 0 : index
    %c0_179 = arith.constant 0 : index
    %311 = vector.load %arg18[%c2_177, %c0_178, %c0_179] : memref<4x32x32xf32, #tpu.memory_space<vmem>>, vector<1x32x32xf32>
    %312 = vector.shape_cast %311 : vector<1x32x32xf32> to vector<32x32xf32>
    %cst_180 = arith.constant dense<0.000000e+00> : vector<8x32xf32>
    %313 = tpu.matmul %231, %312, %cst_180 {dimension_numbers = #tpu.dot_dimension_numbers<[1], [0], [0], [1], [0, 0, 1, 1], [], []>} : vector<8x32xf32>, vector<32x32xf32>, vector<8x32xf32> -> vector<8x32xf32>
    %c2_181 = arith.constant 2 : index
    %c0_182 = arith.constant 0 : index
    %c0_183 = arith.constant 0 : index
    %314 = vector.load %arg19[%c2_181, %c0_182, %c0_183] : memref<4x32x32xf32, #tpu.memory_space<vmem>>, vector<1x32x32xf32>
    %315 = vector.shape_cast %314 : vector<1x32x32xf32> to vector<32x32xf32>
    %cst_184 = arith.constant dense<0.000000e+00> : vector<8x32xf32>
    %316 = tpu.matmul %307, %315, %cst_184 {dimension_numbers = #tpu.dot_dimension_numbers<[1], [0], [0], [1], [0, 0, 1, 1], [], []>} : vector<8x32xf32>, vector<32x32xf32>, vector<8x32xf32> -> vector<8x32xf32>
    %317 = arith.addf %313, %316 : vector<8x32xf32>
    %318 = vector.extract_strided_slice %12 {offsets = [0, 96], sizes = [8, 32], strides = [1, 1]} : vector<8x160xf32> to vector<8x32xf32>
    %319 = arith.addf %317, %318 : vector<8x32xf32>
    %c2_185 = arith.constant 2 : index
    %c0_186 = arith.constant 0 : index
    %c0_187 = arith.constant 0 : index
    %320 = vector.load %arg20[%c2_185, %c0_186, %c0_187] : memref<4x1x32xf32, #tpu.memory_space<vmem>>, vector<1x1x32xf32>
    %321 = vector.shape_cast %320 : vector<1x1x32xf32> to vector<1x32xf32>
    %322 = vector.broadcast %321 : vector<1x32xf32> to vector<8x32xf32>
    %323 = arith.addf %319, %322 : vector<8x32xf32>
    %324 = arith.negf %323 : vector<8x32xf32>
    %325 = math.exp %324 : vector<8x32xf32>
    %cst_188 = arith.constant 1.000000e+00 : f32
    %326 = vector.broadcast %cst_188 : f32 to vector<8x32xf32>
    %327 = arith.addf %326, %325 : vector<8x32xf32>
    %328 = arith.divf %326, %327 : vector<8x32xf32>
    %329 = arith.mulf %323, %328 : vector<8x32xf32>
    %c2_189 = arith.constant 2 : index
    %c0_190 = arith.constant 0 : index
    %c0_191 = arith.constant 0 : index
    %330 = vector.load %arg21[%c2_189, %c0_190, %c0_191] : memref<4x32x32xf32, #tpu.memory_space<vmem>>, vector<1x32x32xf32>
    %331 = vector.shape_cast %330 : vector<1x32x32xf32> to vector<32x32xf32>
    %cst_192 = arith.constant dense<0.000000e+00> : vector<8x32xf32>
    %332 = tpu.matmul %329, %331, %cst_192 {dimension_numbers = #tpu.dot_dimension_numbers<[1], [0], [0], [1], [0, 0, 1, 1], [], []>} : vector<8x32xf32>, vector<32x32xf32>, vector<8x32xf32> -> vector<8x32xf32>
    %333 = arith.addf %231, %332 : vector<8x32xf32>
    %c2_193 = arith.constant 2 : index
    %c0_194 = arith.constant 0 : index
    %c0_195 = arith.constant 0 : index
    %334 = vector.load %arg22[%c2_193, %c0_194, %c0_195] : memref<4x1x32xf32, #tpu.memory_space<vmem>>, vector<1x1x32xf32>
    %335 = vector.shape_cast %334 : vector<1x1x32xf32> to vector<1x32xf32>
    %336 = vector.broadcast %335 : vector<1x32xf32> to vector<8x32xf32>
    %337 = arith.addf %333, %336 : vector<8x32xf32>
    %cst_196 = arith.constant dense<0x7F800000> : vector<3xf32>
    %338 = vector.multi_reduction <minimumf>, %310, %cst_196 [0] : vector<8x3xf32> to vector<3xf32>
    %339 = vector.shape_cast %338 : vector<3xf32> to vector<1x3xf32>
    %340 = vector.broadcast %339 : vector<1x3xf32> to vector<8x3xf32>
    %341 = arith.subf %310, %340 : vector<8x3xf32>
    %cst_197 = arith.constant dense<0xFF800000> : vector<3xf32>
    %342 = vector.multi_reduction <maximumf>, %341, %cst_197 [0] : vector<8x3xf32> to vector<3xf32>
    %343 = vector.shape_cast %342 : vector<3xf32> to vector<1x3xf32>
    %344 = vector.broadcast %343 : vector<1x3xf32> to vector<8x3xf32>
    %345 = arith.divf %341, %344 : vector<8x3xf32>
    %cst_198 = arith.constant dense<0.000000e+00> : vector<56x3xf32>
    %346 = tpu.matmul %6, %345, %cst_198 {dimension_numbers = #tpu.dot_dimension_numbers<[1], [0], [0], [1], [0, 0, 1, 1], [], []>} : vector<56x8xf32>, vector<8x3xf32>, vector<56x3xf32> -> vector<56x3xf32>
    %cst_199 = arith.constant dense<0.000000e+00> : vector<56x3xf32>
    %347 = tpu.matmul %8, %345, %cst_199 {dimension_numbers = #tpu.dot_dimension_numbers<[1], [0], [0], [1], [0, 0, 1, 1], [], []>} : vector<56x8xf32>, vector<8x3xf32>, vector<56x3xf32> -> vector<56x3xf32>
    %348 = arith.subf %346, %347 : vector<56x3xf32>
    %349 = arith.mulf %348, %348 : vector<56x3xf32>
    %cst_200 = arith.constant dense<0.000000e+00> : vector<56xf32>
    %350 = vector.multi_reduction <add>, %349, %cst_200 [1] : vector<56x3xf32> to vector<56xf32>
    %351 = vector.shape_cast %350 : vector<56xf32> to vector<56x1xf32>
    %c3 = arith.constant 3 : index
    %c0_201 = arith.constant 0 : index
    %c0_202 = arith.constant 0 : index
    %352 = vector.load %arg9[%c3, %c0_201, %c0_202] : memref<4x32x64xf32, #tpu.memory_space<vmem>>, vector<1x32x64xf32>
    %353 = vector.shape_cast %352 : vector<1x32x64xf32> to vector<32x64xf32>
    %cst_203 = arith.constant dense<0.000000e+00> : vector<8x64xf32>
    %354 = tpu.matmul %337, %353, %cst_203 {dimension_numbers = #tpu.dot_dimension_numbers<[1], [0], [0], [1], [0, 0, 1, 1], [], []>} : vector<8x32xf32>, vector<32x64xf32>, vector<8x64xf32> -> vector<8x64xf32>
    %355 = vector.extract_strided_slice %354 {offsets = [0, 0], sizes = [8, 32], strides = [1, 1]} : vector<8x64xf32> to vector<8x32xf32>
    %cst_204 = arith.constant dense<0.000000e+00> : vector<56x32xf32>
    %356 = tpu.matmul %6, %355, %cst_204 {dimension_numbers = #tpu.dot_dimension_numbers<[1], [0], [0], [1], [0, 0, 1, 1], [], []>} : vector<56x8xf32>, vector<8x32xf32>, vector<56x32xf32> -> vector<56x32xf32>
    %357 = vector.extract_strided_slice %354 {offsets = [0, 32], sizes = [8, 32], strides = [1, 1]} : vector<8x64xf32> to vector<8x32xf32>
    %cst_205 = arith.constant dense<0.000000e+00> : vector<56x32xf32>
    %358 = tpu.matmul %8, %357, %cst_205 {dimension_numbers = #tpu.dot_dimension_numbers<[1], [0], [0], [1], [0, 0, 1, 1], [], []>} : vector<56x8xf32>, vector<8x32xf32>, vector<56x32xf32> -> vector<56x32xf32>
    %359 = arith.addf %356, %358 : vector<56x32xf32>
    %c3_206 = arith.constant 3 : index
    %c0_207 = arith.constant 0 : index
    %c0_208 = arith.constant 0 : index
    %360 = vector.load %arg10[%c3_206, %c0_207, %c0_208] : memref<4x1x32xf32, #tpu.memory_space<vmem>>, vector<1x1x32xf32>
    %361 = vector.shape_cast %360 : vector<1x1x32xf32> to vector<1x32xf32>
    %362 = vector.broadcast %351 : vector<56x1xf32> to vector<56x32xf32>
    %363 = vector.broadcast %361 : vector<1x32xf32> to vector<56x32xf32>
    %364 = arith.mulf %362, %363 : vector<56x32xf32>
    %365 = arith.addf %359, %364 : vector<56x32xf32>
    %366 = vector.extract_strided_slice %15 {offsets = [0, 96], sizes = [56, 32], strides = [1, 1]} : vector<56x128xf32> to vector<56x32xf32>
    %367 = arith.addf %365, %366 : vector<56x32xf32>
    %c3_209 = arith.constant 3 : index
    %c0_210 = arith.constant 0 : index
    %c0_211 = arith.constant 0 : index
    %368 = vector.load %arg12[%c3_209, %c0_210, %c0_211] : memref<4x1x32xf32, #tpu.memory_space<vmem>>, vector<1x1x32xf32>
    %369 = vector.shape_cast %368 : vector<1x1x32xf32> to vector<1x32xf32>
    %370 = vector.broadcast %369 : vector<1x32xf32> to vector<56x32xf32>
    %371 = arith.addf %367, %370 : vector<56x32xf32>
    %372 = arith.negf %371 : vector<56x32xf32>
    %373 = math.exp %372 : vector<56x32xf32>
    %cst_212 = arith.constant 1.000000e+00 : f32
    %374 = vector.broadcast %cst_212 : f32 to vector<56x32xf32>
    %375 = arith.addf %374, %373 : vector<56x32xf32>
    %376 = arith.divf %374, %375 : vector<56x32xf32>
    %377 = arith.mulf %371, %376 : vector<56x32xf32>
    %c3_213 = arith.constant 3 : index
    %c0_214 = arith.constant 0 : index
    %c0_215 = arith.constant 0 : index
    %378 = vector.load %arg13[%c3_213, %c0_214, %c0_215] : memref<4x32x32xf32, #tpu.memory_space<vmem>>, vector<1x32x32xf32>
    %379 = vector.shape_cast %378 : vector<1x32x32xf32> to vector<32x32xf32>
    %cst_216 = arith.constant dense<0.000000e+00> : vector<56x32xf32>
    %380 = tpu.matmul %377, %379, %cst_216 {dimension_numbers = #tpu.dot_dimension_numbers<[1], [0], [0], [1], [0, 0, 1, 1], [], []>} : vector<56x32xf32>, vector<32x32xf32>, vector<56x32xf32> -> vector<56x32xf32>
    %c3_217 = arith.constant 3 : index
    %c0_218 = arith.constant 0 : index
    %c0_219 = arith.constant 0 : index
    %381 = vector.load %arg14[%c3_217, %c0_218, %c0_219] : memref<4x1x32xf32, #tpu.memory_space<vmem>>, vector<1x1x32xf32>
    %382 = vector.shape_cast %381 : vector<1x1x32xf32> to vector<1x32xf32>
    %383 = vector.broadcast %382 : vector<1x32xf32> to vector<56x32xf32>
    %384 = arith.addf %380, %383 : vector<56x32xf32>
    %385 = arith.negf %384 : vector<56x32xf32>
    %386 = math.exp %385 : vector<56x32xf32>
    %cst_220 = arith.constant 1.000000e+00 : f32
    %387 = vector.broadcast %cst_220 : f32 to vector<56x32xf32>
    %388 = arith.addf %387, %386 : vector<56x32xf32>
    %389 = arith.divf %387, %388 : vector<56x32xf32>
    %390 = arith.mulf %384, %389 : vector<56x32xf32>
    %cst_221 = arith.constant dense<0.000000e+00> : vector<8x32xf32>
    %391 = tpu.matmul %10, %390, %cst_221 {dimension_numbers = #tpu.dot_dimension_numbers<[1], [0], [0], [1], [0, 0, 1, 1], [], []>} : vector<8x56xf32>, vector<56x32xf32>, vector<8x32xf32> -> vector<8x32xf32>
    %c3_222 = arith.constant 3 : index
    %c0_223 = arith.constant 0 : index
    %c0_224 = arith.constant 0 : index
    %392 = vector.load %arg18[%c3_222, %c0_223, %c0_224] : memref<4x32x32xf32, #tpu.memory_space<vmem>>, vector<1x32x32xf32>
    %393 = vector.shape_cast %392 : vector<1x32x32xf32> to vector<32x32xf32>
    %cst_225 = arith.constant dense<0.000000e+00> : vector<8x32xf32>
    %394 = tpu.matmul %337, %393, %cst_225 {dimension_numbers = #tpu.dot_dimension_numbers<[1], [0], [0], [1], [0, 0, 1, 1], [], []>} : vector<8x32xf32>, vector<32x32xf32>, vector<8x32xf32> -> vector<8x32xf32>
    %c3_226 = arith.constant 3 : index
    %c0_227 = arith.constant 0 : index
    %c0_228 = arith.constant 0 : index
    %395 = vector.load %arg19[%c3_226, %c0_227, %c0_228] : memref<4x32x32xf32, #tpu.memory_space<vmem>>, vector<1x32x32xf32>
    %396 = vector.shape_cast %395 : vector<1x32x32xf32> to vector<32x32xf32>
    %cst_229 = arith.constant dense<0.000000e+00> : vector<8x32xf32>
    %397 = tpu.matmul %391, %396, %cst_229 {dimension_numbers = #tpu.dot_dimension_numbers<[1], [0], [0], [1], [0, 0, 1, 1], [], []>} : vector<8x32xf32>, vector<32x32xf32>, vector<8x32xf32> -> vector<8x32xf32>
    %398 = arith.addf %394, %397 : vector<8x32xf32>
    %399 = vector.extract_strided_slice %12 {offsets = [0, 128], sizes = [8, 32], strides = [1, 1]} : vector<8x160xf32> to vector<8x32xf32>
    %400 = arith.addf %398, %399 : vector<8x32xf32>
    %c3_230 = arith.constant 3 : index
    %c0_231 = arith.constant 0 : index
    %c0_232 = arith.constant 0 : index
    %401 = vector.load %arg20[%c3_230, %c0_231, %c0_232] : memref<4x1x32xf32, #tpu.memory_space<vmem>>, vector<1x1x32xf32>
    %402 = vector.shape_cast %401 : vector<1x1x32xf32> to vector<1x32xf32>
    %403 = vector.broadcast %402 : vector<1x32xf32> to vector<8x32xf32>
    %404 = arith.addf %400, %403 : vector<8x32xf32>
    %405 = arith.negf %404 : vector<8x32xf32>
    %406 = math.exp %405 : vector<8x32xf32>
    %cst_233 = arith.constant 1.000000e+00 : f32
    %407 = vector.broadcast %cst_233 : f32 to vector<8x32xf32>
    %408 = arith.addf %407, %406 : vector<8x32xf32>
    %409 = arith.divf %407, %408 : vector<8x32xf32>
    %410 = arith.mulf %404, %409 : vector<8x32xf32>
    %c3_234 = arith.constant 3 : index
    %c0_235 = arith.constant 0 : index
    %c0_236 = arith.constant 0 : index
    %411 = vector.load %arg21[%c3_234, %c0_235, %c0_236] : memref<4x32x32xf32, #tpu.memory_space<vmem>>, vector<1x32x32xf32>
    %412 = vector.shape_cast %411 : vector<1x32x32xf32> to vector<32x32xf32>
    %cst_237 = arith.constant dense<0.000000e+00> : vector<8x32xf32>
    %413 = tpu.matmul %410, %412, %cst_237 {dimension_numbers = #tpu.dot_dimension_numbers<[1], [0], [0], [1], [0, 0, 1, 1], [], []>} : vector<8x32xf32>, vector<32x32xf32>, vector<8x32xf32> -> vector<8x32xf32>
    %414 = arith.addf %337, %413 : vector<8x32xf32>
    %c3_238 = arith.constant 3 : index
    %c0_239 = arith.constant 0 : index
    %c0_240 = arith.constant 0 : index
    %415 = vector.load %arg22[%c3_238, %c0_239, %c0_240] : memref<4x1x32xf32, #tpu.memory_space<vmem>>, vector<1x1x32xf32>
    %416 = vector.shape_cast %415 : vector<1x1x32xf32> to vector<1x32xf32>
    %417 = vector.broadcast %416 : vector<1x32xf32> to vector<8x32xf32>
    %418 = arith.addf %414, %417 : vector<8x32xf32>
    %c0_241 = arith.constant 0 : index
    %c0_242 = arith.constant 0 : index
    %419 = vector.load %arg23[%c0_241, %c0_242] : memref<32x32xf32, #tpu.memory_space<vmem>>, vector<32x32xf32>
    %cst_243 = arith.constant dense<0.000000e+00> : vector<8x32xf32>
    %420 = tpu.matmul %418, %419, %cst_243 {dimension_numbers = #tpu.dot_dimension_numbers<[1], [0], [0], [1], [0, 0, 1, 1], [], []>} : vector<8x32xf32>, vector<32x32xf32>, vector<8x32xf32> -> vector<8x32xf32>
    %c0_244 = arith.constant 0 : index
    %c0_245 = arith.constant 0 : index
    %421 = vector.load %arg24[%c0_244, %c0_245] : memref<1x32xf32, #tpu.memory_space<vmem>>, vector<1x32xf32>
    %422 = vector.broadcast %421 : vector<1x32xf32> to vector<8x32xf32>
    %423 = arith.addf %420, %422 : vector<8x32xf32>
    %424 = arith.negf %423 : vector<8x32xf32>
    %425 = math.exp %424 : vector<8x32xf32>
    %cst_246 = arith.constant 1.000000e+00 : f32
    %426 = vector.broadcast %cst_246 : f32 to vector<8x32xf32>
    %427 = arith.addf %426, %425 : vector<8x32xf32>
    %428 = arith.divf %426, %427 : vector<8x32xf32>
    %429 = arith.mulf %423, %428 : vector<8x32xf32>
    %c0_247 = arith.constant 0 : index
    %c0_248 = arith.constant 0 : index
    %430 = vector.load %arg25[%c0_247, %c0_248] : memref<32x32xf32, #tpu.memory_space<vmem>>, vector<32x32xf32>
    %cst_249 = arith.constant dense<0.000000e+00> : vector<8x32xf32>
    %431 = tpu.matmul %429, %430, %cst_249 {dimension_numbers = #tpu.dot_dimension_numbers<[1], [0], [0], [1], [0, 0, 1, 1], [], []>} : vector<8x32xf32>, vector<32x32xf32>, vector<8x32xf32> -> vector<8x32xf32>
    %c0_250 = arith.constant 0 : index
    %c0_251 = arith.constant 0 : index
    %432 = vector.load %arg26[%c0_250, %c0_251] : memref<1x32xf32, #tpu.memory_space<vmem>>, vector<1x32xf32>
    %433 = vector.broadcast %432 : vector<1x32xf32> to vector<8x32xf32>
    %434 = arith.addf %431, %433 : vector<8x32xf32>
    %c0_252 = arith.constant 0 : index
    %c0_253 = arith.constant 0 : index
    %435 = vector.load %arg27[%c0_252, %c0_253] : memref<32x32xf32, #tpu.memory_space<vmem>>, vector<32x32xf32>
    %cst_254 = arith.constant dense<0.000000e+00> : vector<8x32xf32>
    %436 = tpu.matmul %434, %435, %cst_254 {dimension_numbers = #tpu.dot_dimension_numbers<[1], [0], [0], [1], [0, 0, 1, 1], [], []>} : vector<8x32xf32>, vector<32x32xf32>, vector<8x32xf32> -> vector<8x32xf32>
    %c0_255 = arith.constant 0 : index
    %c0_256 = arith.constant 0 : index
    %437 = vector.load %arg28[%c0_255, %c0_256] : memref<1x32xf32, #tpu.memory_space<vmem>>, vector<1x32xf32>
    %438 = vector.broadcast %437 : vector<1x32xf32> to vector<8x32xf32>
    %439 = arith.addf %436, %438 : vector<8x32xf32>
    %440 = arith.negf %439 : vector<8x32xf32>
    %441 = math.exp %440 : vector<8x32xf32>
    %cst_257 = arith.constant 1.000000e+00 : f32
    %442 = vector.broadcast %cst_257 : f32 to vector<8x32xf32>
    %443 = arith.addf %442, %441 : vector<8x32xf32>
    %444 = arith.divf %442, %443 : vector<8x32xf32>
    %445 = arith.mulf %439, %444 : vector<8x32xf32>
    %c0_258 = arith.constant 0 : index
    %c0_259 = arith.constant 0 : index
    %446 = vector.load %arg29[%c0_258, %c0_259] : memref<32x21xf32, #tpu.memory_space<vmem>>, vector<32x21xf32>
    %cst_260 = arith.constant dense<0.000000e+00> : vector<8x21xf32>
    %447 = tpu.matmul %445, %446, %cst_260 {dimension_numbers = #tpu.dot_dimension_numbers<[1], [0], [0], [1], [0, 0, 1, 1], [], []>} : vector<8x32xf32>, vector<32x21xf32>, vector<8x21xf32> -> vector<8x21xf32>
    %c0_261 = arith.constant 0 : index
    %c0_262 = arith.constant 0 : index
    %448 = vector.load %arg30[%c0_261, %c0_262] : memref<1x21xf32, #tpu.memory_space<vmem>>, vector<1x21xf32>
    %449 = vector.broadcast %448 : vector<1x21xf32> to vector<8x21xf32>
    %450 = arith.addf %447, %449 : vector<8x21xf32>
    %c0_263 = arith.constant 0 : index
    %c0_264 = arith.constant 0 : index
    %451 = vector.load %arg31[%c0_263, %c0_264] : memref<8x21xf32, #tpu.memory_space<vmem>>, vector<8x21xf32>
    tpu.vector_store %arg31[%c0_263, %c0_264], %450 {strides = array<i32>} : memref<8x21xf32, #tpu.memory_space<vmem>>, vector<8x21xf32>,
    return
  }
}

</mosaic_0001>

<bundles_post_ra>
// kernel: egnn2_forward_pallas.1
= control target key start
LH: loop header
LB: loop body
LE: loop exit
PB: predicated region body
PF: predicated region fallthrough
CT: control target
= control target key end

     0   :  { %s9403_s6 = smov 1   ;;  %s9404_s10 = smov 2   ;;  %s11088_s0 = inlined_call_operand.smem [shape: u32[32], index: -1, kind: input, shape index: {}] }
   0x1   :  { %s9474_s5 = sld [smem:[%s11088_s0]]   ;;  %s9405_s14 = smov 3  }
   0x2   :  { %s9479_s9 = sld [smem:[%s11088_s0 + %s9403_s6]]   ;;  %s9406_s18 = smov 4  }
   0x3   :  { %s9484_s13 = sld [smem:[%s11088_s0 + %s9404_s10]]   ;;  %s9407_s22 = smov 5  }
   0x4   :  { %s9489_s17 = sld [smem:[%s11088_s0 + %s9405_s14]]   ;;  %s9408_s26 = smov 6  }
   0x5   :  { %s9494_s21 = sld [smem:[%s11088_s0 + %s9406_s18]]   ;;  %s9409_s30 = smov 7  }
   0x6   :  { %s9499_s25 = sld [smem:[%s11088_s0 + %s9407_s22]]   ;;  %s9410_s4 = smov 8  }
   0x7   :  { %11108 = sst [smem:[#allocation47_spill]] %s9474_s5  ;;  %s9411_s10 = smov 9  }
   0x8   :  { %11109 = sst [smem:[#allocation48_spill]] %s9479_s9  ;;  %s9412_s15 = smov 10  }
   0x9   :  { %11110 = sst [smem:[#allocation49_spill]] %s9484_s13  ;;  %s9413_s20 = smov 11  }
   0xa   :  { %11111 = sst [smem:[#allocation50_spill]] %s9489_s17  ;;  %s9415_s1 = smov 13  }
   0xb   :  { %11112 = sst [smem:[#allocation51_spill]] %s9494_s21  ;;  %s9416_s7 = smov 14  }
   0xc   :  { %11113 = sst [smem:[#allocation52_spill]] %s9499_s25  ;;  %s9418_s22 = smov 16  }
   0xd   :  { %s9504_s29 = sld [smem:[%s11088_s0 + %s9408_s26]]   ;;  %s9414_s26 = smov 12  }
   0xe   :  { %s9509_s3 = sld [smem:[%s11088_s0 + %s9409_s30]]   ;;  %s9419_s28 = smov 17  }
   0xf   :  { %s9514_s8 = sld [smem:[%s11088_s0 + %s9410_s4]]  }
  0x10   :  { %s9519_s14 = sld [smem:[%s11088_s0 + %s9411_s10]]  }
  0x11   :  { %s9524_s19 = sld [smem:[%s11088_s0 + %s9412_s15]]   ;;  %s9417_s15 = smov 15  }
  0x12   :  { %s9529_s24 = sld [smem:[%s11088_s0 + %s9413_s20]]  }
  0x13   :  { %11114 = sst [smem:[#allocation53_spill]] %s9504_s29 }
  0x14   :  { %11115 = sst [smem:[#allocation54_spill]] %s9509_s3 }
  0x15   :  { %s9534_s30 = sld [smem:[%s11088_s0 + %s9414_s26]]  }
  0x16   :  { %11116 = sst [smem:[#allocation55_spill]] %s9519_s14 }
  0x17   :  { %s9539_s6 = sld [smem:[%s11088_s0 + %s9415_s1]]  }
  0x18   :  { %s9544_s12 = sld [smem:[%s11088_s0 + %s9416_s7]]   ;;  %s9420_s7 = smov 18  }
  0x19   :  { %s9549_s20 = sld [smem:[%s11088_s0 + %s9417_s15]]   ;;  %s9421_s15 = smov 19  }
  0x1a   :  { %s9554_s27 = sld [smem:[%s11088_s0 + %s9418_s22]]   ;;  %s9422_s22 = smov 20  }
  0x1b   :  { %s9559_s4 = sld [smem:[%s11088_s0 + %s9419_s28]]   ;;  %s9423_s28 = smov 21  }
  0x1c   :  { %s9564_s29 = sld [smem:[%s11088_s0 + %s9420_s7]]   ;;  %s9424_s7 = smov 22  }
  0x1d   :  { %11117 = sst [smem:[#allocation56_spill]] %s9539_s6 }
  0x1e   :  { %s9569_s13 = sld [smem:[%s11088_s0 + %s9421_s15]]   ;;  %s9425_s15 = smov 23  }
  0x1f   :  { %s9574_s6 = sld [smem:[%s11088_s0 + %s9422_s22]]   ;;  %s9426_s22 = smov 24  }
  0x20   :  { %s9579_s14 = sld [smem:[%s11088_s0 + %s9423_s28]]   ;;  %s9427_s28 = smov 25  }
  0x21   :  { %s9584_s25 = sld [smem:[%s11088_s0 + %s9424_s7]]   ;;  %s9428_s7 = smov 26  }
  0x22   :  { %s9589_s21 = sld [smem:[%s11088_s0 + %s9425_s15]]   ;;  %s9429_s15 = smov 27  }
  0x23   :  { %s9594_s9 = sld [smem:[%s11088_s0 + %s9426_s22]]   ;;  %s9430_s22 = smov 28  }
  0x24   :  { %s9599_s17 = sld [smem:[%s11088_s0 + %s9427_s28]]   ;;  %s9431_s28 = smov 29  }
  0x25   :  { %11118 = sst [smem:[#allocation57_spill]] %s9574_s6 }
  0x26   :  { %s9604_s5 = sld [smem:[%s11088_s0 + %s9428_s7]]   ;;  %s9432_s7 = smov 30  }
  0x27   :  { %11119 = sst [smem:[#allocation58_spill]] %s9584_s25 }
  0x28   :  { %s9609_s3 = sld [smem:[%s11088_s0 + %s9429_s15]]   ;;  %s9433_s15 = smov 31  }
  0x29   :  { %11120 = sst [smem:[#allocation59_spill]] %s9594_s9 }
  0x2a   :  { %s9614_s9 = sld [smem:[%s11088_s0 + %s9430_s22]]  }
  0x2b   :  { %s9619_s25 = sld [smem:[%s11088_s0 + %s9431_s28]]  }
  0x2c   :  { %11121 = sst [smem:[#allocation60_spill]] %s9604_s5 }
  0x2d   :  { %s9624_s5 = sld [smem:[%s11088_s0 + %s9432_s7]]  }
  0x2e   :  { %s9629_s6 = sld [smem:[%s11088_s0 + %s9433_s15]]  }
  0x2f   :  { %68 = vsyncpa [#allocation3], 0 }
  0x30   :  { %69 = vsyncpa [#allocation6], 0 }
  0x31   :  { %70 = vsyncpa [#allocation9], 0 }
  0x32   :  { %71 = vsyncpa [#allocation12], 0 }
  0x33   :  { %72 = vsyncpa [#allocation15], 0 }
  0x34   :  { %73 = vsyncpa [#allocation18], 0 }
  0x35   :  { %74 = vsyncpa [#allocation21], 0 }
  0x36   :  { %75 = vsyncpa [#allocation24], 0 }
  0x37   :  { %76 = vsyncpa [#allocation27], 0 }
  0x38   :  { %77 = vsyncpa [#allocation30], 0 }
  0x39   :  { %78 = vsyncpa [#allocation33], 0 }
  0x3a   :  { %79 = vsyncpa [#allocation4], 0  ;;  %s9434_s22 = smov [#allocation5]   ;;  %s8917_s0 = scalar_lea.hbm %s9524_s19, 64 }
  0x3b   :  { %s113_s23 = sshll.u32 %s9434_s22, 4  ;;  %p8918_p0 = scmp.ne.s32.totalorder %s9524_s19, %s8917_s0  ;;  %s114_s23 = int_to_ptr.vmem [resolvable:$true] %s113_s23 }
  0x3c   :  { %p8921_p1 = scmp.lt.u32.totalorder %s8917_s0, %s9524_s19 }
  0x3e   :  { %p8923_p2 = pnand %p8921_p1, %p8918_p0 }
  0x40   :  { %8926 = shalt.err (!%p8923_p2)
}
  0x41   :  { %s8927_s26 = scalar_lea.vmem %s114_s23, 64  ;;  %p8932_p4 = scmp.lt.s32.totalorder %s114_s23, %s114_s23 }
  0x42   :  { %p8928_p3 = scmp.ne.s32.totalorder %s114_s23, %s8927_s26  ;;  %p8933_p5 = scmp.lt.s32.totalorder %s8927_s26, %s8927_s26 }
  0x44   :  { %p8934_p6 = por %p8933_p5, %p8932_p4 }
  0x46   :  { %p8935_p7 = pnand %p8934_p6, %p8928_p3 }
  0x48   :  { %8938 = shalt.err (!%p8935_p7)
}
  0x49   :  { %s9435_s28 = smov 16   ;;  %s9436_s1 = smov 1  }
  0x4a   :  { %119 = dma.hbm_to_vmem [thread:$0]  %s9524_s19, 64, %s114_s23, [#allocation6], %s9435_s28, %s9435_s28, %s9436_s1  }
  0x4b   :  { %s9437_s2 = smov [#allocation8]   ;;  %s9438_s10 = smov [#allocation11]  }
  0x4c   :  { %s135_s7 = sshll.u32 %s9437_s2, 4  ;;  %s161_s11 = sshll.u32 %s9438_s10, 4  ;;  %s136_s7 = int_to_ptr.vmem [resolvable:$true] %s135_s7  ;;  %s162_s11 = int_to_ptr.vmem [resolvable:$true] %s161_s11 }
  0x4d   :  { %s8939_s15 = scalar_lea.hbm %s9534_s30, 64 }
  0x4e   :  { %p8940_p8 = scmp.ne.s32.totalorder %s9534_s30, %s8939_s15  ;;  %p8943_p9 = scmp.lt.u32.totalorder %s8939_s15, %s9534_s30 }
  0x50   :  { %p8945_p10 = pnand %p8943_p9, %p8940_p8 }
  0x52   :  { %8948 = shalt.err (!%p8945_p10)
}
  0x53   :  { %s8949_s16 = scalar_lea.vmem %s136_s7, 64  ;;  %p8954_p12 = scmp.lt.s32.totalorder %s136_s7, %s136_s7 }
  0x54   :  { %p8950_p11 = scmp.ne.s32.totalorder %s136_s7, %s8949_s16  ;;  %p8955_p13 = scmp.lt.s32.totalorder %s8949_s16, %s8949_s16 }
  0x56   :  { %p8956_p0 = por %p8955_p13, %p8954_p12 }
  0x58   :  { %p8957_p1 = pnand %p8956_p0, %p8950_p11 }
  0x5a   :  { %8960 = shalt.err (!%p8957_p1)
}
  0x5b   :  { %141 = dma.hbm_to_vmem [thread:$0]  %s9534_s30, 64, %s136_s7, [#allocation9], %s9435_s28, %s9435_s28, %s9436_s1  }
  0x5c   :  { %s8961_s19 = scalar_lea.hbm %s9549_s20, 2048 }
  0x5d   :  { %p8962_p2 = scmp.ne.s32.totalorder %s9549_s20, %s8961_s19  ;;  %p8965_p3 = scmp.lt.u32.totalorder %s8961_s19, %s9549_s20 }
  0x5f   :  { %p8967_p4 = pnand %p8965_p3, %p8962_p2 }
  0x61   :  { %8970 = shalt.err (!%p8967_p4)
}
  0x62   :  { %s8971_s18 = scalar_lea.vmem %s162_s11, 2048  ;;  %p8976_p6 = scmp.lt.s32.totalorder %s162_s11, %s162_s11 }
  0x63   :  { %p8972_p5 = scmp.ne.s32.totalorder %s162_s11, %s8971_s18  ;;  %p8977_p7 = scmp.lt.s32.totalorder %s8971_s18, %s8971_s18 }
  0x65   :  { %p8978_p8 = por %p8977_p7, %p8976_p6 }
  0x67   :  { %p8979_p9 = pnand %p8978_p8, %p8972_p5 }
  0x69   :  { %8982 = shalt.err (!%p8979_p9)
}
  0x6a   :  { %s9439_s22 = smov 128   ;;  %s9440_s23 = smov 8  }
  0x6b   :  { %167 = dma.hbm_to_vmem [thread:$0]  %s9549_s20, 2048, %s162_s11, [#allocation12], %s9439_s22, %s9439_s22, %s9440_s23  }
  0x6c   :  { %s9441_s30 = smov [#allocation14]   ;;  %s9442_s26 = smov [#allocation17]  }
  0x6d   :  { %s185_s0 = sshll.u32 %s9441_s30, 4  ;;  %s209_s2 = sshll.u32 %s9442_s26, 4  ;;  %s186_s0 = int_to_ptr.vmem [resolvable:$true] %s185_s0  ;;  %s210_s2 = int_to_ptr.vmem [resolvable:$true] %s209_s2 }
  0x6e   :  { %s8983_s7 = scalar_lea.hbm %s9559_s4, 64 }
  0x6f   :  { %p8984_p10 = scmp.ne.s32.totalorder %s9559_s4, %s8983_s7  ;;  %p8987_p11 = scmp.lt.u32.totalorder %s8983_s7, %s9559_s4 }
  0x71   :  { %p8989_p12 = pnand %p8987_p11, %p8984_p10 }
  0x73   :  { %8992 = shalt.err (!%p8989_p12)
}
  0x74   :  { %s8993_s10 = scalar_lea.vmem %s186_s0, 64  ;;  %p8998_p0 = scmp.lt.s32.totalorder %s186_s0, %s186_s0 }
  0x75   :  { %p8994_p13 = scmp.ne.s32.totalorder %s186_s0, %s8993_s10  ;;  %p8999_p1 = scmp.lt.s32.totalorder %s8993_s10, %s8993_s10 }
  0x77   :  { %p9000_p2 = por %p8999_p1, %p8998_p0 }
  0x79   :  { %p9001_p3 = pnand %p9000_p2, %p8994_p13 }
  0x7b   :  { %9004 = shalt.err (!%p9001_p3)
}
  0x7c   :  { %191 = dma.hbm_to_vmem [thread:$0]  %s9559_s4, 64, %s186_s0, [#allocation15], %s9435_s28, %s9435_s28, %s9436_s1  }
  0x7d   :  { %s9005_s20 = scalar_lea.hbm %s9569_s13, 2048 }
  0x7e   :  { %p9006_p4 = scmp.ne.s32.totalorder %s9569_s13, %s9005_s20  ;;  %p9009_p5 = scmp.lt.u32.totalorder %s9005_s20, %s9569_s13 }
  0x80   :  { %p9011_p6 = pnand %p9009_p5, %p9006_p4 }
  0x82   :  { %9014 = shalt.err (!%p9011_p6)
}
  0x83   :  { %s9015_s11 = scalar_lea.vmem %s210_s2, 2048  ;;  %p9020_p8 = scmp.lt.s32.totalorder %s210_s2, %s210_s2 }
  0x84   :  { %p9016_p7 = scmp.ne.s32.totalorder %s210_s2, %s9015_s11  ;;  %p9021_p9 = scmp.lt.s32.totalorder %s9015_s11, %s9015_s11 }
  0x86   :  { %p9022_p10 = por %p9021_p9, %p9020_p8 }
  0x88   :  { %p9023_p11 = pnand %p9022_p10, %p9016_p7 }
  0x8a   :  { %9026 = shalt.err (!%p9023_p11)
}
  0x8b   :  { %215 = dma.hbm_to_vmem [thread:$0]  %s9569_s13, 2048, %s210_s2, [#allocation18], %s9439_s22, %s9439_s22, %s9440_s23  }
  0x8c   :  { %s9443_s4 = smov [#allocation20]   ;;  %s9444_s16 = smov [#allocation23]  }
  0x8d   :  { %s233_s15 = sshll.u32 %s9443_s4, 4  ;;  %s257_s19 = sshll.u32 %s9444_s16, 4  ;;  %s234_s15 = int_to_ptr.vmem [resolvable:$true] %s233_s15  ;;  %s258_s19 = int_to_ptr.vmem [resolvable:$true] %s257_s19 }
  0x8e   :  { %s9027_s18 = scalar_lea.hbm %s9579_s14, 2048 }
  0x8f   :  { %p9028_p12 = scmp.ne.s32.totalorder %s9579_s14, %s9027_s18  ;;  %p9031_p13 = scmp.lt.u32.totalorder %s9027_s18, %s9579_s14 }
  0x91   :  { %p9033_p0 = pnand %p9031_p13, %p9028_p12 }
  0x93   :  { %9036 = shalt.err (!%p9033_p0)
}
  0x94   :  { %s9037_s30 = scalar_lea.vmem %s234_s15, 2048  ;;  %p9042_p2 = scmp.lt.s32.totalorder %s234_s15, %s234_s15 }
  0x95   :  { %p9038_p1 = scmp.ne.s32.totalorder %s234_s15, %s9037_s30  ;;  %p9043_p3 = scmp.lt.s32.totalorder %s9037_s30, %s9037_s30 }
  0x97   :  { %p9044_p4 = por %p9043_p3, %p9042_p2 }
  0x99   :  { %p9045_p5 = pnand %p9044_p4, %p9038_p1 }
  0x9b   :  { %9048 = shalt.err (!%p9045_p5)
}
  0x9c   :  { %239 = dma.hbm_to_vmem [thread:$0]  %s9579_s14, 2048, %s234_s15, [#allocation21], %s9439_s22, %s9439_s22, %s9440_s23  }
  0x9d   :  { %s9049_s13 = scalar_lea.hbm %s9589_s21, 512 }
  0x9e   :  { %p9050_p6 = scmp.ne.s32.totalorder %s9589_s21, %s9049_s13  ;;  %p9053_p7 = scmp.lt.u32.totalorder %s9049_s13, %s9589_s21 }
  0xa0   :  { %p9055_p8 = pnand %p9053_p7, %p9050_p6 }
  0xa2   :  { %9058 = shalt.err (!%p9055_p8)
}
  0xa3   :  { %s9059_s0 = scalar_lea.vmem %s258_s19, 512  ;;  %p9064_p10 = scmp.lt.s32.totalorder %s258_s19, %s258_s19 }
  0xa4   :  { %p9060_p9 = scmp.ne.s32.totalorder %s258_s19, %s9059_s0  ;;  %p9065_p11 = scmp.lt.s32.totalorder %s9059_s0, %s9059_s0 }
  0xa6   :  { %p9066_p12 = por %p9065_p11, %p9064_p10 }
  0xa8   :  { %p9067_p13 = pnand %p9066_p12, %p9060_p9 }
  0xaa   :  { %9070 = shalt.err (!%p9067_p13)
}
  0xab   :  { %263 = dma.hbm_to_vmem [thread:$0]  %s9589_s21, 512, %s258_s19, [#allocation24], %s9439_s22, %s9439_s22, %s9440_s23  }
  0xac   :  { %s9445_s14 = smov [#allocation26]   ;;  %s9446_s2 = smov [#allocation29]  }
  0xad   :  { %s279_s26 = sshll.u32 %s9445_s14, 4  ;;  %s301_s7 = sshll.u32 %s9446_s2, 4  ;;  %s280_s26 = int_to_ptr.vmem [resolvable:$true] %s279_s26  ;;  %s302_s7 = int_to_ptr.vmem [resolvable:$true] %s301_s7 }
  0xae   :  { %s9071_s10 = scalar_lea.hbm %s9599_s17, 512 }
  0xaf   :  { %p9072_p0 = scmp.ne.s32.totalorder %s9599_s17, %s9071_s10  ;;  %p9075_p1 = scmp.lt.u32.totalorder %s9071_s10, %s9599_s17 }
  0xb1   :  { %p9077_p2 = pnand %p9075_p1, %p9072_p0 }
  0xb3   :  { %9080 = shalt.err (!%p9077_p2)
}
  0xb4   :  { %s9081_s20 = scalar_lea.vmem %s280_s26, 512  ;;  %p9086_p4 = scmp.lt.s32.totalorder %s280_s26, %s280_s26 }
  0xb5   :  { %p9082_p3 = scmp.ne.s32.totalorder %s280_s26, %s9081_s20  ;;  %p9087_p5 = scmp.lt.s32.totalorder %s9081_s20, %s9081_s20 }
  0xb7   :  { %p9088_p6 = por %p9087_p5, %p9086_p4 }
  0xb9   :  { %p9089_p7 = pnand %p9088_p6, %p9082_p3 }
  0xbb   :  { %9092 = shalt.err (!%p9089_p7)
}
  0xbc   :  { %285 = dma.hbm_to_vmem [thread:$0]  %s9599_s17, 512, %s280_s26, [#allocation27], %s9439_s22, %s9439_s22, %s9440_s23  }
  0xbd   :  { %s9093_s21 = scalar_lea.hbm %s9609_s3, 512 }
  0xbe   :  { %p9094_p8 = scmp.ne.s32.totalorder %s9609_s3, %s9093_s21  ;;  %p9097_p9 = scmp.lt.u32.totalorder %s9093_s21, %s9609_s3 }
  0xc0   :  { %p9099_p10 = pnand %p9097_p9, %p9094_p8 }
  0xc2   :  { %9102 = shalt.err (!%p9099_p10)
}
  0xc3   :  { %s9103_s11 = scalar_lea.vmem %s302_s7, 512  ;;  %p9108_p12 = scmp.lt.s32.totalorder %s302_s7, %s302_s7 }
  0xc4   :  { %p9104_p11 = scmp.ne.s32.totalorder %s302_s7, %s9103_s11  ;;  %p9109_p13 = scmp.lt.s32.totalorder %s9103_s11, %s9103_s11 }
  0xc6   :  { %p9110_p0 = por %p9109_p13, %p9108_p12 }
  0xc8   :  { %p9111_p1 = pnand %p9110_p0, %p9104_p11 }
  0xca   :  { %9114 = shalt.err (!%p9111_p1)
}
  0xcb   :  { %307 = dma.hbm_to_vmem [thread:$0]  %s9609_s3, 512, %s302_s7, [#allocation30], %s9439_s22, %s9439_s22, %s9440_s23  }
  0xcc   :  { %s9447_s17 = smov [#allocation2]   ;;  %s9448_s15 = smov [#allocation7]  }
  0xcd   :  { %s102_s4 = sshll.u32 %s9447_s17, 4  ;;  %s126_s16 = sshll.u32 %s9448_s15, 4  ;;  %s103_s4 = int_to_ptr.vmem [resolvable:$true] %s102_s4  ;;  %s127_s16 = int_to_ptr.vmem [resolvable:$true] %s126_s16 }
  0xce   :  { %s9115_s19 = scalar_lea.hbm %s9514_s8, 16 }
  0xcf   :  { %p9116_p2 = scmp.ne.s32.totalorder %s9514_s8, %s9115_s19  ;;  %p9119_p3 = scmp.lt.u32.totalorder %s9115_s19, %s9514_s8 }
  0xd1   :  { %p9121_p4 = pnand %p9119_p3, %p9116_p2 }
  0xd3   :  { %9124 = shalt.err (!%p9121_p4)
}
  0xd4   :  { %s9125_s18 = scalar_lea.vmem %s103_s4, 16  ;;  %s9129_s30 = scalar_lea.vmem %s103_s4, 32 }
  0xd5   :  { %p9126_p5 = scmp.ne.s32.totalorder %s103_s4, %s9125_s18  ;;  %p9130_p6 = scmp.lt.s32.totalorder %s103_s4, %s103_s4 }
  0xd6   :  { %p9131_p7 = scmp.lt.s32.totalorder %s9129_s30, %s9125_s18 }
  0xd8   :  { %p9132_p8 = por %p9131_p7, %p9130_p6 }
  0xda   :  { %p9133_p9 = pnand %p9132_p8, %p9126_p5 }
  0xdc   :  { %9136 = shalt.err (!%p9133_p9)
}
  0xdd   :  { %105 = dma.hbm_to_vmem [thread:$0]  %s9514_s8, 16, %s103_s4, [#allocation3]  }
  0xde   :  { %s9137_s3 = scalar_lea.hbm %s9529_s24, 64 }
  0xdf   :  { %p9138_p10 = scmp.ne.s32.totalorder %s9529_s24, %s9137_s3  ;;  %p9141_p11 = scmp.lt.u32.totalorder %s9137_s3, %s9529_s24 }
  0xe1   :  { %p9143_p12 = pnand %p9141_p11, %p9138_p10 }
  0xe3   :  { %9146 = shalt.err (!%p9143_p12)
}
  0xe4   :  { %s9147_s13 = scalar_lea.vmem %s127_s16, 64  ;;  %p9152_p0 = scmp.lt.s32.totalorder %s127_s16, %s127_s16 }
  0xe5   :  { %p9148_p13 = scmp.ne.s32.totalorder %s127_s16, %s9147_s13  ;;  %p9153_p1 = scmp.lt.s32.totalorder %s9147_s13, %s9147_s13 }
  0xe7   :  { %p9154_p2 = por %p9153_p1, %p9152_p0 }
  0xe9   :  { %p9155_p3 = pnand %p9154_p2, %p9148_p13 }
  0xeb   :  { %9158 = shalt.err (!%p9155_p3)
}
  0xec   :  { %129 = dma.hbm_to_vmem [thread:$0]  %s9529_s24, 64, %s127_s16, [#allocation6]  }
  0xed   :  { %s9449_s0 = smov [#allocation10]   ;;  %s9450_s14 = smov [#allocation13]  }
  0xee   :  { %s149_s8 = sshll.u32 %s9449_s0, 4  ;;  %s173_s26 = sshll.u32 %s9450_s14, 4  ;;  %s150_s8 = int_to_ptr.vmem [resolvable:$true] %s149_s8  ;;  %s174_s26 = int_to_ptr.vmem [resolvable:$true] %s173_s26 }
  0xef   :  { %s9159_s2 = scalar_lea.hbm %s9544_s12, 64 }
  0xf0   :  { %p9160_p4 = scmp.ne.s32.totalorder %s9544_s12, %s9159_s2  ;;  %p9163_p5 = scmp.lt.u32.totalorder %s9159_s2, %s9544_s12 }
  0xf2   :  { %p9165_p6 = pnand %p9163_p5, %p9160_p4 }
  0xf4   :  { %9168 = shalt.err (!%p9165_p6)
}
  0xf5   :  { %s9169_s7 = scalar_lea.vmem %s150_s8, 64  ;;  %p9174_p8 = scmp.lt.s32.totalorder %s150_s8, %s150_s8 }
  0xf6   :  { %p9170_p7 = scmp.ne.s32.totalorder %s150_s8, %s9169_s7  ;;  %p9175_p9 = scmp.lt.s32.totalorder %s9169_s7, %s9169_s7 }
  0xf8   :  { %p9176_p10 = por %p9175_p9, %p9174_p8 }
  0xfa   :  { %p9177_p11 = pnand %p9176_p10, %p9170_p7 }
  0xfc   :  { %9180 = shalt.err (!%p9177_p11)
}
  0xfd   :  { %155 = dma.hbm_to_vmem [thread:$0]  %s9544_s12, 64, %s150_s8, [#allocation9], %s9435_s28, %s9435_s28, %s9436_s1  }
  0xfe   :  { %s9181_s24 = scalar_lea.hbm %s9554_s27, 64 }
  0xff   :  { %p9182_p12 = scmp.ne.s32.totalorder %s9554_s27, %s9181_s24  ;;  %p9185_p13 = scmp.lt.u32.totalorder %s9181_s24, %s9554_s27 }
 0x101   :  { %p9187_p0 = pnand %p9185_p13, %p9182_p12 }
 0x103   :  { %9190 = shalt.err (!%p9187_p0)
}
 0x104   :  { %s9191_s10 = scalar_lea.vmem %s174_s26, 64  ;;  %p9196_p2 = scmp.lt.s32.totalorder %s174_s26, %s174_s26 }
 0x105   :  { %p9192_p1 = scmp.ne.s32.totalorder %s174_s26, %s9191_s10  ;;  %p9197_p3 = scmp.lt.s32.totalorder %s9191_s10, %s9191_s10 }
 0x107   :  { %p9198_p4 = por %p9197_p3, %p9196_p2 }
 0x109   :  { %p9199_p5 = pnand %p9198_p4, %p9192_p1 }
 0x10b   :  { %9202 = shalt.err (!%p9199_p5)
}
 0x10c   :  { %179 = dma.hbm_to_vmem [thread:$0]  %s9554_s27, 64, %s174_s26, [#allocation12], %s9435_s28, %s9435_s28, %s9436_s1  }
 0x10d   :  { %s9451_s12 = smov [#allocation16]   ;;  %s9452_s21 = smov [#allocation19]  }
 0x10e   :  { %s197_s20 = sshll.u32 %s9451_s12, 4  ;;  %s221_s11 = sshll.u32 %s9452_s21, 4  ;;  %s198_s20 = int_to_ptr.vmem [resolvable:$true] %s197_s20  ;;  %s222_s11 = int_to_ptr.vmem [resolvable:$true] %s221_s11 }
 0x10f   :  { %s9203_s17 = scalar_lea.hbm %s9564_s29, 2048 }
 0x110   :  { %p9204_p6 = scmp.ne.s32.totalorder %s9564_s29, %s9203_s17  ;;  %p9207_p7 = scmp.lt.u32.totalorder %s9203_s17, %s9564_s29 }
 0x112   :  { %p9209_p8 = pnand %p9207_p7, %p9204_p6 }
 0x114   :  { %9212 = shalt.err (!%p9209_p8)
}
 0x115   :  { %s9213_s4 = scalar_lea.vmem %s198_s20, 2048  ;;  %p9218_p10 = scmp.lt.s32.totalorder %s198_s20, %s198_s20 }
 0x116   :  { %p9214_p9 = scmp.ne.s32.totalorder %s198_s20, %s9213_s4  ;;  %p9219_p11 = scmp.lt.s32.totalorder %s9213_s4, %s9213_s4 }
 0x118   :  { %p9220_p12 = por %p9219_p11, %p9218_p10 }
 0x11a   :  { %p9221_p13 = pnand %p9220_p12, %p9214_p9 }
 0x11c   :  { %9224 = shalt.err (!%p9221_p13)
}
 0x11d   :  { %s11122_s27 = sld [smem:[#allocation57_spill]] }
 0x11e   :  { %203 = dma.hbm_to_vmem [thread:$0]  %s9564_s29, 2048, %s198_s20, [#allocation15], %s9439_s22, %s9439_s22, %s9440_s23  }
 0x123   :  { %s9225_s15 = scalar_lea.hbm %s11122_s27, 64 }
 0x124   :  { %p9226_p0 = scmp.ne.s32.totalorder %s11122_s27, %s9225_s15  ;;  %p9229_p1 = scmp.lt.u32.totalorder %s9225_s15, %s11122_s27 }
 0x126   :  { %p9231_p2 = pnand %p9229_p1, %p9226_p0 }
 0x128   :  { %9234 = shalt.err (!%p9231_p2)
}
 0x129   :  { %s9235_s16 = scalar_lea.vmem %s222_s11, 64  ;;  %p9240_p4 = scmp.lt.s32.totalorder %s222_s11, %s222_s11 }
 0x12a   :  { %p9236_p3 = scmp.ne.s32.totalorder %s222_s11, %s9235_s16  ;;  %p9241_p5 = scmp.lt.s32.totalorder %s9235_s16, %s9235_s16 }
 0x12c   :  { %p9242_p6 = por %p9241_p5, %p9240_p4 }
 0x12e   :  { %p9243_p7 = pnand %p9242_p6, %p9236_p3 }
 0x130   :  { %9246 = shalt.err (!%p9243_p7)
}
 0x131   :  { %s11123_s19 = sld [smem:[#allocation58_spill]]  ;;  %s9453_s29 = smov [#allocation22]  }
 0x132   :  { %227 = dma.hbm_to_vmem [thread:$0]  %s11122_s27, 64, %s222_s11, [#allocation18], %s9435_s28, %s9435_s28, %s9436_s1  }
 0x133   :  { %s245_s22 = sshll.u32 %s9453_s29, 4  ;;  %s9454_s23 = smov [#allocation25]   ;;  %s246_s22 = int_to_ptr.vmem [resolvable:$true] %s245_s22 }
 0x134   :  { %s270_s18 = sshll.u32 %s9454_s23, 4  ;;  %s271_s18 = int_to_ptr.vmem [resolvable:$true] %s270_s18 }
 0x137   :  { %s9247_s30 = scalar_lea.hbm %s11123_s19, 64 }
 0x138   :  { %p9248_p8 = scmp.ne.s32.totalorder %s11123_s19, %s9247_s30  ;;  %p9251_p9 = scmp.lt.u32.totalorder %s9247_s30, %s11123_s19 }
 0x13a   :  { %p9253_p10 = pnand %p9251_p9, %p9248_p8 }
 0x13c   :  { %9256 = shalt.err (!%p9253_p10)
}
 0x13d   :  { %s9257_s3 = scalar_lea.vmem %s246_s22, 64  ;;  %p9262_p12 = scmp.lt.s32.totalorder %s246_s22, %s246_s22 }
 0x13e   :  { %p9258_p11 = scmp.ne.s32.totalorder %s246_s22, %s9257_s3  ;;  %p9263_p13 = scmp.lt.s32.totalorder %s9257_s3, %s9257_s3 }
 0x140   :  { %p9264_p0 = por %p9263_p13, %p9262_p12 }
 0x142   :  { %p9265_p1 = pnand %p9264_p0, %p9258_p11 }
 0x144   :  { %9268 = shalt.err (!%p9265_p1)
}
 0x145   :  { %s11124_s13 = sld [smem:[#allocation59_spill]] }
 0x146   :  { %251 = dma.hbm_to_vmem [thread:$0]  %s11123_s19, 64, %s246_s22, [#allocation21], %s9435_s28, %s9435_s28, %s9436_s1  }
 0x14b   :  { %s9269_s0 = scalar_lea.hbm %s11124_s13, 16 }
 0x14c   :  { %p9270_p2 = scmp.ne.s32.totalorder %s11124_s13, %s9269_s0  ;;  %p9273_p3 = scmp.lt.u32.totalorder %s9269_s0, %s11124_s13 }
 0x14e   :  { %p9275_p4 = pnand %p9273_p3, %p9270_p2 }
 0x150   :  { %9278 = shalt.err (!%p9275_p4)
}
 0x151   :  { %s9279_s8 = scalar_lea.vmem %s271_s18, 16  ;;  %s9283_s14 = scalar_lea.vmem %s271_s18, 32 }
 0x152   :  { %p9280_p5 = scmp.ne.s32.totalorder %s271_s18, %s9279_s8  ;;  %p9284_p6 = scmp.lt.s32.totalorder %s271_s18, %s271_s18 }
 0x153   :  { %p9285_p7 = scmp.lt.s32.totalorder %s9283_s14, %s9279_s8 }
 0x155   :  { %p9286_p8 = por %p9285_p7, %p9284_p6 }
 0x157   :  { %p9287_p9 = pnand %p9286_p8, %p9280_p5 }
 0x159   :  { %9290 = shalt.err (!%p9287_p9)
}
 0x15a   :  { %s11125_s26 = sld [smem:[#allocation60_spill]]  ;;  %s9455_s28 = smov [#allocation28]  }
 0x15b   :  { %273 = dma.hbm_to_vmem [thread:$0]  %s11124_s13, 16, %s271_s18, [#allocation24]  }
 0x15c   :  { %s292_s1 = sshll.u32 %s9455_s28, 4  ;;  %s9456_s2 = smov [#allocation31]   ;;  %s293_s1 = int_to_ptr.vmem [resolvable:$true] %s292_s1 }
 0x15d   :  { %s314_s7 = sshll.u32 %s9456_s2, 4  ;;  %s315_s7 = int_to_ptr.vmem [resolvable:$true] %s314_s7 }
 0x160   :  { %s9291_s24 = scalar_lea.hbm %s11125_s26, 16 }
 0x161   :  { %p9292_p10 = scmp.ne.s32.totalorder %s11125_s26, %s9291_s24  ;;  %p9295_p11 = scmp.lt.u32.totalorder %s9291_s24, %s11125_s26 }
 0x163   :  { %p9297_p12 = pnand %p9295_p11, %p9292_p10 }
 0x165   :  { %9300 = shalt.err (!%p9297_p12)
}
 0x166   :  { %s9301_s10 = scalar_lea.vmem %s293_s1, 16  ;;  %s9305_s12 = scalar_lea.vmem %s293_s1, 32 }
 0x167   :  { %p9302_p13 = scmp.ne.s32.totalorder %s293_s1, %s9301_s10  ;;  %p9306_p0 = scmp.lt.s32.totalorder %s293_s1, %s293_s1 }
 0x168   :  { %p9307_p1 = scmp.lt.s32.totalorder %s9305_s12, %s9301_s10 }
 0x16a   :  { %p9308_p2 = por %p9307_p1, %p9306_p0 }
 0x16c   :  { %p9309_p3 = pnand %p9308_p2, %p9302_p13 }
 0x16e   :  { %9312 = shalt.err (!%p9309_p3)
}
 0x16f   :  { %295 = dma.hbm_to_vmem [thread:$0]  %s11125_s26, 16, %s293_s1, [#allocation27]  }
 0x170   :  { %s9313_s20 = scalar_lea.hbm %s9614_s9, 16 }
 0x171   :  { %p9314_p4 = scmp.ne.s32.totalorder %s9614_s9, %s9313_s20  ;;  %p9317_p5 = scmp.lt.u32.totalorder %s9313_s20, %s9614_s9 }
 0x173   :  { %p9319_p6 = pnand %p9317_p5, %p9314_p4 }
 0x175   :  { %9322 = shalt.err (!%p9319_p6)
}
 0x176   :  { %s9323_s21 = scalar_lea.vmem %s315_s7, 16  ;;  %s9327_s11 = scalar_lea.vmem %s315_s7, 32 }
 0x177   :  { %p9324_p7 = scmp.ne.s32.totalorder %s315_s7, %s9323_s21  ;;  %p9328_p8 = scmp.lt.s32.totalorder %s315_s7, %s315_s7 }
 0x178   :  { %p9329_p9 = scmp.lt.s32.totalorder %s9327_s11, %s9323_s21 }
 0x17a   :  { %p9330_p10 = por %p9329_p9, %p9328_p8 }
 0x17c   :  { %p9331_p11 = pnand %p9330_p10, %p9324_p7 }
 0x17e   :  { %9334 = shalt.err (!%p9331_p11)
}
 0x17f   :  { %317 = dma.hbm_to_vmem [thread:$0]  %s9614_s9, 16, %s315_s7, [#allocation30]  }
 0x180   :  { %s9457_s17 = smov [#allocation32]   ;;  %s9335_s27 = scalar_lea.hbm %s9624_s5, 16 }
 0x181   :  { %s326_s4 = sshll.u32 %s9457_s17, 4  ;;  %p9336_p12 = scmp.ne.s32.totalorder %s9624_s5, %s9335_s27  ;;  %s327_s4 = int_to_ptr.vmem [resolvable:$true] %s326_s4 }
 0x182   :  { %p9339_p13 = scmp.lt.u32.totalorder %s9335_s27, %s9624_s5 }
 0x184   :  { %p9341_p0 = pnand %p9339_p13, %p9336_p12 }
 0x186   :  { %9344 = shalt.err (!%p9341_p0)
}
 0x187   :  { %s9345_s15 = scalar_lea.vmem %s327_s4, 16  ;;  %s9349_s16 = scalar_lea.vmem %s327_s4, 32 }
 0x188   :  { %p9346_p1 = scmp.ne.s32.totalorder %s327_s4, %s9345_s15  ;;  %p9350_p2 = scmp.lt.s32.totalorder %s327_s4, %s327_s4 }
 0x189   :  { %p9351_p3 = scmp.lt.s32.totalorder %s9349_s16, %s9345_s15 }
 0x18b   :  { %p9352_p4 = por %p9351_p3, %p9350_p2 }
 0x18d   :  { %p9353_p5 = pnand %p9352_p4, %p9346_p1 }
 0x18f   :  { %9356 = shalt.err (!%p9353_p5)
}
 0x190   :  { %329 = dma.hbm_to_vmem [thread:$0]  %s9624_s5, 16, %s327_s4, [#allocation33]  }
 0x191   :  { %9379 = dma.done.wait [#allocation3], 16  }
 0x192   :  { %9380 = vsyncadd [#allocation3], 4294967280 }
 0x193   :  { %9381 = dma.done.wait [#allocation6], 128  }
 0x194   :  { %9382 = vsyncadd [#allocation6], 4294967168 }
 0x195   :  { %9383 = dma.done.wait [#allocation9], 128  }
 0x196   :  { %9384 = vsyncadd [#allocation9], 4294967168 }
 0x197   :  { %9385 = dma.done.wait [#allocation12], 2112  }
 0x198   :  { %9386 = vsyncadd [#allocation12], 4294965184 }
 0x199   :  { %9387 = dma.done.wait [#allocation15], 2112  }
 0x19a   :  { %9388 = vsyncadd [#allocation15], 4294965184 }
 0x19b   :  { %9389 = dma.done.wait [#allocation18], 2112  }
 0x19c   :  { %9390 = vsyncadd [#allocation18], 4294965184 }
 0x19d   :  { %9391 = dma.done.wait [#allocation21], 2112  }
 0x19e   :  { %9392 = vsyncadd [#allocation21], 4294965184 }
 0x19f   :  { %9393 = dma.done.wait [#allocation24], 528  }
 0x1a0   :  { %9394 = vsyncadd [#allocation24], 4294966768 }
 0x1a1   :  { %9395 = dma.done.wait [#allocation27], 528  }
 0x1a2   :  { %9396 = vsyncadd [#allocation27], 4294966768 }
 0x1a3   :  { %9397 = dma.done.wait [#allocation30], 528  }
 0x1a4   :  { %9398 = vsyncadd [#allocation30], 4294966768 }
 0x1a5   :  { %9399 = dma.done.wait [#allocation33], 16  }
 0x1a6   :  { %9400 = vsyncadd [#allocation33], 4294967280  ;;  %s11126_s5 = sld [smem:[#allocation54_spill]]  ;;  %s11127_s9 = sld [smem:[#allocation47_spill]]  ;;  %v11099_v0 = vmov 0.0   ;;  %vm9459_vm0 = vmmov 0  }
 0x1a7   :  { %s11128_s19 = sld [smem:[#allocation50_spill]]  ;;  %495 = vmatprep.mubr.f32.mxu0 %v11099_v0  ;;  %7350 = vmatprep.subr.mxu1 %v11099_v0  ;;  %s11129_s29 = sld [smem:[#allocation48_spill]]  ;;  %vm532_vm1 = vcmask 1043456   ;;  %vm427_vm2 = vcmask 64512   ;;  %vm510_vm3 = vcmask 31744   ;;  %vm644_vm4 = vcmask 23552  }
 0x1a8   :  { %7352 = vmatprep.mubr.msk.f32.mxu1 %vm9459_vm0, %v11099_v0  ;;  %v509_v4 = vld [vmem:[#allocation7] sm:$0xf]  ;;  %s11130_s22 = sld [smem:[#allocation51_spill]]  ;;  %s11131_s23 = sld [smem:[#allocation52_spill]]  ;;  %v11101_v41 = vmov 0.0|0.0   ;;  %vm943_vm5 = vcmask 261120  }
 0x1a9   :  { %7351 = vmatpush3.msk.msra.mxu1 %vm532_vm1, %v509_v4  ;;  %s11132_s18 = sld [smem:[#allocation55_spill]]  ;;  %v6627_v59 = vld [vmem:[#allocation2] ss:$0 sm:$0xff]  ;;  %s9461_s30 = smov 96   ;;  %vm1716_vm6 = vcmask 457728   ;;  %vm6560_vm7 = vcmask 171008  }
 0x1aa   :  { %7396 = vmatprep.subr.mxu1 %v11099_v0  ;;  %s11137_s3 = sld [smem:[#allocation56_spill]]  ;;  %s11138_s13 = sld [smem:[#allocation49_spill]] }
 0x1ab   :  { %s11139_s0 = sld [smem:[#allocation53_spill]]  ;;  %s9463_s8 = smov 64  }
 0x1ac   :  { %v426_v1 = vld [vmem:[%s11126_s5 + $0x8] sm:$0xff]  ;;  %v425_v2 = vld [vmem:[%s11126_s5] sm:$0xff]  ;;  %s9464_s14 = smov 32   ;;  %s9465_s26 = smov [#allocation34]  }
 0x1ad   :  { %v390_v3 = vld [vmem:[%s11127_s9] sm:$0xff]  ;;  %431 = vmatprep.subr.mxu0 %v426_v1  ;;  %v503_v7 = vld [vmem:[%s11128_s19 + $0x8] sm:$0xff]  ;;  %v504_v11 = vld [vmem:[%s11128_s19 + $0x10] sm:$0xff]  ;;  %s6568_s28 = sshll.u32 %s9465_s26, 4  ;;  %s6569_s28 = int_to_ptr.vmem [resolvable:$true] %s6568_s28 }
 0x1ae   :  { %v502_v5 = vld [vmem:[%s11128_s19] sm:$0xff]  ;;  %432 = vmatpush1.msra.mxu0 %v425_v2  ;;  %v505_v14 = vld [vmem:[%s11128_s19 + $0x18] sm:$0xff]  ;;  %v507_v20 = vld [vmem:[%s11128_s19 + $0x28] sm:$0xff]  ;;  %p9362_p7 = scmp.lt.s32.totalorder %s6569_s28, %s6569_s28 }
 0x1af   :  { %6618 = vmatmul.mubr.msk.f32.vlgmr.msra.gmra.mrb[0].mxu0 %vm427_vm2, %v390_v3  ;;  %7353 = vmatmul.mubr.msk.f32.vlgmr.msra.gmra.mrb[0].mxu1 %vm510_vm3, %v502_v5  ;;  %v391_v6 = vld [vmem:[%s11129_s29] sm:$0xff]  ;;  %v508_v23 = vld [vmem:[%s11128_s19 + $0x30] sm:$0xff]  ;;  %v940_v34 = vld [vmem:[%s11132_s18 + $0x8] sm:$0xff] }
 0x1b0   :  { %7355 = vmatprep.mubr.msk.f32.mxu1 %vm9459_vm0, %v11099_v0  ;;  %7373 = vmatprep.subr.mxu0 %v11099_v0  ;;  %v645_v8 = vsel %vm644_vm4, %v391_v6, inf  ;;  %v506_v17 = vld [vmem:[%s11128_s19 + $0x20] sm:$0xff]  ;;  %v6977_v39 = vld [vmem:[%s11130_s22 + $0x8] sm:$0xff]   ;;  %v6978_v46 = vld [vmem:[%s11130_s22 + $0x10] sm:$0xff]  }
 0x1b1   :  { %v646_v9 = vrot.slane %v645_v8, 4  ;;  %7375 = vmatprep.mubr.msk.f32.mxu0 %vm9459_vm0, %v11099_v0  ;;  %v6954_v28 = vld [vmem:[%s11130_s22] sm:$0xff]   ;;  %v6979_v40 = vld [vmem:[%s11131_s23 + $0x8] sm:$0xff]   ;;  %v9828_v42 = vunpack.c.l.bf16 %v6977_v39  ;;  %v9841_v44 = vunpack.c.h.bf16 %v6977_v39  ;;  %v6980_v47 = vld [vmem:[%s11131_s23 + $0x10] sm:$0xff]   ;;  %v9855_v48 = vunpack.c.l.bf16 %v6978_v46 }
 0x1b2   :  { %v6966_v29 = vld [vmem:[%s11131_s23] sm:$0xff]   ;;  %v9798_v31 = vunpack.c.l.bf16 %v6954_v28  ;;  %v9812_v37 = vunpack.c.h.bf16 %v6954_v28  ;;  %v9830_v43 = vunpack.c.l.bf16 %v6979_v40  ;;  %v9843_v45 = vunpack.c.h.bf16 %v6979_v40  ;;  %v401_v52 = vld [vmem:[%s11130_s22 + $0x18] sm:$0xf]  ;;  %v941_v56 = vld [vmem:[%s11132_s18 + $0x10] sm:$0xff] }
 0x1b3   :  { %7356 = vmatmul.mubr.msk.f32.gmra.mrb[2].mxu1 %vm510_vm3, %v503_v7  ;;  %v647_v10 = vmin.f32 %v645_v8, %v646_v9  ;;  %v9800_v32 = vunpack.c.l.bf16 %v6966_v29  ;;  %v939_v33 = vld [vmem:[%s11132_s18] sm:$0xff]  ;;  %v9814_v38 = vunpack.c.h.bf16 %v6966_v29  ;;  %v9857_v49 = vunpack.c.l.bf16 %v6980_v47  ;;  %v415_v53 = vld [vmem:[%s11131_s23 + $0x18] sm:$0xf] }
 0x1b4   :  { %7358 = vmatprep.mubr.msk.f32.mxu1 %vm9459_vm0, %v11099_v0  ;;  %v8284_v36 = vpack.c.bf16 %v940_v34, %v939_v33  ;;  %v9867_v50 = vunpack.c.h.bf16 %v6978_v46  ;;  %v9869_v51 = vunpack.c.h.bf16 %v6980_v47  ;;  %v9881_v54 = vunpack.c.l.bf16 %v401_v52  ;;  %v942_v57 = vld [vmem:[%s11132_s18 + $0x18] sm:$0xff] }
 0x1b5   :  { %v648_v12 = vrot.slane %v647_v10, 2  ;;  %v9883_v55 = vunpack.c.l.bf16 %v415_v53  ;;  %v8287_v58 = vpack.c.bf16 %v942_v57, %v941_v56 }
 0x1b7   :  { %7359 = vmatmul.mubr.msk.f32.gmra.mrb[4].mxu1 %vm510_vm3, %v504_v11  ;;  %v649_v13 = vmin.f32 %v647_v10, %v648_v12 }
 0x1b8   :  { %7361 = vmatprep.mubr.msk.f32.mxu1 %vm9459_vm0, %v11099_v0 }
 0x1b9   :  { %v650_v15 = vrot.slane %v649_v13, 1 }
 0x1bb   :  { %7362 = vmatmul.mubr.msk.f32.gmra.mrb[6].mxu1 %vm510_vm3, %v505_v14  ;;  %v651_v16 = vmin.f32 %v649_v13, %v650_v15 }
 0x1bc   :  { %7364 = vmatprep.mubr.msk.f32.mxu1 %vm9459_vm0, %v11099_v0 }
 0x1bd   :  { %v652_v18 = vsub.f32 %v391_v6, %v651_v16 }
 0x1bf   :  { %7365 = vmatmul.mubr.msk.f32.gmra.mrb[8].mxu1 %vm510_vm3, %v506_v17  ;;  %v653_v19 = vsel %vm644_vm4, %v652_v18, -inf }
 0x1c0   :  { %7367 = vmatprep.mubr.msk.f32.mxu1 %vm9459_vm0, %v11099_v0  ;;  %v654_v21 = vrot.slane %v653_v19, 4 }
 0x1c2   :  { %v655_v22 = vmax.f32 %v653_v19, %v654_v21 }
 0x1c3   :  { %7368 = vmatmul.mubr.msk.f32.gmra.mrb[10].mxu1 %vm510_vm3, %v507_v20 }
 0x1c4   :  { %7370 = vmatprep.mubr.msk.f32.mxu1 %vm9459_vm0, %v11099_v0  ;;  %v656_v24 = vrot.slane %v655_v22, 2 }
 0x1c6   :  { %v657_v25 = vmax.f32 %v655_v22, %v656_v24 }
 0x1c7   :  { %7371 = vmatmul.mubr.msk.f32.gmra.mrb[12].mxu1 %vm510_vm3, %v508_v23 }
 0x1c8   :  { %v658_v26 = vrot.slane %v657_v25, 1  ;;  %7398 = vmatprep.mubr.msk.f32.mxu1 %vm9459_vm0, %v11099_v0 }
 0x1ca   :  { %v659_v27 = vmax.f32 %v657_v25, %v658_v26 }
 0x1cc   :  { %8575 = vrcp.f32 %v659_v27 }
 0x1d6   :  { %v8576_v30 = vpop.eup %8575 }
 0x1d7   :  { %v9804_v35 = vmul.f32 %v8576_v30, %v652_v18 }
 0x1d9   :  { %7374 = vmatpush3.msra.mxu0 %v9804_v35  ;;  %7397 = vmatpush3.msra.mxu1 %v9804_v35 }
 0x1da   :  { %7376 = vmatmul.mubr.msk.f32.vlgmr.msra.gmra.mrb[2].mxu0 %vm427_vm2, %v9798_v31  ;;  %7399 = vmatmul.mubr.msk.f32.vlgmr.msra.gmra.mrb[14].mxu1 %vm427_vm2, %v9800_v32 }
 0x1db   :  { %7378 = vmatprep.mubr.msk.f32.mxu0 %vm9459_vm0, %v11099_v0  ;;  %7401 = vmatprep.mubr.msk.f32.mxu1 %vm9459_vm0, %v11099_v0 }
 0x1dc   :  { %8283 = vmatprep.subr.bf16.mxu0 %v11101_v41  ;;  %7453 = vmatprep.subr.mxu1 %v11099_v0 }
 0x1dd   :  { %8285 = vmatpush3.bf16.msra.mxu0 %v8284_v36 }
 0x1de   :  { %7379 = vmatmul.mubr.msk.f32.gmra.mrb[4].mxu0 %vm427_vm2, %v9812_v37  ;;  %7402 = vmatmul.mubr.msk.f32.gmra.mrb[16].mxu1 %vm427_vm2, %v9814_v38 }
 0x1df   :  { %7381 = vmatprep.mubr.msk.f32.mxu0 %vm9459_vm0, %v11099_v0  ;;  %7404 = vmatprep.mubr.msk.f32.mxu1 %vm9459_vm0, %v11099_v0 }
 0x1e0   :  { %8286 = vmatprep.subr.bf16.mxu0 %v11101_v41 }
 0x1e1   :  { %8288 = vmatpush3.bf16.msra.mxu0 %v8287_v58 }
 0x1e2   :  { %7382 = vmatmul.mubr.msk.f32.gmra.mrb[6].mxu0 %vm427_vm2, %v9828_v42  ;;  %7405 = vmatmul.mubr.msk.f32.gmra.mrb[18].mxu1 %vm427_vm2, %v9830_v43 }
 0x1e3   :  { %7384 = vmatprep.mubr.msk.f32.mxu0 %vm9459_vm0, %v11099_v0  ;;  %7407 = vmatprep.mubr.msk.f32.mxu1 %vm9459_vm0, %v11099_v0 }
 0x1e4   :  { %7430 = vmatprep.subr.mxu0 %v11099_v0 }
 0x1e6   :  { %7385 = vmatmul.mubr.msk.f32.gmra.mrb[8].mxu0 %vm427_vm2, %v9841_v44  ;;  %7408 = vmatmul.mubr.msk.f32.gmra.mrb[20].mxu1 %vm427_vm2, %v9843_v45 }
 0x1e7   :  { %7387 = vmatprep.mubr.msk.f32.mxu0 %vm9459_vm0, %v11099_v0  ;;  %7410 = vmatprep.mubr.msk.f32.mxu1 %vm9459_vm0, %v11099_v0 }
 0x1ea   :  { %7388 = vmatmul.mubr.msk.f32.gmra.mrb[10].mxu0 %vm427_vm2, %v9855_v48  ;;  %7411 = vmatmul.mubr.msk.f32.gmra.mrb[22].mxu1 %vm427_vm2, %v9857_v49 }
 0x1eb   :  { %7390 = vmatprep.mubr.msk.f32.mxu0 %vm9459_vm0, %v11099_v0  ;;  %7413 = vmatprep.mubr.msk.f32.mxu1 %vm9459_vm0, %v11099_v0 }
 0x1ee   :  { %7391 = vmatmul.mubr.msk.f32.gmra.mrb[12].mxu0 %vm427_vm2, %v9867_v50  ;;  %7414 = vmatmul.mubr.msk.f32.gmra.mrb[24].mxu1 %vm427_vm2, %v9869_v51 }
 0x1ef   :  { %7393 = vmatprep.mubr.msk.f32.mxu0 %vm9459_vm0, %v11099_v0  ;;  %7416 = vmatprep.mubr.msk.f32.mxu1 %vm9459_vm0, %v11099_v0 }
 0x1f2   :  { %7394 = vmatmul.mubr.msk.f32.gmra.mrb[14].mxu0 %vm427_vm2, %v9881_v54  ;;  %7417 = vmatmul.mubr.msk.f32.gmra.mrb[26].mxu1 %vm427_vm2, %v9883_v55 }
 0x1f3   :  { %7427 = vmatprep.mubr.msk.f32.mxu0 %vm9459_vm0, %v11099_v0  ;;  %7455 = vmatprep.mubr.msk.f32.mxu1 %vm9459_vm0, %v11099_v0 }
 0x282   :  { %v9900_v60 = vpop.f32.mrb[0].mxu0  ;;  %v9902_v61 = vpop.f32.mrb[0].mxu1 }
 0x283   :  { %11133 = vst [vmem:[#allocation61_spill] sm:$0xff] %v9902_v61  ;;  %v9905_v62 = vadd.f32 %v6627_v59, %v9900_v60  ;;  %v9907_v63 = vpop.f32.mrb[1].mxu0  ;;  %v7354_v1 = vpop.f32.mrb[1].mxu1 }
 0x284   :  { %11134 = vst [vmem:[#allocation62_spill] sm:$0xff] %v9907_v63 }
 0x285   :  { %7428 = vmatmul.mubr.msk.f32.vlgmr.msra.gmra.mrb[16].mxu0 %vm943_vm5, %v9905_v62 }
 0x286   :  { %v9911_v2 = vpop.f32.mrb[2].mxu1  ;;  %7432 = vmatprep.mubr.msk.f32.mxu0 %vm9459_vm0, %v11099_v0 }
 0x287   :  { %v7357_v3 = vpop.f32.mrb[3].mxu1 }
 0x28a   :  { %v9915_v4 = vpop.f32.mrb[4].mxu1 }
 0x28b   :  { %v7360_v5 = vpop.f32.mrb[5].mxu1 }
 0x28e   :  { %v9917_v6 = vpop.f32.mrb[6].mxu1 }
 0x28f   :  { %v7363_v7 = vpop.f32.mrb[7].mxu1 }
 0x292   :  { %v9919_v8 = vpop.f32.mrb[8].mxu1 }
 0x293   :  { %v7366_v9 = vpop.f32.mrb[9].mxu1 }
 0x296   :  { %v9921_v10 = vpop.f32.mrb[10].mxu1 }
 0x297   :  { %11135 = vst [vmem:[#allocation63_spill] sm:$0xff] %v9921_v10  ;;  %v7369_v11 = vpop.f32.mrb[11].mxu1 }
 0x29a   :  { %v9923_v12 = vpop.f32.mrb[12].mxu1 }
 0x29b   :  { %11136 = vst [vmem:[#allocation64_spill] sm:$0xff] %v9923_v12  ;;  %v7372_v13 = vpop.f32.mrb[13].mxu1 }
 0x2ad   :  { %v749_v14 = vpop.f32.mrb[2].mxu0  ;;  %v870_v15 = vpop.f32.mrb[14].mxu1 }
 0x2ae   :  { %v7377_v16 = vpop.f32.mrb[3].mxu0  ;;  %v9925_v17 = vsub.f32 %v749_v14, %v870_v15  ;;  %v7400_v18 = vpop.f32.mrb[15].mxu1 }
 0x2b1   :  { %v754_v19 = vpop.f32.mrb[4].mxu0  ;;  %v875_v20 = vpop.f32.mrb[16].mxu1 }
 0x2b2   :  { %v7380_v21 = vpop.f32.mrb[5].mxu0  ;;  %v9927_v22 = vsub.f32 %v754_v19, %v875_v20  ;;  %v7403_v23 = vpop.f32.mrb[17].mxu1 }
 0x2b4   :  { %v912_v24 = vmul.f32 %v9927_v22, %v9927_v22 }
 0x2b5   :  { %v759_v25 = vpop.f32.mrb[6].mxu0  ;;  %v880_v26 = vpop.f32.mrb[18].mxu1 }
 0x2b6   :  { %v7383_v27 = vpop.f32.mrb[7].mxu0  ;;  %v9931_v28 = vsub.f32 %v759_v25, %v880_v26  ;;  %v921_v29 = vsel %vm644_vm4, %v912_v24, 0.0  ;;  %v7406_v30 = vpop.f32.mrb[19].mxu1 }
 0x2b7   :  { %922 = vadd.xlane.f32.xlu1 %v921_v29  ;;  %v911_v29 = vmul.f32 %v9925_v17, %v9925_v17 }
 0x2b8   :  { %v913_v33 = vmul.f32 %v9931_v28, %v9931_v28 }
 0x2b9   :  { %v764_v34 = vpop.f32.mrb[8].mxu0  ;;  %v885_v36 = vpop.f32.mrb[20].mxu1  ;;  %v918_v30 = vsel %vm644_vm4, %v911_v29, 0.0 }
 0x2ba   :  { %v7386_v39 = vpop.f32.mrb[9].mxu0  ;;  %v9936_v40 = vsub.f32 %v764_v34, %v885_v36  ;;  %v924_v46 = vsel %vm644_vm4, %v913_v33, 0.0  ;;  %v7409_v47 = vpop.f32.mrb[21].mxu1 }
 0x2bb   :  { %925 = vadd.xlane.f32.xlu1 %v924_v46 }
 0x2bc   :  { %v914_v52 = vmul.f32 %v9936_v40, %v9936_v40 }
 0x2bd   :  { %v769_v53 = vpop.f32.mrb[10].mxu0  ;;  %v890_v56 = vpop.f32.mrb[22].mxu1 }
 0x2be   :  { %v7389_v57 = vpop.f32.mrb[11].mxu0  ;;  %v9941_v58 = vsub.f32 %v769_v53, %v890_v56  ;;  %v927_v59 = vsel %vm644_vm4, %v914_v52, 0.0  ;;  %v7412_v1 = vpop.f32.mrb[23].mxu1 }
 0x2bf   :  { %928 = vadd.xlane.f32.xlu1 %v927_v59  ;;  %v1312_v57 = vld [vmem:[%s11137_s3] sm:$0xff]  ;;  %v1313_v59 = vld [vmem:[%s11137_s3 + $0x8] sm:$0xff] }
 0x2c0   :  { %v915_v3 = vmul.f32 %v9941_v58, %v9941_v58  ;;  %v8290_v1 = vpack.c.bf16 %v1313_v59, %v1312_v57 }
 0x2c1   :  { %v774_v5 = vpop.f32.mrb[12].mxu0  ;;  %v895_v7 = vpop.f32.mrb[24].mxu1 }
 0x2c2   :  { %v7392_v9 = vpop.f32.mrb[13].mxu0  ;;  %v9946_v11 = vsub.f32 %v774_v5, %v895_v7  ;;  %v930_v13 = vsel %vm644_vm4, %v915_v3, 0.0  ;;  %v7415_v14 = vpop.f32.mrb[25].mxu1  ;;  %v1314_v7 = vld [vmem:[%s11137_s3 + $0x10] sm:$0xff] }
 0x2c3   :  { %931 = vadd.xlane.f32.xlu1 %v930_v13  ;;  %v1315_v9 = vld [vmem:[%s11137_s3 + $0x18] sm:$0xff] }
 0x2c4   :  { %v916_v15 = vmul.f32 %v9946_v11, %v9946_v11  ;;  %v8293_v13 = vpack.c.bf16 %v1315_v9, %v1314_v7 }
 0x2c5   :  { %v779_v16 = vpop.f32.mrb[14].mxu0  ;;  %v900_v18 = vpop.f32.mrb[26].mxu1 }
 0x2c6   :  { %v7395_v19 = vpop.f32.mrb[15].mxu0  ;;  %v9951_v20 = vsub.f32 %v779_v16, %v900_v18  ;;  %v933_v21 = vsel %vm644_vm4, %v916_v15, 0.0  ;;  %v7418_v23 = vpop.f32.mrb[27].mxu1 }
 0x2c7   :  { %934 = vadd.xlane.f32.xlu1 %v933_v21 }
 0x2c8   :  { %v917_v24 = vmul.f32 %v9951_v20, %v9951_v20 }
 0x2ca   :  { %v936_v25 = vsel %vm644_vm4, %v917_v24, 0.0  ;;  %v6657_v24 = vld [vmem:[#allocation5] ss:$0 sm:$0xff] }
 0x2cb   :  { %937 = vadd.xlane.f32.xlu1 %v936_v25 }
 0x344   :  { %v923_v19 = vpop.xlane.xlu1 %922 }
 0x348   :  { %v926_v21 = vpop.xlane.xlu1 %925 }
 0x349   :  { %v1230_v9 = vmul.f32 %v6657_v24, %v926_v21 }
 0x358   :  { %v1013_v26 = vpop.f32.mrb[16].mxu0 }
 0x359   :  { %1018 = vrot.lane.b32.xlu0 %v1013_v26, %s9461_s30  ;;  %v7429_v27 = vpop.f32.mrb[17].mxu0  ;;  %7454 = vmatpush3.msra.mxu1 %v1013_v26 }
 0x35a   :  { %7456 = vmatmul.mubr.msk.f32.vlgmr.msra.gmra.mrb[28].mxu1 %vm427_vm2, %v9798_v31  ;;  %8295 = vmatprep.subr.bf16.mxu1 %v11101_v41 }
 0x35b   :  { %7458 = vmatprep.mubr.msk.f32.mxu1 %vm9459_vm0, %v11099_v0 }
 0x35e   :  { %7459 = vmatmul.mubr.msk.f32.gmra.mrb[30].mxu1 %vm427_vm2, %v9812_v37 }
 0x35f   :  { %7461 = vmatprep.mubr.msk.f32.mxu1 %vm9459_vm0, %v11099_v0 }
 0x362   :  { %7462 = vmatmul.mubr.msk.f32.gmra.mrb[32].mxu1 %vm427_vm2, %v9828_v42 }
 0x363   :  { %7464 = vmatprep.mubr.msk.f32.mxu1 %vm9459_vm0, %v11099_v0 }
 0x366   :  { %7465 = vmatmul.mubr.msk.f32.gmra.mrb[34].mxu1 %vm427_vm2, %v9841_v44 }
 0x367   :  { %7467 = vmatprep.mubr.msk.f32.mxu1 %vm9459_vm0, %v11099_v0 }
 0x36a   :  { %7468 = vmatmul.mubr.msk.f32.gmra.mrb[36].mxu1 %vm427_vm2, %v9855_v48 }
 0x36b   :  { %7470 = vmatprep.mubr.msk.f32.mxu1 %vm9459_vm0, %v11099_v0 }
 0x36e   :  { %7471 = vmatmul.mubr.msk.f32.gmra.mrb[38].mxu1 %vm427_vm2, %v9867_v50 }
 0x36f   :  { %7473 = vmatprep.mubr.msk.f32.mxu1 %vm9459_vm0, %v11099_v0 }
 0x372   :  { %7474 = vmatmul.mubr.msk.f32.gmra.mrb[40].mxu1 %vm427_vm2, %v9881_v54 }
 0x373   :  { %7513 = vmatprep.mubr.msk.f32.mxu1 %vm9459_vm0, %v11099_v0 }
 0x378   :  { %919 = vadd.xlane.f32.xlu0 %v918_v30 }
 0x3cb   :  { %v1019_v33 = vpop.permute.xlu0 %1018 }
 0x3cc   :  { %7431 = vmatpush3.msra.mxu0 %v1019_v33  ;;  %v929_v33 = vpop.xlane.xlu1 %928 }
 0x3cd   :  { %7433 = vmatmul.mubr.msk.f32.vlgmr.msra.gmra.mrb[18].mxu0 %vm427_vm2, %v9800_v32  ;;  %8289 = vmatprep.subr.bf16.mxu0 %v11101_v41 }
 0x3ce   :  { %7435 = vmatprep.mubr.msk.f32.mxu0 %vm9459_vm0, %v11099_v0  ;;  %8291 = vmatpush3.bf16.msra.mxu0 %v8290_v1 }
 0x3cf   :  { %8292 = vmatprep.subr.bf16.mxu0 %v11101_v41 }
 0x3d1   :  { %7436 = vmatmul.mubr.msk.f32.gmra.mrb[20].mxu0 %vm427_vm2, %v9814_v38 }
 0x3d2   :  { %7438 = vmatprep.mubr.msk.f32.mxu0 %vm9459_vm0, %v11099_v0  ;;  %8294 = vmatpush3.bf16.msra.mxu0 %v8293_v13 }
 0x3d3   :  { %8301 = vmatprep.subr.bf16.mxu0 %v11101_v41 }
 0x3d5   :  { %7439 = vmatmul.mubr.msk.f32.gmra.mrb[22].mxu0 %vm427_vm2, %v9830_v43 }
 0x3d6   :  { %7441 = vmatprep.mubr.msk.f32.mxu0 %vm9459_vm0, %v11099_v0 }
 0x3d9   :  { %7442 = vmatmul.mubr.msk.f32.gmra.mrb[24].mxu0 %vm427_vm2, %v9843_v45 }
 0x3da   :  { %7444 = vmatprep.mubr.msk.f32.mxu0 %vm9459_vm0, %v11099_v0 }
 0x3dd   :  { %7445 = vmatmul.mubr.msk.f32.gmra.mrb[26].mxu0 %vm427_vm2, %v9857_v49 }
 0x3de   :  { %7447 = vmatprep.mubr.msk.f32.mxu0 %vm9459_vm0, %v11099_v0 }
 0x3e1   :  { %7448 = vmatmul.mubr.msk.f32.gmra.mrb[28].mxu0 %vm427_vm2, %v9869_v51 }
 0x3e2   :  { %7450 = vmatprep.mubr.msk.f32.mxu0 %vm9459_vm0, %v11099_v0 }
 0x3e5   :  { %7451 = vmatmul.mubr.msk.f32.gmra.mrb[30].mxu0 %vm427_vm2, %v9883_v55 }
 0x3e6   :  { %7484 = vmatprep.mubr.msk.f32.mxu0 %vm9459_vm0, %v11099_v0 }
 0x405   :  { %v920_v23 = vpop.xlane.xlu0 %919 }
 0x406   :  { %v1228_v26 = vmul.f32 %v6657_v24, %v920_v23  ;;  %v932_v23 = vpop.xlane.xlu1 %931 }
 0x42d   :  { %v1187_v34 = vpop.f32.mrb[28].mxu1 }
 0x42e   :  { %v7457_v36 = vpop.f32.mrb[29].mxu1 }
 0x42f   :  { %v10027_v36 = vld [vmem:[#allocation8] ss:$0 sm:$0xff] }
 0x431   :  { %v1192_v39 = vpop.f32.mrb[30].mxu1 }
 0x432   :  { %v7460_v46 = vpop.f32.mrb[31].mxu1 }
 0x435   :  { %v1197_v47 = vpop.f32.mrb[32].mxu1 }
 0x436   :  { %v7463_v52 = vpop.f32.mrb[33].mxu1 }
 0x437   :  { %v1229_v52 = vmul.f32 %v6657_v24, %v923_v19 }
 0x439   :  { %v1202_v53 = vpop.f32.mrb[34].mxu1 }
 0x43a   :  { %v7466_v56 = vpop.f32.mrb[35].mxu1 }
 0x43d   :  { %v1207_v3 = vpop.f32.mrb[36].mxu1 }
 0x43e   :  { %v7469_v5 = vpop.f32.mrb[37].mxu1 }
 0x441   :  { %v1212_v14 = vpop.f32.mrb[38].mxu1 }
 0x442   :  { %v7472_v15 = vpop.f32.mrb[39].mxu1 }
 0x445   :  { %v10025_v16 = vpop.f32.mrb[40].mxu1 }
 0x446   :  { %v7475_v18 = vpop.f32.mrb[41].mxu1 }
 0x4a0   :  { %v1087_v25 = vpop.f32.mrb[18].mxu0 }
 0x4a1   :  { %v1188_v27 = vadd.f32 %v1187_v34, %v1087_v25  ;;  %v7434_v29 = vpop.f32.mrb[19].mxu0 }
 0x4a3   :  { %v1235_v30 = vadd.f32 %v1228_v26, %v1188_v27  ;;  %v1231_v26 = vmul.f32 %v6657_v24, %v929_v33 }
 0x4a4   :  { %v1092_v46 = vpop.f32.mrb[20].mxu0 }
 0x4a5   :  { %v1242_v56 = vadd.f32 %v1235_v30, %v9902_v61  ;;  %v1193_v57 = vadd.f32 %v1192_v39, %v1092_v46  ;;  %v7437_v59 = vpop.f32.mrb[21].mxu0 }
 0x4a7   :  { %v10031_v1 = vadd.f32 %v10027_v36, %v1242_v56  ;;  %v1236_v5 = vadd.f32 %v1229_v52, %v1193_v57  ;;  %v935_v52 = vpop.xlane.xlu1 %934  ;;  %v1232_v57 = vmul.f32 %v6657_v24, %v932_v23 }
 0x4a8   :  { %v1097_v7 = vpop.f32.mrb[22].mxu0 }
 0x4a9   :  { %v6659_v13 = vmul.f32 -1.442695, %v10031_v1  ;;  %v1243_v34 = vadd.f32 %v1236_v5, %v9911_v2  ;;  %v1198_v15 = vadd.f32 %v1197_v47, %v1097_v7  ;;  %v7440_v18 = vpop.f32.mrb[23].mxu0 }
 0x4ab   :  { %8577 = vpow2.f32 %v6659_v13  ;;  %v10036_v19 = vadd.f32 %v10027_v36, %v1243_v34  ;;  %v1237_v25 = vadd.f32 %v1230_v9, %v1198_v15  ;;  %v1233_v15 = vmul.f32 %v6657_v24, %v935_v52 }
 0x4ac   :  { %v1102_v39 = vpop.f32.mrb[24].mxu0 }
 0x4ad   :  { %v6660_v27 = vmul.f32 -1.442695, %v10036_v19  ;;  %v1244_v29 = vadd.f32 %v1237_v25, %v9915_v4  ;;  %v1203_v30 = vadd.f32 %v1202_v53, %v1102_v39  ;;  %v7443_v21 = vpop.f32.mrb[25].mxu0 }
 0x4af   :  { %8579 = vpow2.f32 %v6660_v27  ;;  %v10041_v46 = vadd.f32 %v10027_v36, %v1244_v29  ;;  %v1238_v47 = vadd.f32 %v1231_v26, %v1203_v30  ;;  %v938_v27 = vpop.xlane.xlu1 %937 }
 0x4b0   :  { %v1107_v56 = vpop.f32.mrb[26].mxu0 }
 0x4b1   :  { %v6661_v59 = vmul.f32 -1.442695, %v10041_v46  ;;  %v1245_v5 = vadd.f32 %v1238_v47, %v9917_v6  ;;  %v1208_v7 = vadd.f32 %v1207_v3, %v1107_v56  ;;  %v7446_v33 = vpop.f32.mrb[27].mxu0  ;;  %v1234_v47 = vmul.f32 %v6657_v24, %v938_v27 }
 0x4b3   :  { %8581 = vpow2.f32 %v6661_v59  ;;  %v1259_v9 = vadd.f32 %v10027_v36, %v1245_v5  ;;  %v1239_v13 = vadd.f32 %v1232_v57, %v1208_v7 }
 0x4b4   :  { %v1112_v53 = vpop.f32.mrb[28].mxu0 }
 0x4b5   :  { %v8578_v34 = vpop.eup %8577  ;;  %v6662_v18 = vmul.f32 -1.442695, %v1259_v9  ;;  %v1246_v25 = vadd.f32 %v1239_v13, %v9919_v8  ;;  %v1213_v39 = vadd.f32 %v1212_v14, %v1112_v53  ;;  %v7449_v26 = vpop.f32.mrb[29].mxu0 }
 0x4b6   :  { %v1284_v23 = vadd.f32 1.0, %v8578_v34 }
 0x4b7   :  { %8583 = vpow2.f32 %v6662_v18  ;;  %v1260_v29 = vadd.f32 %v10027_v36, %v1246_v25  ;;  %v1240_v30 = vadd.f32 %v1233_v15, %v1213_v39 }
 0x4b8   :  { %8585 = vrcp.f32 %v1284_v23  ;;  %v1117_v3 = vpop.f32.mrb[30].mxu0 }
 0x4b9   :  { %v8580_v21 = vpop.eup %8579  ;;  %v6663_v56 = vmul.f32 -1.442695, %v1260_v29  ;;  %v1247_v57 = vadd.f32 %v1240_v30, %v9921_v10  ;;  %v1218_v52 = vadd.f32 %v10025_v16, %v1117_v3  ;;  %v7452_v59 = vpop.f32.mrb[31].mxu0 }
 0x4ba   :  { %v1285_v5 = vadd.f32 1.0, %v8580_v21 }
 0x4bb   :  { %8587 = vpow2.f32 %v6663_v56  ;;  %v1261_v14 = vadd.f32 %v10027_v36, %v1247_v57  ;;  %v1241_v7 = vadd.f32 %v1234_v47, %v1218_v52 }
 0x4bc   :  { %8589 = vrcp.f32 %v1285_v5 }
 0x4bd   :  { %v8582_v33 = vpop.eup %8581  ;;  %v6664_v13 = vmul.f32 -1.442695, %v1261_v14  ;;  %v1248_v53 = vadd.f32 %v1241_v7, %v9923_v12 }
 0x4be   :  { %v1286_v34 = vadd.f32 1.0, %v8582_v33  ;;  %v1494_v33 = vld [vmem:[#allocation11 + $0x8] sm:$0xff] }
 0x4bf   :  { %8591 = vpow2.f32 %v6664_v13  ;;  %v1262_v24 = vadd.f32 %v10027_v36, %v1248_v53  ;;  %v1495_v53 = vld [vmem:[#allocation11 + $0x10] sm:$0xff] }
 0x4c0   :  { %8593 = vrcp.f32 %v1286_v34 }
 0x4c1   :  { %v8584_v15 = vpop.eup %8583  ;;  %v6665_v18 = vmul.f32 -1.442695, %v1262_v24 }
 0x4c2   :  { %v8586_v25 = vpop.eup %8585  ;;  %v1287_v16 = vadd.f32 1.0, %v8584_v15  ;;  %v6666_v15 = vld [vmem:[#allocation10] ss:$0 sm:$0xff] }
 0x4c3   :  { %v1305_v39 = vmul.f32 %v8586_v25, %v10031_v1  ;;  %8595 = vpow2.f32 %v6665_v18 }
 0x4c4   :  { %8597 = vrcp.f32 %v1287_v16 }
 0x4c5   :  { %v8588_v26 = vpop.eup %8587  ;;  %7485 = vmatmul.mubr.msk.f32.vlgmr.msra.gmra.mrb[32].mxu0 %vm943_vm5, %v1305_v39 }
 0x4c6   :  { %v8590_v27 = vpop.eup %8589  ;;  %v1288_v23 = vadd.f32 1.0, %v8588_v26  ;;  %7487 = vmatprep.mubr.msk.f32.mxu0 %vm9459_vm0, %v11099_v0 }
 0x4c7   :  { %v1306_v30 = vmul.f32 %v8590_v27, %v10036_v19 }
 0x4c8   :  { %8599 = vrcp.f32 %v1288_v23 }
 0x4c9   :  { %v8592_v36 = vpop.eup %8591  ;;  %7488 = vmatmul.mubr.msk.f32.gmra.mrb[34].mxu0 %vm943_vm5, %v1306_v30 }
 0x4ca   :  { %v8594_v3 = vpop.eup %8593  ;;  %v1289_v21 = vadd.f32 1.0, %v8592_v36  ;;  %7490 = vmatprep.mubr.msk.f32.mxu0 %vm9459_vm0, %v11099_v0 }
 0x4cb   :  { %v1307_v1 = vmul.f32 %v8594_v3, %v10041_v46 }
 0x4cc   :  { %8601 = vrcp.f32 %v1289_v21 }
 0x4cd   :  { %v8596_v47 = vpop.eup %8595  ;;  %7491 = vmatmul.mubr.msk.f32.gmra.mrb[36].mxu0 %vm943_vm5, %v1307_v1 }
 0x4ce   :  { %v8598_v56 = vpop.eup %8597  ;;  %v1290_v57 = vadd.f32 1.0, %v8596_v47  ;;  %7493 = vmatprep.mubr.msk.f32.mxu0 %vm9459_vm0, %v11099_v0 }
 0x4cf   :  { %v1308_v19 = vmul.f32 %v8598_v56, %v1259_v9 }
 0x4d0   :  { %8603 = vrcp.f32 %v1290_v57 }
 0x4d1   :  { %7494 = vmatmul.mubr.msk.f32.gmra.mrb[38].mxu0 %vm943_vm5, %v1308_v19 }
 0x4d2   :  { %v8600_v52 = vpop.eup %8599  ;;  %7496 = vmatprep.mubr.msk.f32.mxu0 %vm9459_vm0, %v11099_v0 }
 0x4d3   :  { %v1309_v59 = vmul.f32 %v8600_v52, %v1260_v29  ;;  %v1493_v29 = vld [vmem:[#allocation11] sm:$0xff] }
 0x4d4   :  { %v8296_v13 = vpack.c.bf16 %v1494_v33, %v1493_v29 }
 0x4d5   :  { %7497 = vmatmul.mubr.msk.f32.gmra.mrb[40].mxu0 %vm943_vm5, %v1309_v59 }
 0x4d6   :  { %v8602_v46 = vpop.eup %8601  ;;  %7499 = vmatprep.mubr.msk.f32.mxu0 %vm9459_vm0, %v11099_v0  ;;  %8297 = vmatpush3.bf16.msra.mxu1 %v8296_v13 }
 0x4d7   :  { %v1310_v5 = vmul.f32 %v8602_v46, %v1261_v14  ;;  %8298 = vmatprep.subr.bf16.mxu1 %v11101_v41  ;;  %v1496_v14 = vld [vmem:[#allocation11 + $0x18] sm:$0xff] }
 0x4d8   :  { %v8299_v34 = vpack.c.bf16 %v1496_v14, %v1495_v53 }
 0x4d9   :  { %7500 = vmatmul.mubr.msk.f32.gmra.mrb[42].mxu0 %vm943_vm5, %v1310_v5 }
 0x4da   :  { %v8604_v7 = vpop.eup %8603  ;;  %7502 = vmatprep.mubr.msk.f32.mxu0 %vm9459_vm0, %v11099_v0  ;;  %8300 = vmatpush3.bf16.msra.mxu1 %v8299_v34 }
 0x4db   :  { %v1311_v9 = vmul.f32 %v8604_v7, %v1262_v24  ;;  %8319 = vmatprep.subr.bf16.mxu1 %v11101_v41 }
 0x4dd   :  { %7503 = vmatmul.mubr.msk.f32.gmra.mrb[44].mxu0 %vm943_vm5, %v1311_v9 }
 0x4de   :  { %7548 = vmatprep.mubr.msk.f32.mxu0 %vm9459_vm0, %v11099_v0 }
 0x598   :  { %v1410_v18 = vpop.f32.mrb[32].mxu0 }
 0x599   :  { %v1411_v24 = vadd.f32 %v6666_v15, %v1410_v18  ;;  %v7486_v25 = vpop.f32.mrb[33].mxu0 }
 0x59b   :  { %v6674_v16 = vmul.f32 -1.442695, %v1411_v24 }
 0x59c   :  { %v1415_v39 = vpop.f32.mrb[34].mxu0 }
 0x59d   :  { %8605 = vpow2.f32 %v6674_v16  ;;  %v1416_v26 = vadd.f32 %v6666_v15, %v1415_v39  ;;  %v7489_v27 = vpop.f32.mrb[35].mxu0 }
 0x59f   :  { %v6675_v23 = vmul.f32 -1.442695, %v1416_v26 }
 0x5a0   :  { %v1420_v30 = vpop.f32.mrb[36].mxu0 }
 0x5a1   :  { %8607 = vpow2.f32 %v6675_v23  ;;  %v1421_v36 = vadd.f32 %v6666_v15, %v1420_v30  ;;  %v7492_v3 = vpop.f32.mrb[37].mxu0 }
 0x5a3   :  { %v6676_v21 = vmul.f32 -1.442695, %v1421_v36 }
 0x5a4   :  { %v1425_v1 = vpop.f32.mrb[38].mxu0 }
 0x5a5   :  { %8609 = vpow2.f32 %v6676_v21  ;;  %v1426_v47 = vadd.f32 %v6666_v15, %v1425_v1  ;;  %v7495_v56 = vpop.f32.mrb[39].mxu0 }
 0x5a7   :  { %v8606_v57 = vpop.eup %8605  ;;  %v6677_v19 = vmul.f32 -1.442695, %v1426_v47 }
 0x5a8   :  { %v1465_v52 = vadd.f32 1.0, %v8606_v57  ;;  %v1430_v59 = vpop.f32.mrb[40].mxu0 }
 0x5a9   :  { %8611 = vpow2.f32 %v6677_v19  ;;  %v1431_v46 = vadd.f32 %v6666_v15, %v1430_v59  ;;  %v7498_v5 = vpop.f32.mrb[41].mxu0 }
 0x5aa   :  { %8613 = vrcp.f32 %v1465_v52  ;;  %v6696_v52 = vld [vmem:[#allocation14] ss:$0 sm:$0xff] }
 0x5ab   :  { %v8608_v7 = vpop.eup %8607  ;;  %v6678_v9 = vmul.f32 -1.442695, %v1431_v46 }
 0x5ac   :  { %v1466_v29 = vadd.f32 1.0, %v8608_v7  ;;  %v1435_v33 = vpop.f32.mrb[42].mxu0 }
 0x5ad   :  { %8615 = vpow2.f32 %v6678_v9  ;;  %v1436_v13 = vadd.f32 %v6666_v15, %v1435_v33  ;;  %v7501_v53 = vpop.f32.mrb[43].mxu0 }
 0x5ae   :  { %8617 = vrcp.f32 %v1466_v29 }
 0x5af   :  { %v8610_v14 = vpop.eup %8609  ;;  %v6679_v34 = vmul.f32 -1.442695, %v1436_v13 }
 0x5b0   :  { %v1467_v18 = vadd.f32 1.0, %v8610_v14  ;;  %v1440_v25 = vpop.f32.mrb[44].mxu0 }
 0x5b1   :  { %8619 = vpow2.f32 %v6679_v34  ;;  %v1441_v16 = vadd.f32 %v6666_v15, %v1440_v25  ;;  %v7504_v39 = vpop.f32.mrb[45].mxu0 }
 0x5b2   :  { %8621 = vrcp.f32 %v1467_v18 }
 0x5b3   :  { %v8612_v27 = vpop.eup %8611  ;;  %v6680_v23 = vmul.f32 -1.442695, %v1441_v16 }
 0x5b4   :  { %v8614_v30 = vpop.eup %8613  ;;  %v1468_v3 = vadd.f32 1.0, %v8612_v27 }
 0x5b5   :  { %v10079_v21 = vmul.f32 %v8614_v30, %v1411_v24  ;;  %8623 = vpow2.f32 %v6680_v23 }
 0x5b6   :  { %8625 = vrcp.f32 %v1468_v3 }
 0x5b7   :  { %v8616_v1 = vpop.eup %8615  ;;  %7514 = vmatmul.mubr.msk.f32.vlgmr.msra.gmra.mrb[42].mxu1 %vm943_vm5, %v10079_v21 }
 0x5b8   :  { %v8618_v56 = vpop.eup %8617  ;;  %v1469_v57 = vadd.f32 1.0, %v8616_v1  ;;  %7516 = vmatprep.mubr.msk.f32.mxu1 %vm9459_vm0, %v11099_v0 }
 0x5b9   :  { %v10085_v15 = vmul.f32 %v8618_v56, %v1416_v26 }
 0x5ba   :  { %8627 = vrcp.f32 %v1469_v57 }
 0x5bb   :  { %v8620_v19 = vpop.eup %8619  ;;  %7517 = vmatmul.mubr.msk.f32.gmra.mrb[44].mxu1 %vm943_vm5, %v10085_v15 }
 0x5bc   :  { %v8622_v24 = vpop.eup %8621  ;;  %v1470_v59 = vadd.f32 1.0, %v8620_v19  ;;  %7519 = vmatprep.mubr.msk.f32.mxu1 %vm9459_vm0, %v11099_v0 }
 0x5bd   :  { %v10093_v5 = vmul.f32 %v8622_v24, %v1421_v36 }
 0x5be   :  { %8629 = vrcp.f32 %v1470_v59 }
 0x5bf   :  { %v8624_v7 = vpop.eup %8623  ;;  %7520 = vmatmul.mubr.msk.f32.gmra.mrb[46].mxu1 %vm943_vm5, %v10093_v5 }
 0x5c0   :  { %v8626_v26 = vpop.eup %8625  ;;  %v1471_v9 = vadd.f32 1.0, %v8624_v7  ;;  %7522 = vmatprep.mubr.msk.f32.mxu1 %vm9459_vm0, %v11099_v0 }
 0x5c1   :  { %v10099_v29 = vmul.f32 %v8626_v26, %v1426_v47 }
 0x5c2   :  { %8631 = vrcp.f32 %v1471_v9 }
 0x5c3   :  { %7523 = vmatmul.mubr.msk.f32.gmra.mrb[48].mxu1 %vm943_vm5, %v10099_v29 }
 0x5c4   :  { %v8628_v36 = vpop.eup %8627  ;;  %7525 = vmatprep.mubr.msk.f32.mxu1 %vm9459_vm0, %v11099_v0 }
 0x5c5   :  { %v10107_v53 = vmul.f32 %v8628_v36, %v1431_v46 }
 0x5c7   :  { %7526 = vmatmul.mubr.msk.f32.gmra.mrb[50].mxu1 %vm943_vm5, %v10107_v53 }
 0x5c8   :  { %v8630_v14 = vpop.eup %8629  ;;  %7528 = vmatprep.mubr.msk.f32.mxu1 %vm9459_vm0, %v11099_v0 }
 0x5c9   :  { %v10113_v47 = vmul.f32 %v8630_v14, %v1436_v13  ;;  %v6681_v13 = vld [vmem:[#allocation13] ss:$0 sm:$0xff] }
 0x5cb   :  { %7529 = vmatmul.mubr.msk.f32.gmra.mrb[52].mxu1 %vm943_vm5, %v10113_v47 }
 0x5cc   :  { %v8632_v18 = vpop.eup %8631  ;;  %7531 = vmatprep.mubr.msk.f32.mxu1 %vm9459_vm0, %v11099_v0 }
 0x5cd   :  { %v10121_v46 = vmul.f32 %v8632_v18, %v1441_v16 }
 0x5cf   :  { %7532 = vmatmul.mubr.msk.f32.gmra.mrb[54].mxu1 %vm943_vm5, %v10121_v46 }
 0x5d0   :  { %7576 = vmatprep.mubr.msk.f32.mxu1 %vm9459_vm0, %v11099_v0 }
 0x68a   :  { %v1591_v25 = vpop.f32.mrb[42].mxu1 }
 0x68b   :  { %v1592_v39 = vadd.f32 %v6681_v13, %v1591_v25  ;;  %v7515_v27 = vpop.f32.mrb[43].mxu1 }
 0x68d   :  { %v6689_v23 = vmul.f32 -1.442695, %v1592_v39 }
 0x68e   :  { %v1596_v30 = vpop.f32.mrb[44].mxu1 }
 0x68f   :  { %8633 = vpow2.f32 %v6689_v23  ;;  %v1597_v3 = vadd.f32 %v6681_v13, %v1596_v30  ;;  %v7518_v1 = vpop.f32.mrb[45].mxu1 }
 0x691   :  { %v6690_v56 = vmul.f32 -1.442695, %v1597_v3 }
 0x692   :  { %v1601_v57 = vpop.f32.mrb[46].mxu1 }
 0x693   :  { %8635 = vpow2.f32 %v6690_v56  ;;  %v1602_v16 = vadd.f32 %v6681_v13, %v1601_v57  ;;  %v7521_v19 = vpop.f32.mrb[47].mxu1 }
 0x695   :  { %v6691_v24 = vmul.f32 -1.442695, %v1602_v16 }
 0x696   :  { %v1606_v59 = vpop.f32.mrb[48].mxu1 }
 0x697   :  { %8637 = vpow2.f32 %v6691_v24  ;;  %v1607_v7 = vadd.f32 %v6681_v13, %v1606_v59  ;;  %v7524_v26 = vpop.f32.mrb[49].mxu1 }
 0x699   :  { %v8634_v9 = vpop.eup %8633  ;;  %v6692_v36 = vmul.f32 -1.442695, %v1607_v7 }
 0x69a   :  { %v1646_v14 = vadd.f32 1.0, %v8634_v9  ;;  %v1611_v18 = vpop.f32.mrb[50].mxu1 }
 0x69b   :  { %8639 = vpow2.f32 %v6692_v36  ;;  %v1612_v25 = vadd.f32 %v6681_v13, %v1611_v18  ;;  %v7527_v27 = vpop.f32.mrb[51].mxu1 }
 0x69c   :  { %8641 = vrcp.f32 %v1646_v14 }
 0x69d   :  { %v8636_v23 = vpop.eup %8635  ;;  %v6693_v30 = vmul.f32 -1.442695, %v1612_v25 }
 0x69e   :  { %v1647_v1 = vadd.f32 1.0, %v8636_v23  ;;  %v1616_v34 = vpop.f32.mrb[52].mxu1 }
 0x69f   :  { %8643 = vpow2.f32 %v6693_v30  ;;  %v1617_v56 = vadd.f32 %v6681_v13, %v1616_v34  ;;  %v7530_v57 = vpop.f32.mrb[53].mxu1 }
 0x6a0   :  { %8645 = vrcp.f32 %v1647_v1 }
 0x6a1   :  { %v8638_v19 = vpop.eup %8637  ;;  %v6694_v24 = vmul.f32 -1.442695, %v1617_v56 }
 0x6a2   :  { %v1648_v59 = vadd.f32 1.0, %v8638_v19  ;;  %v1621_v26 = vpop.f32.mrb[54].mxu1 }
 0x6a3   :  { %8647 = vpow2.f32 %v6694_v24  ;;  %v1622_v33 = vadd.f32 %v6681_v13, %v1621_v26  ;;  %v7533_v9 = vpop.f32.mrb[55].mxu1 }
 0x6a4   :  { %8649 = vrcp.f32 %v1648_v59 }
 0x6a5   :  { %v8640_v36 = vpop.eup %8639  ;;  %v6695_v18 = vmul.f32 -1.442695, %v1622_v33 }
 0x6a6   :  { %v8642_v27 = vpop.eup %8641  ;;  %v1649_v14 = vadd.f32 1.0, %v8640_v36 }
 0x6a7   :  { %v1667_v0 = vmul.f32 %v8642_v27, %v1592_v39  ;;  %8651 = vpow2.f32 %v6695_v18 }
 0x6a8   :  { %8653 = vrcp.f32 %v1649_v14 }
 0x6a9   :  { %v8644_v23 = vpop.eup %8643  ;;  %v1681_v34 = vmul.f32 %v6696_v52, %v1667_v0 }
 0x6aa   :  { %v8646_v30 = vpop.eup %8645  ;;  %v1650_v1 = vadd.f32 1.0, %v8644_v23 }
 0x6ab   :  { %v1668_v57 = vmul.f32 %v8646_v30, %v1597_v3  ;;  %v1688_v19 = vsel %vm943_vm5, %v1681_v34, 0.0 }
 0x6ac   :  { %8655 = vrcp.f32 %v1650_v1  ;;  %1689 = vadd.xlane.f32.xlu1 %v1688_v19 }
 0x6ad   :  { %v8648_v13 = vpop.eup %8647  ;;  %v1682_v24 = vmul.f32 %v6696_v52, %v1668_v57 }
 0x6ae   :  { %v8650_v59 = vpop.eup %8649  ;;  %v1651_v26 = vadd.f32 1.0, %v8648_v13 }
 0x6af   :  { %v1669_v9 = vmul.f32 %v8650_v59, %v1602_v16  ;;  %v1691_v36 = vsel %vm943_vm5, %v1682_v24, 0.0 }
 0x6b0   :  { %8657 = vrcp.f32 %v1651_v26  ;;  %1692 = vadd.xlane.f32.xlu1 %v1691_v36 }
 0x6b1   :  { %v8652_v39 = vpop.eup %8651  ;;  %v1683_v18 = vmul.f32 %v6696_v52, %v1669_v9 }
 0x6b2   :  { %v8654_v27 = vpop.eup %8653  ;;  %v1652_v0 = vadd.f32 1.0, %v8652_v39  ;;  %v9462_v39 = vmov 0  }
 0x6b3   :  { %v1670_v14 = vmul.f32 %v8654_v27, %v1607_v7  ;;  %v1694_v3 = vsel %vm943_vm5, %v1683_v18, 0.0  ;;  %8573 = vset.pattern.permute.xlu1 %v9462_v39  ;;  %8574 = vset.pattern.permute.xlu0 %v9462_v39 }
 0x6b4   :  { %8659 = vrcp.f32 %v1652_v0  ;;  %1695 = vadd.xlane.f32.xlu1 %v1694_v3 }
 0x6b5   :  { %v1684_v23 = vmul.f32 %v6696_v52, %v1670_v14 }
 0x6b6   :  { %v8656_v34 = vpop.eup %8655 }
 0x6b7   :  { %v1671_v30 = vmul.f32 %v8656_v34, %v1612_v25  ;;  %v1697_v1 = vsel %vm943_vm5, %v1684_v23, 0.0  ;;  %v392_v25 = vld [vmem:[%s11138_s13] sm:$0xff] }
 0x6b8   :  { %1698 = vadd.xlane.f32.xlu0 %v1697_v1  ;;  %8661 = vrcp.f32 %v392_v25 }
 0x6b9   :  { %v1685_v16 = vmul.f32 %v6696_v52, %v1671_v30 }
 0x6ba   :  { %v8658_v57 = vpop.eup %8657 }
 0x6bb   :  { %v1672_v19 = vmul.f32 %v8658_v57, %v1617_v56  ;;  %v1700_v13 = vsel %vm943_vm5, %v1685_v16, 0.0 }
 0x6bc   :  { %1701 = vadd.xlane.f32.xlu1 %v1700_v13 }
 0x6bd   :  { %v1686_v24 = vmul.f32 %v6696_v52, %v1672_v19  ;;  %v423_v19 = vld [vmem:[%s11139_s0] sm:$0xf] }
 0x6be   :  { %v8660_v59 = vpop.eup %8659 }
 0x6bf   :  { %v1673_v7 = vmul.f32 %v8660_v59, %v1622_v33  ;;  %v1703_v26 = vsel %vm943_vm5, %v1686_v24, 0.0  ;;  %v11140_v24 = vmov 0.0   ;;  %v10147_v59 = vunpack.c.l.bf16 %v423_v19 }
 0x6c0   :  { %1704 = vadd.xlane.f32.xlu0 %v1703_v26  ;;  %v1870_v26 = vld [vmem:[#allocation16 + $0x18] sm:$0xff] }
 0x6c1   :  { %v1687_v9 = vmul.f32 %v6696_v52, %v1673_v7  ;;  %v11143_v7 = vpack.c.bf16 %v10113_v47, %v10107_v53  ;;  %v1872_v53 = vld [vmem:[#allocation17 + $0x8] sm:$0xff] }
 0x6c2   :  { %v8662_v56 = vpop.eup %8661 }
 0x6c3   :  { %v1706_v36 = vsel %vm943_vm5, %v1687_v9, 0.0  ;;  %v1874_v9 = vld [vmem:[#allocation17 + $0x18] sm:$0xff] }
 0x6c4   :  { %1707 = vadd.xlane.f32.xlu1 %v1706_v36 }
 0x6d5   :  { %1862 = vperm.xlu1 %8573, %v8662_v56  }
 0x6d6   :  { %2019 = vrot.lane.b32.xlu0 %v9900_v60, %s9461_s30 }
 0x739   :  { %v1690_v18 = vpop.xlane.xlu1 %1689 }
 0x73a   :  { %v1709_v33 = vmul.f32 %v1690_v18, %v9925_v17 }
 0x73d   :  { %v1693_v27 = vpop.xlane.xlu1 %1692 }
 0x73e   :  { %v1710_v0 = vmul.f32 %v1693_v27, %v9927_v22 }
 0x740   :  { %v8302_v52 = vpack.c.bf16 %v1710_v0, %v1709_v33 }
 0x741   :  { %v1696_v14 = vpop.xlane.xlu1 %1695 }
 0x742   :  { %8303 = vmatpush3.bf16.msra.mxu0 %v8302_v52  ;;  %v1711_v23 = vmul.f32 %v1696_v14, %v9931_v28 }
 0x743   :  { %8304 = vmatprep.subr.bf16.mxu0 %v11101_v41 }
 0x745   :  { %v1699_v3 = vpop.xlane.xlu0 %1698 }
 0x746   :  { %v1712_v34 = vmul.f32 %v1699_v3, %v9936_v40  ;;  %v11141_v40 = vpack.c.bf16 %v10085_v15, %v10079_v21  ;;  %v1869_v15 = vld [vmem:[#allocation16 + $0x10] sm:$0xff] }
 0x748   :  { %v8305_v30 = vpack.c.bf16 %v1712_v34, %v1711_v23 }
 0x749   :  { %v1702_v1 = vpop.xlane.xlu1 %1701 }
 0x74a   :  { %8306 = vmatpush3.bf16.msra.mxu0 %v8305_v30  ;;  %v1713_v17 = vmul.f32 %v1702_v1, %v9941_v58  ;;  %v11142_v58 = vpack.c.bf16 %v10099_v29, %v10093_v5  ;;  %v8329_v5 = vpack.c.bf16 %v1870_v26, %v1869_v15  ;;  %v1871_v29 = vld [vmem:[#allocation17] sm:$0xff]  ;;  %v2040_v26 = vld [vmem:[#allocation20 + $0x10] sm:$0xff] }
 0x74b   :  { %8307 = vmatprep.subr.bf16.mxu0 %v11101_v41  ;;  %v8320_v47 = vpack.c.bf16 %v1872_v53, %v1871_v29  ;;  %v6719_v53 = vld [vmem:[%s11132_s18 + $0x20] sm:$0xff] }
 0x74d   :  { %v1705_v16 = vpop.xlane.xlu0 %1704  ;;  %8321 = vmatpush3.bf16.msra.mxu1 %v8320_v47  ;;  %v6720_v47 = vld [vmem:[%s11132_s18 + $0x28] sm:$0xff] }
 0x74e   :  { %v1714_v22 = vmul.f32 %v1705_v16, %v9946_v11  ;;  %v1867_v11 = vld [vmem:[#allocation16] sm:$0xff]  ;;  %8322 = vmatprep.subr.bf16.mxu1 %v11101_v41 }
 0x750   :  { %v8308_v57 = vpack.c.bf16 %v1714_v22, %v1713_v17 }
 0x751   :  { %v1708_v13 = vpop.xlane.xlu1 %1707 }
 0x752   :  { %8309 = vmatpush3.bf16.msra.mxu0 %v8308_v57  ;;  %v1715_v28 = vmul.f32 %v1708_v13, %v9951_v20  ;;  %v1868_v20 = vld [vmem:[#allocation16 + $0x8] sm:$0xff] }
 0x753   :  { %7546 = vmatprep.subr.mxu0 %v11140_v24  ;;  %v8326_v21 = vpack.c.bf16 %v1868_v20, %v1867_v11 }
 0x755   :  { %v10181_v25 = vpop.permute.xlu1 %1862 }
 0x756   :  { %7547 = vmatpush3.msra.mxu0 %v1715_v28 }
 0x757   :  { %7549 = vmatmul.mubr.msk.f32.vlgmr.msra.gmra.mrb[46].mxu0 %vm1716_vm6, %v10147_v59  ;;  %8310 = vmatprep.subr.bf16.mxu0 %v11101_v41 }
 0x758   :  { %8312 = vmatpush3.bf16.msra.mxu0 %v11141_v40  ;;  %7565 = vmatprep.mubr.msk.f32.mxu0 %vm9459_vm0, %v11140_v24 }
 0x759   :  { %8313 = vmatprep.subr.bf16.mxu0 %v11101_v41 }
 0x75c   :  { %8315 = vmatpush3.bf16.msra.mxu0 %v11142_v58 }
 0x75d   :  { %8316 = vmatprep.subr.bf16.mxu0 %v11101_v41 }
 0x760   :  { %8318 = vmatpush3.bf16.msra.mxu0 %v11143_v7  ;;  %v2038_v7 = vld [vmem:[#allocation20] sm:$0xff] }
 0x761   :  { %7563 = vmatprep.subr.mxu0 %v11140_v24 }
 0x764   :  { %7564 = vmatpush3.msra.mxu0 %v10121_v46  ;;  %v1873_v46 = vld [vmem:[#allocation17 + $0x10] sm:$0xff] }
 0x765   :  { %7566 = vmatmul.mubr.msk.f32.vlgmr.msra.gmra.mrb[48].mxu0 %vm1716_vm6, %v10147_v59  ;;  %8325 = vmatprep.subr.bf16.mxu0 %v11101_v41  ;;  %v8323_v36 = vpack.c.bf16 %v1874_v9, %v1873_v46  ;;  %v8338_v46 = vpack.c.bf16 %v6720_v47, %v6719_v53 }
 0x766   :  { %8327 = vmatpush3.bf16.msra.mxu0 %v8326_v21  ;;  %7587 = vmatprep.mubr.msk.f32.mxu0 %vm9459_vm0, %v11140_v24  ;;  %v2039_v21 = vld [vmem:[#allocation20 + $0x8] sm:$0xff] }
 0x767   :  { %8328 = vmatprep.subr.bf16.mxu0 %v11101_v41  ;;  %8324 = vmatpush3.bf16.msra.mxu1 %v8323_v36  ;;  %v8332_v15 = vpack.c.bf16 %v2039_v21, %v2038_v7 }
 0x768   :  { %8331 = vmatprep.subr.bf16.mxu1 %v11101_v41 }
 0x76a   :  { %8330 = vmatpush3.bf16.msra.mxu0 %v8329_v5  ;;  %v2041_v5 = vld [vmem:[#allocation20 + $0x18] sm:$0xff] }
 0x76b   :  { %7601 = vmatprep.subr.mxu0 %v11140_v24  ;;  %v8335_v29 = vpack.c.bf16 %v2041_v5, %v2040_v26 }
 0x76d   :  { %7588 = vmatmul.mubr.msk.f32.vlgmr.msra.gmra.mrb[50].mxu0 %vm943_vm5, %v9905_v62 }
 0x76e   :  { %7603 = vmatprep.mubr.msk.f32.mxu0 %vm9459_vm0, %v11140_v24 }
 0x82a   :  { %v1786_v39 = vpop.f32.mrb[46].mxu0 }
 0x82b   :  { %v1865_v56 = vmul.f32 %v10181_v25, %v1786_v39  ;;  %v7550_v18 = vpop.f32.mrb[47].mxu0 }
 0x82c   :  { %v6701_v18 = vld [vmem:[#allocation19] ss:$0 sm:$0xff] }
 0x82d   :  { %v1866_v27 = vadd.f32 %v1865_v56, %v9804_v35  ;;  %v2020_v56 = vpop.permute.xlu0 %2019 }
 0x82f   :  { %v2124_v33 = vsel %vm644_vm4, %v1866_v27, inf }
 0x830   :  { %v2125_v0 = vrot.slane %v2124_v33, 4 }
 0x832   :  { %v2126_v52 = vmin.f32 %v2124_v33, %v2125_v0 }
 0x834   :  { %v2127_v14 = vrot.slane %v2126_v52, 2 }
 0x836   :  { %v2128_v3 = vmin.f32 %v2126_v52, %v2127_v14 }
 0x838   :  { %v2129_v23 = vrot.slane %v2128_v3, 1  ;;  %v1856_v34 = vpop.f32.mrb[48].mxu0 }
 0x839   :  { %v7567_v30 = vpop.f32.mrb[49].mxu0  ;;  %7577 = vmatmul.mubr.msk.f32.vlgmr.msra.gmra.mrb[56].mxu1 %vm943_vm5, %v1856_v34  ;;  %v6721_v34 = vld [vmem:[%s11132_s18 + $0x30] sm:$0xff] }
 0x83a   :  { %v2130_v1 = vmin.f32 %v2128_v3, %v2129_v23  ;;  %7598 = vmatprep.mubr.msk.f32.mxu1 %vm9459_vm0, %v11140_v24  ;;  %8333 = vmatpush3.bf16.msra.mxu1 %v8332_v15  ;;  %v6722_v30 = vld [vmem:[%s11132_s18 + $0x38] sm:$0xff] }
 0x83b   :  { %8334 = vmatprep.subr.bf16.mxu1 %v11101_v41 }
 0x83c   :  { %v2131_v16 = vsub.f32 %v1866_v27, %v2130_v1  ;;  %v8341_v1 = vpack.c.bf16 %v6722_v30, %v6721_v34 }
 0x83e   :  { %v2132_v17 = vsel %vm644_vm4, %v2131_v16, -inf  ;;  %8336 = vmatpush3.bf16.msra.mxu1 %v8335_v29 }
 0x83f   :  { %v2133_v22 = vrot.slane %v2132_v17, 4  ;;  %7624 = vmatprep.subr.mxu1 %v11140_v24 }
 0x840   :  { %v2014_v35 = vpop.f32.mrb[50].mxu0 }
 0x841   :  { %v2134_v57 = vmax.f32 %v2132_v17, %v2133_v22  ;;  %v7589_v19 = vpop.f32.mrb[51].mxu0 }
 0x843   :  { %v2135_v13 = vrot.slane %v2134_v57, 2 }
 0x845   :  { %v2136_v28 = vmax.f32 %v2134_v57, %v2135_v13 }
 0x847   :  { %v2137_v40 = vrot.slane %v2136_v28, 1 }
 0x849   :  { %v2138_v58 = vmax.f32 %v2136_v28, %v2137_v40 }
 0x84b   :  { %8663 = vrcp.f32 %v2138_v58  ;;  %v6704_v58 = vld [vmem:[#allocation22] ss:$0 sm:$0xff] }
 0x855   :  { %v8664_v11 = vpop.eup %8663 }
 0x856   :  { %v10190_v20 = vmul.f32 %v8664_v11, %v2131_v16 }
 0x858   :  { %7602 = vmatpush3.msra.mxu0 %v10190_v20 }
 0x859   :  { %7604 = vmatmul.mubr.msk.f32.vlgmr.msra.gmra.mrb[52].mxu0 %vm427_vm2, %v9798_v31  ;;  %8337 = vmatprep.subr.bf16.mxu0 %v11101_v41 }
 0x85a   :  { %7606 = vmatprep.mubr.msk.f32.mxu0 %vm9459_vm0, %v11140_v24  ;;  %8339 = vmatpush3.bf16.msra.mxu0 %v8338_v46 }
 0x85b   :  { %8340 = vmatprep.subr.bf16.mxu0 %v11101_v41 }
 0x85d   :  { %7607 = vmatmul.mubr.msk.f32.gmra.mrb[54].mxu0 %vm427_vm2, %v9812_v37 }
 0x85e   :  { %7609 = vmatprep.mubr.msk.f32.mxu0 %vm9459_vm0, %v11140_v24  ;;  %8342 = vmatpush3.bf16.msra.mxu0 %v8341_v1 }
 0x85f   :  { %7658 = vmatprep.subr.mxu0 %v11140_v24 }
 0x861   :  { %7610 = vmatmul.mubr.msk.f32.gmra.mrb[56].mxu0 %vm427_vm2, %v9828_v42 }
 0x862   :  { %7612 = vmatprep.mubr.msk.f32.mxu0 %vm9459_vm0, %v11140_v24 }
 0x865   :  { %7613 = vmatmul.mubr.msk.f32.gmra.mrb[58].mxu0 %vm427_vm2, %v9841_v44 }
 0x866   :  { %7615 = vmatprep.mubr.msk.f32.mxu0 %vm9459_vm0, %v11140_v24 }
 0x869   :  { %7616 = vmatmul.mubr.msk.f32.gmra.mrb[60].mxu0 %vm427_vm2, %v9855_v48 }
 0x86a   :  { %7618 = vmatprep.mubr.msk.f32.mxu0 %vm9459_vm0, %v11140_v24 }
 0x86d   :  { %7619 = vmatmul.mubr.msk.f32.gmra.mrb[62].mxu0 %vm427_vm2, %v9867_v50 }
 0x86e   :  { %7621 = vmatprep.mubr.msk.f32.mxu0 %vm9459_vm0, %v11140_v24 }
 0x871   :  { %7622 = vmatmul.mubr.msk.f32.gmra.mrb[64].mxu0 %vm427_vm2, %v9881_v54 }
 0x872   :  { %7655 = vmatprep.mubr.msk.f32.mxu0 %vm9459_vm0, %v11140_v24 }
 0x90c   :  { %v1944_v9 = vpop.f32.mrb[56].mxu1 }
 0x90d   :  { %v2015_v36 = vadd.f32 %v2014_v35, %v1944_v9  ;;  %v7578_v39 = vpop.f32.mrb[57].mxu1 }
 0x90f   :  { %v2022_v27 = vadd.f32 %v2020_v56, %v2015_v36 }
 0x911   :  { %v2030_v33 = vadd.f32 %v6701_v18, %v2022_v27 }
 0x913   :  { %v6702_v0 = vmul.f32 -1.442695, %v2030_v33 }
 0x915   :  { %8665 = vpow2.f32 %v6702_v0 }
 0x91f   :  { %v8666_v52 = vpop.eup %8665 }
 0x920   :  { %v2034_v14 = vadd.f32 1.0, %v8666_v52 }
 0x922   :  { %8667 = vrcp.f32 %v2034_v14 }
 0x92c   :  { %v8668_v3 = vpop.eup %8667  ;;  %v2207_v16 = vpop.f32.mrb[52].mxu0 }
 0x92d   :  { %v2037_v23 = vmul.f32 %v8668_v3, %v2030_v33  ;;  %v7605_v17 = vpop.f32.mrb[53].mxu0 }
 0x92f   :  { %7599 = vmatmul.mubr.msk.f32.vlgmr.msra.gmra.mrb[58].mxu1 %vm943_vm5, %v2037_v23 }
 0x930   :  { %7625 = vmatpush3.msra.mxu1 %v10190_v20  ;;  %7626 = vmatprep.mubr.msk.f32.mxu1 %vm9459_vm0, %v11140_v24  ;;  %v2212_v22 = vpop.f32.mrb[54].mxu0 }
 0x931   :  { %7681 = vmatprep.subr.mxu1 %v11140_v24  ;;  %v7608_v35 = vpop.f32.mrb[55].mxu0 }
 0x933   :  { %7627 = vmatmul.mubr.msk.f32.vlgmr.msra.gmra.mrb[60].mxu1 %vm427_vm2, %v9800_v32 }
 0x934   :  { %7629 = vmatprep.mubr.msk.f32.mxu1 %vm9459_vm0, %v11140_v24  ;;  %v2217_v57 = vpop.f32.mrb[56].mxu0 }
 0x935   :  { %v7611_v19 = vpop.f32.mrb[57].mxu0 }
 0x937   :  { %7630 = vmatmul.mubr.msk.f32.gmra.mrb[62].mxu1 %vm427_vm2, %v9814_v38 }
 0x938   :  { %7632 = vmatprep.mubr.msk.f32.mxu1 %vm9459_vm0, %v11140_v24  ;;  %v2222_v13 = vpop.f32.mrb[58].mxu0 }
 0x939   :  { %v7614_v28 = vpop.f32.mrb[59].mxu0 }
 0x93b   :  { %7633 = vmatmul.mubr.msk.f32.gmra.mrb[64].mxu1 %vm427_vm2, %v9830_v43 }
 0x93c   :  { %7635 = vmatprep.mubr.msk.f32.mxu1 %vm9459_vm0, %v11140_v24  ;;  %v2227_v3 = vpop.f32.mrb[60].mxu0 }
 0x93d   :  { %v7617_v34 = vpop.f32.mrb[61].mxu0 }
 0x93f   :  { %7636 = vmatmul.mubr.msk.f32.gmra.mrb[66].mxu1 %vm427_vm2, %v9843_v45 }
 0x940   :  { %7638 = vmatprep.mubr.msk.f32.mxu1 %vm9459_vm0, %v11140_v24 }
 0x943   :  { %7639 = vmatmul.mubr.msk.f32.gmra.mrb[68].mxu1 %vm427_vm2, %v9857_v49 }
 0x944   :  { %7641 = vmatprep.mubr.msk.f32.mxu1 %vm9459_vm0, %v11140_v24 }
 0x947   :  { %7642 = vmatmul.mubr.msk.f32.gmra.mrb[70].mxu1 %vm427_vm2, %v9869_v51 }
 0x948   :  { %7644 = vmatprep.mubr.msk.f32.mxu1 %vm9459_vm0, %v11140_v24 }
 0x94b   :  { %7645 = vmatmul.mubr.msk.f32.gmra.mrb[72].mxu1 %vm427_vm2, %v9883_v55 }
 0x94c   :  { %7683 = vmatprep.mubr.msk.f32.mxu1 %vm9459_vm0, %v11140_v24 }
 0xa02   :  { %v2111_v40 = vpop.f32.mrb[58].mxu1 }
 0xa03   :  { %v2115_v11 = vadd.f32 %v2111_v40, %v9905_v62  ;;  %v7600_v7 = vpop.f32.mrb[59].mxu1 }
 0xa05   :  { %v10264_v21 = vadd.f32 %v6704_v58, %v2115_v11 }
 0xa06   :  { %v2307_v15 = vpop.f32.mrb[60].mxu1 }
 0xa07   :  { %7656 = vmatmul.mubr.msk.f32.vlgmr.msra.gmra.mrb[66].mxu0 %vm943_vm5, %v10264_v21  ;;  %v10268_v26 = vsub.f32 %v2207_v16, %v2307_v15  ;;  %v7628_v5 = vpop.f32.mrb[61].mxu1  ;;  %v2232_v16 = vpop.f32.mrb[62].mxu0 }
 0xa08   :  { %7660 = vmatprep.mubr.msk.f32.mxu0 %vm9459_vm0, %v11140_v24 }
 0xa09   :  { %v2348_v29 = vmul.f32 %v10268_v26, %v10268_v26 }
 0xa0a   :  { %v2312_v53 = vpop.f32.mrb[62].mxu1 }
 0xa0b   :  { %v10274_v47 = vsub.f32 %v2212_v22, %v2312_v53  ;;  %v7631_v62 = vpop.f32.mrb[63].mxu1  ;;  %v2355_v46 = vsel %vm644_vm4, %v2348_v29, 0.0  ;;  %v7620_v22 = vpop.f32.mrb[63].mxu0 }
 0xa0c   :  { %2356 = vadd.xlane.f32.xlu0 %v2355_v46  ;;  %v2237_v19 = vpop.f32.mrb[64].mxu0 }
 0xa0d   :  { %v7623_v28 = vpop.f32.mrb[65].mxu0  ;;  %v2349_v29 = vmul.f32 %v10274_v47, %v10274_v47 }
 0xa0e   :  { %v2317_v9 = vpop.f32.mrb[64].mxu1 }
 0xa0f   :  { %v10277_v36 = vsub.f32 %v2217_v57, %v2317_v9  ;;  %v7634_v39 = vpop.f32.mrb[65].mxu1  ;;  %v2358_v53 = vsel %vm644_vm4, %v2349_v29, 0.0 }
 0xa11   :  { %v2350_v56 = vmul.f32 %v10277_v36, %v10277_v36 }
 0xa12   :  { %v2322_v18 = vpop.f32.mrb[66].mxu1 }
 0xa13   :  { %v10281_v27 = vsub.f32 %v2222_v13, %v2322_v18  ;;  %v2361_v33 = vsel %vm644_vm4, %v2350_v56, 0.0  ;;  %v7637_v0 = vpop.f32.mrb[67].mxu1 }
 0xa14   :  { %2362 = vadd.xlane.f32.xlu0 %v2361_v33 }
 0xa15   :  { %v2351_v52 = vmul.f32 %v10281_v27, %v10281_v27 }
 0xa16   :  { %v2327_v23 = vpop.f32.mrb[68].mxu1 }
 0xa17   :  { %v2364_v14 = vsel %vm644_vm4, %v2351_v52, 0.0  ;;  %v10287_v30 = vsub.f32 %v2227_v3, %v2327_v23  ;;  %v7640_v1 = vpop.f32.mrb[69].mxu1 }
 0xa18   :  { %2365 = vadd.xlane.f32.xlu0 %v2364_v14  ;;  %v6747_v1 = vld [vmem:[%s11137_s3 + $0x20] sm:$0xff] }
 0xa19   :  { %v2352_v62 = vmul.f32 %v10287_v30, %v10287_v30 }
 0xa1a   :  { %v2332_v17 = vpop.f32.mrb[70].mxu1 }
 0xa1b   :  { %v10289_v35 = vsub.f32 %v2232_v16, %v2332_v17  ;;  %v7643_v57 = vpop.f32.mrb[71].mxu1  ;;  %v2367_v46 = vsel %vm644_vm4, %v2352_v62, 0.0  ;;  %v6748_v16 = vld [vmem:[%s11137_s3 + $0x28] sm:$0xff] }
 0xa1c   :  { %v8344_v22 = vpack.c.bf16 %v6748_v16, %v6747_v1 }
 0xa1d   :  { %v2353_v9 = vmul.f32 %v10289_v35, %v10289_v35 }
 0xa1e   :  { %v2337_v13 = vpop.f32.mrb[72].mxu1 }
 0xa1f   :  { %v10293_v40 = vsub.f32 %v2237_v19, %v2337_v13  ;;  %v7646_v58 = vpop.f32.mrb[73].mxu1  ;;  %v2370_v39 = vsel %vm644_vm4, %v2353_v9, 0.0  ;;  %v6749_v19 = vld [vmem:[%s11137_s3 + $0x30] sm:$0xff]  ;;  %v6750_v13 = vld [vmem:[%s11137_s3 + $0x38] sm:$0xff] }
 0xa20   :  { %v8347_v58 = vpack.c.bf16 %v6750_v13, %v6749_v19 }
 0xa21   :  { %v2354_v11 = vmul.f32 %v10293_v40, %v10293_v40 }
 0xa23   :  { %v2373_v7 = vsel %vm644_vm4, %v2354_v11, 0.0 }
 0xa2e   :  { %2687 = vrot.lane.b32.xlu0 %v9902_v61, %s9461_s30 }
 0xa4d   :  { %2374 = vadd.xlane.f32.xlu0 %v2373_v7 }
 0xa99   :  { %v2357_v29 = vpop.xlane.xlu0 %2356 }
 0xaa1   :  { %v2363_v62 = vpop.xlane.xlu0 %2362 }
 0xaa5   :  { %v2366_v9 = vpop.xlane.xlu0 %2365 }
 0xaa9   :  { %v2688_v1 = vpop.permute.xlu0 %2687 }
 0xada   :  { %v2450_v15 = vpop.f32.mrb[66].mxu0 }
 0xadb   :  { %2455 = vrot.lane.b32.xlu1 %v2450_v15, %s9461_s30  ;;  %v7657_v5 = vpop.f32.mrb[67].mxu0  ;;  %7682 = vmatpush3.msra.mxu1 %v2450_v15 }
 0xadc   :  { %7684 = vmatmul.mubr.msk.f32.vlgmr.msra.gmra.mrb[74].mxu1 %vm427_vm2, %v9798_v31  ;;  %8349 = vmatprep.subr.bf16.mxu1 %v11101_v41 }
 0xadd   :  { %7686 = vmatprep.mubr.msk.f32.mxu1 %vm9459_vm0, %v11140_v24 }
 0xae0   :  { %7687 = vmatmul.mubr.msk.f32.gmra.mrb[76].mxu1 %vm427_vm2, %v9812_v37 }
 0xae1   :  { %7689 = vmatprep.mubr.msk.f32.mxu1 %vm9459_vm0, %v11140_v24 }
 0xae4   :  { %7690 = vmatmul.mubr.msk.f32.gmra.mrb[78].mxu1 %vm427_vm2, %v9828_v42 }
 0xae5   :  { %7692 = vmatprep.mubr.msk.f32.mxu1 %vm9459_vm0, %v11140_v24 }
 0xae8   :  { %7693 = vmatmul.mubr.msk.f32.gmra.mrb[80].mxu1 %vm427_vm2, %v9841_v44 }
 0xae9   :  { %7695 = vmatprep.mubr.msk.f32.mxu1 %vm9459_vm0, %v11140_v24 }
 0xaec   :  { %7696 = vmatmul.mubr.msk.f32.gmra.mrb[82].mxu1 %vm427_vm2, %v9855_v48 }
 0xaed   :  { %7698 = vmatprep.mubr.msk.f32.mxu1 %vm9459_vm0, %v11140_v24 }
 0xaf0   :  { %7699 = vmatmul.mubr.msk.f32.gmra.mrb[84].mxu1 %vm427_vm2, %v9867_v50 }
 0xaf1   :  { %7701 = vmatprep.mubr.msk.f32.mxu1 %vm9459_vm0, %v11140_v24 }
 0xaf4   :  { %7702 = vmatmul.mubr.msk.f32.gmra.mrb[86].mxu1 %vm427_vm2, %v9881_v54 }
 0xaf5   :  { %7741 = vmatprep.mubr.msk.f32.mxu1 %vm9459_vm0, %v11140_v24 }
 0xaff   :  { %2359 = vadd.xlane.f32.xlu1 %v2358_v53 }
 0xb03   :  { %2368 = vadd.xlane.f32.xlu1 %v2367_v46 }
 0xb07   :  { %2371 = vadd.xlane.f32.xlu1 %v2370_v39  ;;  %v6738_v39 = vld [vmem:[#allocation5 + $0x1] ss:$0 sm:$0xff] }
 0xb18   :  { %2689 = vrot.lane.b32.xlu1 %v9911_v2, %s9461_s30 }
 0xb1c   :  { %2691 = vrot.lane.b32.xlu1 %v9915_v4, %s9461_s30 }
 0xb20   :  { %2693 = vrot.lane.b32.xlu1 %v9917_v6, %s9461_s30 }
 0xb24   :  { %2695 = vrot.lane.b32.xlu1 %v9919_v8, %s9461_s30 }
 0xb28   :  { %2697 = vrot.lane.b32.xlu1 %v9921_v10, %s9461_s30 }
 0xb2c   :  { %2699 = vrot.lane.b32.xlu1 %v9923_v12, %s9461_s30  ;;  %v2668_v12 = vmul.f32 %v6738_v39, %v2363_v62 }
 0xb4d   :  { %v2456_v56 = vpop.permute.xlu1 %2455 }
 0xb4e   :  { %7659 = vmatpush3.msra.mxu0 %v2456_v56 }
 0xb4f   :  { %7661 = vmatmul.mubr.msk.f32.vlgmr.msra.gmra.mrb[68].mxu0 %vm427_vm2, %v9800_v32  ;;  %8343 = vmatprep.subr.bf16.mxu0 %v11101_v41 }
 0xb50   :  { %7663 = vmatprep.mubr.msk.f32.mxu0 %vm9459_vm0, %v11140_v24  ;;  %8345 = vmatpush3.bf16.msra.mxu0 %v8344_v22 }
 0xb51   :  { %8346 = vmatprep.subr.bf16.mxu0 %v11101_v41 }
 0xb53   :  { %7664 = vmatmul.mubr.msk.f32.gmra.mrb[70].mxu0 %vm427_vm2, %v9814_v38 }
 0xb54   :  { %7666 = vmatprep.mubr.msk.f32.mxu0 %vm9459_vm0, %v11140_v24  ;;  %8348 = vmatpush3.bf16.msra.mxu0 %v8347_v58 }
 0xb55   :  { %8355 = vmatprep.subr.bf16.mxu0 %v11101_v41 }
 0xb57   :  { %7667 = vmatmul.mubr.msk.f32.gmra.mrb[72].mxu0 %vm427_vm2, %v9830_v43 }
 0xb58   :  { %7669 = vmatprep.mubr.msk.f32.mxu0 %vm9459_vm0, %v11140_v24 }
 0xb5b   :  { %7670 = vmatmul.mubr.msk.f32.gmra.mrb[74].mxu0 %vm427_vm2, %v9843_v45 }
 0xb5c   :  { %7672 = vmatprep.mubr.msk.f32.mxu0 %vm9459_vm0, %v11140_v24 }
 0xb5f   :  { %7673 = vmatmul.mubr.msk.f32.gmra.mrb[76].mxu0 %vm427_vm2, %v9857_v49 }
 0xb60   :  { %7675 = vmatprep.mubr.msk.f32.mxu0 %vm9459_vm0, %v11140_v24 }
 0xb63   :  { %7676 = vmatmul.mubr.msk.f32.gmra.mrb[78].mxu0 %vm427_vm2, %v9869_v51 }
 0xb64   :  { %7678 = vmatprep.mubr.msk.f32.mxu0 %vm9459_vm0, %v11140_v24 }
 0xb67   :  { %7679 = vmatmul.mubr.msk.f32.gmra.mrb[80].mxu0 %vm427_vm2, %v9883_v55 }
 0xb68   :  { %7712 = vmatprep.mubr.msk.f32.mxu0 %vm9459_vm0, %v11140_v24 }
 0xb8c   :  { %v2360_v5 = vpop.xlane.xlu1 %2359 }
 0xb8d   :  { %v2667_v13 = vmul.f32 %v6738_v39, %v2360_v5 }
 0xb90   :  { %v2369_v53 = vpop.xlane.xlu1 %2368 }
 0xb94   :  { %v2372_v46 = vpop.xlane.xlu1 %2371 }
 0xb98   :  { %v2690_v56 = vpop.permute.xlu1 %2689 }
 0xb9c   :  { %v2692_v22 = vpop.permute.xlu1 %2691 }
 0xbaf   :  { %v2624_v18 = vpop.f32.mrb[74].mxu1 }
 0xbb0   :  { %v7685_v33 = vpop.f32.mrb[75].mxu1 }
 0xbb3   :  { %v2629_v0 = vpop.f32.mrb[76].mxu1 }
 0xbb4   :  { %v7688_v52 = vpop.f32.mrb[77].mxu1 }
 0xbb5   :  { %v2666_v52 = vmul.f32 %v6738_v39, %v2357_v29 }
 0xbb7   :  { %v2634_v14 = vpop.f32.mrb[78].mxu1 }
 0xbb8   :  { %v7691_v3 = vpop.f32.mrb[79].mxu1 }
 0xbbb   :  { %v2639_v23 = vpop.f32.mrb[80].mxu1 }
 0xbbc   :  { %v7694_v34 = vpop.f32.mrb[81].mxu1 }
 0xbbf   :  { %v2644_v17 = vpop.f32.mrb[82].mxu1 }
 0xbc0   :  { %v7697_v57 = vpop.f32.mrb[83].mxu1 }
 0xbc1   :  { %v10388_v57 = vld [vmem:[#allocation8 + $0x1] ss:$0 sm:$0xff] }
 0xbc3   :  { %v10383_v28 = vpop.f32.mrb[84].mxu1 }
 0xbc4   :  { %v7700_v11 = vpop.f32.mrb[85].mxu1 }
 0xbc7   :  { %v10386_v7 = vpop.f32.mrb[86].mxu1 }
 0xbc8   :  { %v7703_v15 = vpop.f32.mrb[87].mxu1 }
 0xc22   :  { %v2524_v33 = vpop.f32.mrb[68].mxu0 }
 0xc23   :  { %v2625_v3 = vadd.f32 %v2624_v18, %v2524_v33  ;;  %v7662_v34 = vpop.f32.mrb[69].mxu0 }
 0xc25   :  { %v2673_v16 = vadd.f32 %v2666_v52, %v2625_v3  ;;  %v2694_v52 = vpop.permute.xlu1 %2693 }
 0xc26   :  { %v2529_v19 = vpop.f32.mrb[70].mxu0 }
 0xc27   :  { %v2708_v58 = vadd.f32 %v2688_v1, %v2673_v16  ;;  %v2630_v11 = vadd.f32 %v2629_v0, %v2529_v19  ;;  %v7665_v15 = vpop.f32.mrb[71].mxu0  ;;  %v2669_v0 = vmul.f32 %v6738_v39, %v2366_v9 }
 0xc29   :  { %v10391_v41 = vadd.f32 %v10388_v57, %v2708_v58  ;;  %v2674_v63 = vadd.f32 %v2667_v13, %v2630_v11 }
 0xc2a   :  { %v2534_v61 = vpop.f32.mrb[72].mxu0 }
 0xc2b   :  { %v6740_v29 = vmul.f32 -1.442695, %v10391_v41  ;;  %v2709_v18 = vadd.f32 %v2690_v56, %v2674_v63  ;;  %v2635_v33 = vadd.f32 %v2634_v14, %v2534_v61  ;;  %v7668_v34 = vpop.f32.mrb[73].mxu0  ;;  %v2696_v61 = vpop.permute.xlu1 %2695  ;;  %v2670_v56 = vmul.f32 %v6738_v39, %v2369_v53 }
 0xc2d   :  { %8669 = vpow2.f32 %v6740_v29  ;;  %v10395_v3 = vadd.f32 %v10388_v57, %v2709_v18  ;;  %v2675_v5 = vadd.f32 %v2668_v12, %v2635_v33  ;;  %v2671_v33 = vmul.f32 %v6738_v39, %v2372_v46 }
 0xc2e   :  { %v2539_v1 = vpop.f32.mrb[74].mxu0 }
 0xc2f   :  { %v6741_v16 = vmul.f32 -1.442695, %v10395_v3  ;;  %v2710_v19 = vadd.f32 %v2692_v22, %v2675_v5  ;;  %v2640_v58 = vadd.f32 %v2639_v23, %v2539_v1  ;;  %v7671_v13 = vpop.f32.mrb[75].mxu0 }
 0xc31   :  { %8671 = vpow2.f32 %v6741_v16  ;;  %v10399_v62 = vadd.f32 %v10388_v57, %v2710_v19  ;;  %v2676_v63 = vadd.f32 %v2669_v0, %v2640_v58  ;;  %v2375_v16 = vpop.xlane.xlu0 %2374  ;;  %v2698_v19 = vpop.permute.xlu1 %2697 }
 0xc32   :  { %v2544_v14 = vpop.f32.mrb[76].mxu0 }
 0xc33   :  { %v6742_v11 = vmul.f32 -1.442695, %v10399_v62  ;;  %v2711_v15 = vadd.f32 %v2694_v52, %v2676_v63  ;;  %v2645_v29 = vadd.f32 %v2644_v17, %v2544_v14  ;;  %v7674_v12 = vpop.f32.mrb[77].mxu0  ;;  %v2672_v63 = vmul.f32 %v6738_v39, %v2375_v16 }
 0xc35   :  { %8673 = vpow2.f32 %v6742_v11  ;;  %v2726_v9 = vadd.f32 %v10388_v57, %v2711_v15  ;;  %v2677_v18 = vadd.f32 %v2670_v56, %v2645_v29  ;;  %v2700_v29 = vpop.permute.xlu1 %2699 }
 0xc36   :  { %v2549_v22 = vpop.f32.mrb[78].mxu0 }
 0xc37   :  { %v8670_v23 = vpop.eup %8669  ;;  %v6743_v34 = vmul.f32 -1.442695, %v2726_v9  ;;  %v2712_v5 = vadd.f32 %v2696_v61, %v2677_v18  ;;  %v2650_v1 = vadd.f32 %v10383_v28, %v2549_v22  ;;  %v7677_v0 = vpop.f32.mrb[79].mxu0 }
 0xc38   :  { %v2751_v53 = vadd.f32 1.0, %v8670_v23 }
 0xc39   :  { %8675 = vpow2.f32 %v6743_v34  ;;  %v2727_v52 = vadd.f32 %v10388_v57, %v2712_v5  ;;  %v2678_v17 = vadd.f32 %v2671_v33, %v2650_v1 }
 0xc3a   :  { %8677 = vrcp.f32 %v2751_v53  ;;  %v2554_v58 = vpop.f32.mrb[80].mxu0 }
 0xc3b   :  { %v8672_v13 = vpop.eup %8671  ;;  %v6744_v14 = vmul.f32 -1.442695, %v2727_v52  ;;  %v2713_v56 = vadd.f32 %v2698_v19, %v2678_v17  ;;  %v2655_v46 = vadd.f32 %v10386_v7, %v2554_v58  ;;  %v7680_v11 = vpop.f32.mrb[81].mxu0 }
 0xc3c   :  { %v2752_v61 = vadd.f32 1.0, %v8672_v13 }
 0xc3d   :  { %8679 = vpow2.f32 %v6744_v14  ;;  %v2728_v28 = vadd.f32 %v10388_v57, %v2713_v56  ;;  %v2679_v15 = vadd.f32 %v2672_v63, %v2655_v46 }
 0xc3e   :  { %8681 = vrcp.f32 %v2752_v61 }
 0xc3f   :  { %v8674_v12 = vpop.eup %8673  ;;  %v6745_v18 = vmul.f32 -1.442695, %v2728_v28  ;;  %v2714_v22 = vadd.f32 %v2700_v29, %v2679_v15  ;;  %v2964_v15 = vld [vmem:[#allocation11 + $0x28] sm:$0xff] }
 0xc40   :  { %v2753_v23 = vadd.f32 1.0, %v8674_v12  ;;  %v11144_v12 = vmov 0.0|0.0  }
 0xc41   :  { %8683 = vpow2.f32 %v6745_v18  ;;  %v2729_v33 = vadd.f32 %v10388_v57, %v2714_v22  ;;  %v2965_v18 = vld [vmem:[#allocation11 + $0x30] sm:$0xff] }
 0xc42   :  { %8685 = vrcp.f32 %v2753_v23  ;;  %v6751_v23 = vld [vmem:[#allocation10 + $0x1] ss:$0 sm:$0xff] }
 0xc43   :  { %v8676_v39 = vpop.eup %8675  ;;  %v6746_v34 = vmul.f32 -1.442695, %v2729_v33 }
 0xc44   :  { %v8678_v5 = vpop.eup %8677  ;;  %v2754_v7 = vadd.f32 1.0, %v8676_v39 }
 0xc45   :  { %v2772_v1 = vmul.f32 %v8678_v5, %v10391_v41  ;;  %8687 = vpow2.f32 %v6746_v34 }
 0xc46   :  { %8689 = vrcp.f32 %v2754_v7 }
 0xc47   :  { %v8680_v0 = vpop.eup %8679  ;;  %7713 = vmatmul.mubr.msk.f32.vlgmr.msra.gmra.mrb[82].mxu0 %vm943_vm5, %v2772_v1 }
 0xc48   :  { %v8682_v16 = vpop.eup %8681  ;;  %v2755_v19 = vadd.f32 1.0, %v8680_v0  ;;  %7715 = vmatprep.mubr.msk.f32.mxu0 %vm9459_vm0, %v11140_v24 }
 0xc49   :  { %v2773_v53 = vmul.f32 %v8682_v16, %v10395_v3 }
 0xc4a   :  { %8691 = vrcp.f32 %v2755_v19 }
 0xc4b   :  { %v8684_v57 = vpop.eup %8683  ;;  %7716 = vmatmul.mubr.msk.f32.gmra.mrb[84].mxu0 %vm943_vm5, %v2773_v53 }
 0xc4c   :  { %v8686_v17 = vpop.eup %8685  ;;  %v2756_v58 = vadd.f32 1.0, %v8684_v57  ;;  %7718 = vmatprep.mubr.msk.f32.mxu0 %vm9459_vm0, %v11140_v24 }
 0xc4d   :  { %v2774_v41 = vmul.f32 %v8686_v17, %v10399_v62 }
 0xc4e   :  { %8693 = vrcp.f32 %v2756_v58 }
 0xc4f   :  { %v8688_v13 = vpop.eup %8687  ;;  %7719 = vmatmul.mubr.msk.f32.gmra.mrb[86].mxu0 %vm943_vm5, %v2774_v41 }
 0xc50   :  { %v8690_v63 = vpop.eup %8689  ;;  %v2757_v14 = vadd.f32 1.0, %v8688_v13  ;;  %7721 = vmatprep.mubr.msk.f32.mxu0 %vm9459_vm0, %v11140_v24 }
 0xc51   :  { %v2775_v3 = vmul.f32 %v8690_v63, %v2726_v9 }
 0xc52   :  { %8695 = vrcp.f32 %v2757_v14 }
 0xc53   :  { %7722 = vmatmul.mubr.msk.f32.gmra.mrb[88].mxu0 %vm943_vm5, %v2775_v3 }
 0xc54   :  { %v8692_v56 = vpop.eup %8691  ;;  %7724 = vmatprep.mubr.msk.f32.mxu0 %vm9459_vm0, %v11140_v24 }
 0xc55   :  { %v2776_v46 = vmul.f32 %v8692_v56, %v2727_v52  ;;  %v2963_v52 = vld [vmem:[#allocation11 + $0x20] sm:$0xff] }
 0xc56   :  { %v8350_v29 = vpack.c.bf16 %v2964_v15, %v2963_v52 }
 0xc57   :  { %7725 = vmatmul.mubr.msk.f32.gmra.mrb[90].mxu0 %vm943_vm5, %v2776_v46 }
 0xc58   :  { %v8694_v62 = vpop.eup %8693  ;;  %7727 = vmatprep.mubr.msk.f32.mxu0 %vm9459_vm0, %v11140_v24  ;;  %8351 = vmatpush3.bf16.msra.mxu1 %v8350_v29 }
 0xc59   :  { %v2777_v11 = vmul.f32 %v8694_v62, %v2728_v28  ;;  %8352 = vmatprep.subr.bf16.mxu1 %v11144_v12  ;;  %v2966_v28 = vld [vmem:[#allocation11 + $0x38] sm:$0xff] }
 0xc5a   :  { %v8353_v22 = vpack.c.bf16 %v2966_v28, %v2965_v18 }
 0xc5b   :  { %7728 = vmatmul.mubr.msk.f32.gmra.mrb[92].mxu0 %vm943_vm5, %v2777_v11 }
 0xc5c   :  { %v8696_v61 = vpop.eup %8695  ;;  %7730 = vmatprep.mubr.msk.f32.mxu0 %vm9459_vm0, %v11140_v24  ;;  %8354 = vmatpush3.bf16.msra.mxu1 %v8353_v22 }
 0xc5d   :  { %v2778_v9 = vmul.f32 %v8696_v61, %v2729_v33  ;;  %8364 = vmatprep.subr.bf16.mxu1 %v11144_v12 }
 0xc5f   :  { %7731 = vmatmul.mubr.msk.f32.gmra.mrb[94].mxu0 %vm943_vm5, %v2778_v9 }
 0xc60   :  { %7776 = vmatprep.mubr.msk.f32.mxu0 %vm9459_vm0, %v11140_v24 }
 0xd1a   :  { %v2879_v39 = vpop.f32.mrb[82].mxu0 }
 0xd1b   :  { %v2880_v33 = vadd.f32 %v6751_v23, %v2879_v39  ;;  %v7714_v34 = vpop.f32.mrb[83].mxu0 }
 0xd1d   :  { %v6759_v5 = vmul.f32 -1.442695, %v2880_v33 }
 0xd1e   :  { %v2884_v7 = vpop.f32.mrb[84].mxu0 }
 0xd1f   :  { %8697 = vpow2.f32 %v6759_v5  ;;  %v2885_v1 = vadd.f32 %v6751_v23, %v2884_v7  ;;  %v7717_v0 = vpop.f32.mrb[85].mxu0 }
 0xd21   :  { %v6760_v16 = vmul.f32 -1.442695, %v2885_v1 }
 0xd22   :  { %v2889_v19 = vpop.f32.mrb[86].mxu0 }
 0xd23   :  { %8699 = vpow2.f32 %v6760_v16  ;;  %v2890_v53 = vadd.f32 %v6751_v23, %v2889_v19  ;;  %v7720_v57 = vpop.f32.mrb[87].mxu0 }
 0xd25   :  { %v6761_v17 = vmul.f32 -1.442695, %v2890_v53 }
 0xd26   :  { %v2894_v58 = vpop.f32.mrb[88].mxu0 }
 0xd27   :  { %8701 = vpow2.f32 %v6761_v17  ;;  %v2895_v41 = vadd.f32 %v6751_v23, %v2894_v58  ;;  %v7723_v13 = vpop.f32.mrb[89].mxu0 }
 0xd29   :  { %v8698_v63 = vpop.eup %8697  ;;  %v6762_v14 = vmul.f32 -1.442695, %v2895_v41 }
 0xd2a   :  { %v2934_v3 = vadd.f32 1.0, %v8698_v63  ;;  %v2899_v56 = vpop.f32.mrb[90].mxu0 }
 0xd2b   :  { %8703 = vpow2.f32 %v6762_v14  ;;  %v2900_v46 = vadd.f32 %v6751_v23, %v2899_v56  ;;  %v7726_v62 = vpop.f32.mrb[91].mxu0 }
 0xd2c   :  { %8705 = vrcp.f32 %v2934_v3 }
 0xd2d   :  { %v8700_v11 = vpop.eup %8699  ;;  %v6763_v61 = vmul.f32 -1.442695, %v2900_v46 }
 0xd2e   :  { %v2935_v9 = vadd.f32 1.0, %v8700_v11  ;;  %v2904_v52 = vpop.f32.mrb[92].mxu0 }
 0xd2f   :  { %8707 = vpow2.f32 %v6763_v61  ;;  %v2905_v15 = vadd.f32 %v6751_v23, %v2904_v52  ;;  %v7729_v29 = vpop.f32.mrb[93].mxu0 }
 0xd30   :  { %8709 = vrcp.f32 %v2935_v9 }
 0xd31   :  { %v8702_v18 = vpop.eup %8701  ;;  %v6764_v28 = vmul.f32 -1.442695, %v2905_v15 }
 0xd32   :  { %v2936_v22 = vadd.f32 1.0, %v8702_v18  ;;  %v2909_v39 = vpop.f32.mrb[94].mxu0 }
 0xd33   :  { %8711 = vpow2.f32 %v6764_v28  ;;  %v2910_v34 = vadd.f32 %v6751_v23, %v2909_v39  ;;  %v7732_v5 = vpop.f32.mrb[95].mxu0  ;;  %v3332_v39 = vld [vmem:[#allocation16 + $0x28] sm:$0xff] }
 0xd34   :  { %8713 = vrcp.f32 %v2936_v22 }
 0xd35   :  { %v8704_v7 = vpop.eup %8703  ;;  %v6765_v0 = vmul.f32 -1.442695, %v2910_v34 }
 0xd36   :  { %v8706_v16 = vpop.eup %8705  ;;  %v2937_v19 = vadd.f32 1.0, %v8704_v7  ;;  %v3334_v7 = vld [vmem:[#allocation16 + $0x38] sm:$0xff] }
 0xd37   :  { %v2955_v57 = vmul.f32 %v8706_v16, %v2880_v33  ;;  %8715 = vpow2.f32 %v6765_v0  ;;  %v6766_v0 = vld [vmem:[#allocation13 + $0x1] ss:$0 sm:$0xff] }
 0xd38   :  { %8717 = vrcp.f32 %v2937_v19 }
 0xd39   :  { %v8708_v17 = vpop.eup %8707  ;;  %7742 = vmatmul.mubr.msk.f32.vlgmr.msra.gmra.mrb[88].mxu1 %vm943_vm5, %v2955_v57 }
 0xd3a   :  { %v8710_v58 = vpop.eup %8709  ;;  %v2938_v13 = vadd.f32 1.0, %v8708_v17  ;;  %7744 = vmatprep.mubr.msk.f32.mxu1 %vm9459_vm0, %v11140_v24 }
 0xd3b   :  { %v2956_v63 = vmul.f32 %v8710_v58, %v2885_v1 }
 0xd3c   :  { %8719 = vrcp.f32 %v2938_v13 }
 0xd3d   :  { %v8712_v23 = vpop.eup %8711  ;;  %v8365_v14 = vpack.c.bf16 %v2956_v63, %v2955_v57  ;;  %7745 = vmatmul.mubr.msk.f32.gmra.mrb[90].mxu1 %vm943_vm5, %v2956_v63 }
 0xd3e   :  { %v8714_v3 = vpop.eup %8713  ;;  %v2939_v56 = vadd.f32 1.0, %v8712_v23  ;;  %7747 = vmatprep.mubr.msk.f32.mxu1 %vm9459_vm0, %v11140_v24 }
 0xd3f   :  { %v2957_v33 = vmul.f32 %v8714_v3, %v2890_v53  ;;  %8366 = vmatpush3.bf16.msra.mxu1 %v8365_v14 }
 0xd40   :  { %8721 = vrcp.f32 %v2939_v56  ;;  %8367 = vmatprep.subr.bf16.mxu1 %v11144_v12 }
 0xd41   :  { %v8716_v62 = vpop.eup %8715  ;;  %7748 = vmatmul.mubr.msk.f32.gmra.mrb[92].mxu1 %vm943_vm5, %v2957_v33 }
 0xd42   :  { %v8718_v11 = vpop.eup %8717  ;;  %v2940_v1 = vadd.f32 1.0, %v8716_v62  ;;  %7750 = vmatprep.mubr.msk.f32.mxu1 %vm9459_vm0, %v11140_v24 }
 0xd43   :  { %v2958_v61 = vmul.f32 %v8718_v11, %v2895_v41 }
 0xd44   :  { %8723 = vrcp.f32 %v2940_v1 }
 0xd45   :  { %v8368_v9 = vpack.c.bf16 %v2958_v61, %v2957_v33  ;;  %7751 = vmatmul.mubr.msk.f32.gmra.mrb[94].mxu1 %vm943_vm5, %v2958_v61 }
 0xd46   :  { %v8720_v52 = vpop.eup %8719  ;;  %7753 = vmatprep.mubr.msk.f32.mxu1 %vm9459_vm0, %v11140_v24 }
 0xd47   :  { %v2959_v53 = vmul.f32 %v8720_v52, %v2900_v46  ;;  %8369 = vmatpush3.bf16.msra.mxu1 %v8368_v9  ;;  %v3331_v46 = vld [vmem:[#allocation16 + $0x20] sm:$0xff] }
 0xd48   :  { %8370 = vmatprep.subr.bf16.mxu1 %v11144_v12  ;;  %v8380_v5 = vpack.c.bf16 %v3332_v39, %v3331_v46 }
 0xd49   :  { %7754 = vmatmul.mubr.msk.f32.gmra.mrb[96].mxu1 %vm943_vm5, %v2959_v53 }
 0xd4a   :  { %v8722_v29 = vpop.eup %8721  ;;  %7756 = vmatprep.mubr.msk.f32.mxu1 %vm9459_vm0, %v11140_v24 }
 0xd4b   :  { %v2960_v18 = vmul.f32 %v8722_v29, %v2905_v15  ;;  %v3333_v15 = vld [vmem:[#allocation16 + $0x30] sm:$0xff] }
 0xd4d   :  { %v8371_v41 = vpack.c.bf16 %v2960_v18, %v2959_v53  ;;  %7757 = vmatmul.mubr.msk.f32.gmra.mrb[98].mxu1 %vm943_vm5, %v2960_v18 }
 0xd4e   :  { %v8724_v28 = vpop.eup %8723  ;;  %7759 = vmatprep.mubr.msk.f32.mxu1 %vm9459_vm0, %v11140_v24 }
 0xd4f   :  { %v2961_v22 = vmul.f32 %v8724_v28, %v2910_v34  ;;  %8372 = vmatpush3.bf16.msra.mxu1 %v8371_v41  ;;  %v8383_v34 = vpack.c.bf16 %v3334_v7, %v3333_v15 }
 0xd50   :  { %7791 = vmatprep.subr.mxu1 %v11140_v24 }
 0xd51   :  { %7760 = vmatmul.mubr.msk.f32.gmra.mrb[100].mxu1 %vm943_vm5, %v2961_v22 }
 0xd52   :  { %7793 = vmatprep.mubr.msk.f32.mxu1 %vm9459_vm0, %v11140_v24 }
 0xd53   :  { %7792 = vmatpush3.msra.mxu1 %v2961_v22 }
 0xd54   :  { %8379 = vmatprep.subr.bf16.mxu1 %v11144_v12 }
 0xd55   :  { %7794 = vmatmul.mubr.msk.f32.vlgmr.msra.gmra.mrb[102].mxu1 %vm1716_vm6, %v10147_v59 }
 0xd56   :  { %8381 = vmatpush3.bf16.msra.mxu1 %v8380_v5  ;;  %7815 = vmatprep.mubr.msk.f32.mxu1 %vm9459_vm0, %v11140_v24 }
 0xd57   :  { %8382 = vmatprep.subr.bf16.mxu1 %v11144_v12 }
 0xd5a   :  { %8384 = vmatpush3.bf16.msra.mxu1 %v8383_v34 }
 0xd5b   :  { %7829 = vmatprep.subr.mxu1 %v11140_v24 }
 0xd5d   :  { %7816 = vmatmul.mubr.msk.f32.vlgmr.msra.gmra.mrb[104].mxu1 %vm943_vm5, %v10264_v21 }
 0xd5e   :  { %7831 = vmatprep.mubr.msk.f32.mxu1 %vm9459_vm0, %v11140_v24 }
 0xe0c   :  { %v3062_v16 = vpop.f32.mrb[88].mxu1 }
 0xe0d   :  { %v3063_v19 = vadd.f32 %v6766_v0, %v3062_v16  ;;  %v7743_v57 = vpop.f32.mrb[89].mxu1 }
 0xe0f   :  { %v6774_v17 = vmul.f32 -1.442695, %v3063_v19 }
 0xe10   :  { %v3067_v58 = vpop.f32.mrb[90].mxu1 }
 0xe11   :  { %8725 = vpow2.f32 %v6774_v17  ;;  %v3068_v13 = vadd.f32 %v6766_v0, %v3067_v58  ;;  %v7746_v63 = vpop.f32.mrb[91].mxu1 }
 0xe13   :  { %v6775_v23 = vmul.f32 -1.442695, %v3068_v13 }
 0xe14   :  { %v3072_v14 = vpop.f32.mrb[92].mxu1 }
 0xe15   :  { %8727 = vpow2.f32 %v6775_v23  ;;  %v3073_v3 = vadd.f32 %v6766_v0, %v3072_v14  ;;  %v7749_v56 = vpop.f32.mrb[93].mxu1 }
 0xe17   :  { %v6776_v33 = vmul.f32 -1.442695, %v3073_v3 }
 0xe18   :  { %v3077_v62 = vpop.f32.mrb[94].mxu1 }
 0xe19   :  { %8729 = vpow2.f32 %v6776_v33  ;;  %v3078_v11 = vadd.f32 %v6766_v0, %v3077_v62  ;;  %v7752_v1 = vpop.f32.mrb[95].mxu1  ;;  %v6781_v33 = vld [vmem:[#allocation14 + $0x1] ss:$0 sm:$0xff] }
 0xe1b   :  { %v8726_v61 = vpop.eup %8725  ;;  %v6777_v9 = vmul.f32 -1.442695, %v3078_v11 }
 0xe1c   :  { %v3117_v52 = vadd.f32 1.0, %v8726_v61  ;;  %v3082_v53 = vpop.f32.mrb[96].mxu1 }
 0xe1d   :  { %8731 = vpow2.f32 %v6777_v9  ;;  %v3083_v29 = vadd.f32 %v6766_v0, %v3082_v53  ;;  %v7755_v18 = vpop.f32.mrb[97].mxu1 }
 0xe1e   :  { %8733 = vrcp.f32 %v3117_v52 }
 0xe1f   :  { %v8728_v41 = vpop.eup %8727  ;;  %v6778_v28 = vmul.f32 -1.442695, %v3083_v29 }
 0xe20   :  { %v3118_v22 = vadd.f32 1.0, %v8728_v41  ;;  %v3087_v46 = vpop.f32.mrb[98].mxu1 }
 0xe21   :  { %8735 = vpow2.f32 %v6778_v28  ;;  %v3088_v39 = vadd.f32 %v6766_v0, %v3087_v46  ;;  %v7758_v5 = vpop.f32.mrb[99].mxu1 }
 0xe22   :  { %8737 = vrcp.f32 %v3118_v22 }
 0xe23   :  { %v8730_v15 = vpop.eup %8729  ;;  %v6779_v7 = vmul.f32 -1.442695, %v3088_v39 }
 0xe24   :  { %v3119_v34 = vadd.f32 1.0, %v8730_v15  ;;  %v3092_v16 = vpop.f32.mrb[100].mxu1 }
 0xe25   :  { %8739 = vpow2.f32 %v6779_v7  ;;  %v3093_v57 = vadd.f32 %v6766_v0, %v3092_v16  ;;  %v7761_v17 = vpop.f32.mrb[101].mxu1 }
 0xe26   :  { %8741 = vrcp.f32 %v3119_v34 }
 0xe27   :  { %v8732_v58 = vpop.eup %8731  ;;  %v6780_v63 = vmul.f32 -1.442695, %v3093_v57 }
 0xe28   :  { %v8734_v23 = vpop.eup %8733  ;;  %v3120_v14 = vadd.f32 1.0, %v8732_v58  ;;  %v10469_v56 = vpop.f32.mrb[102].mxu1 }
 0xe29   :  { %v3138_v62 = vmul.f32 %v8734_v23, %v3063_v19  ;;  %8743 = vpow2.f32 %v6780_v63  ;;  %v7795_v1 = vpop.f32.mrb[103].mxu1 }
 0xe2a   :  { %8745 = vrcp.f32 %v3120_v14 }
 0xe2b   :  { %v8736_v61 = vpop.eup %8735  ;;  %v3153_v9 = vmul.f32 %v6781_v33, %v3138_v62 }
 0xe2c   :  { %v8738_v52 = vpop.eup %8737  ;;  %v3121_v53 = vadd.f32 1.0, %v8736_v61 }
 0xe2d   :  { %v3139_v18 = vmul.f32 %v8738_v52, %v3068_v13  ;;  %v3160_v0 = vsel %vm943_vm5, %v3153_v9, 0.0 }
 0xe2e   :  { %8747 = vrcp.f32 %v3121_v53  ;;  %3161 = vadd.xlane.f32.xlu1 %v3160_v0 }
 0xe2f   :  { %v8740_v41 = vpop.eup %8739  ;;  %v3154_v28 = vmul.f32 %v6781_v33, %v3139_v18 }
 0xe30   :  { %v8742_v22 = vpop.eup %8741  ;;  %v3122_v46 = vadd.f32 1.0, %v8740_v41  ;;  %v10472_v5 = vpop.f32.mrb[104].mxu1 }
 0xe31   :  { %v3140_v15 = vmul.f32 %v8742_v22, %v3073_v3  ;;  %v7817_v19 = vpop.f32.mrb[105].mxu1  ;;  %v3163_v7 = vsel %vm943_vm5, %v3154_v28, 0.0 }
 0xe32   :  { %8749 = vrcp.f32 %v3122_v46  ;;  %3164 = vadd.xlane.f32.xlu0 %v3163_v7 }
 0xe33   :  { %v8744_v34 = vpop.eup %8743  ;;  %v3155_v16 = vmul.f32 %v6781_v33, %v3140_v15 }
 0xe34   :  { %v8746_v17 = vpop.eup %8745  ;;  %v3123_v13 = vadd.f32 1.0, %v8744_v34 }
 0xe35   :  { %v3141_v58 = vmul.f32 %v8746_v17, %v3078_v11  ;;  %v3166_v63 = vsel %vm943_vm5, %v3155_v16, 0.0 }
 0xe36   :  { %8751 = vrcp.f32 %v3123_v13  ;;  %3167 = vadd.xlane.f32.xlu0 %v3166_v63  ;;  %v3336_v63 = vld [vmem:[#allocation17 + $0x20] sm:$0xff] }
 0xe37   :  { %v3156_v23 = vmul.f32 %v6781_v33, %v3141_v58 }
 0xe38   :  { %v8748_v14 = vpop.eup %8747 }
 0xe39   :  { %v3142_v62 = vmul.f32 %v8748_v14, %v3083_v29  ;;  %v3169_v1 = vsel %vm943_vm5, %v3156_v23, 0.0  ;;  %v3337_v23 = vld [vmem:[#allocation17 + $0x28] sm:$0xff]  ;;  %v3338_v14 = vld [vmem:[#allocation17 + $0x30] sm:$0xff] }
 0xe3a   :  { %3170 = vadd.xlane.f32.xlu0 %v3169_v1 }
 0xe3b   :  { %v3157_v3 = vmul.f32 %v6781_v33, %v3142_v62  ;;  %v3339_v62 = vld [vmem:[#allocation17 + $0x38] sm:$0xff] }
 0xe3c   :  { %v8750_v61 = vpop.eup %8749 }
 0xe3d   :  { %v3143_v9 = vmul.f32 %v8750_v61, %v3088_v39  ;;  %v3172_v52 = vsel %vm943_vm5, %v3157_v3, 0.0  ;;  %v3506_v3 = vld [vmem:[#allocation20 + $0x30] sm:$0xff]  ;;  %v3507_v61 = vld [vmem:[#allocation20 + $0x38] sm:$0xff] }
 0xe3e   :  { %3173 = vadd.xlane.f32.xlu0 %v3172_v52 }
 0xe3f   :  { %v3158_v53 = vmul.f32 %v6781_v33, %v3143_v9  ;;  %v8389_v9 = vpack.c.bf16 %v3507_v61, %v3506_v3  ;;  %v6806_v3 = vld [vmem:[%s11132_s18 + $0x50] sm:$0xff]  ;;  %v6807_v61 = vld [vmem:[%s11132_s18 + $0x58] sm:$0xff] }
 0xe40   :  { %v8752_v18 = vpop.eup %8751 }
 0xe41   :  { %v3144_v0 = vmul.f32 %v8752_v18, %v3093_v57  ;;  %v3175_v11 = vsel %vm943_vm5, %v3158_v53, 0.0 }
 0xe42   :  { %3176 = vadd.xlane.f32.xlu0 %v3175_v11 }
 0xe43   :  { %v3159_v41 = vmul.f32 %v6781_v33, %v3144_v0 }
 0xe45   :  { %v3178_v28 = vsel %vm943_vm5, %v3159_v41, 0.0 }
 0xe46   :  { %3179 = vadd.xlane.f32.xlu0 %v3178_v28 }
 0xe5c   :  { %3483 = vrot.lane.b32.xlu0 %v9900_v60, %s9463_s8 }
 0xebb   :  { %v3162_v29 = vpop.xlane.xlu1 %3161 }
 0xebc   :  { %v3181_v39 = vmul.f32 %v3162_v29, %v10268_v26 }
 0xebf   :  { %v3165_v22 = vpop.xlane.xlu0 %3164 }
 0xec0   :  { %v3182_v46 = vmul.f32 %v3165_v22, %v10274_v47 }
 0xec2   :  { %v8356_v15 = vpack.c.bf16 %v3182_v46, %v3181_v39 }
 0xec3   :  { %v3168_v19 = vpop.xlane.xlu0 %3167 }
 0xec4   :  { %8357 = vmatpush3.bf16.msra.mxu0 %v8356_v15  ;;  %v3183_v33 = vmul.f32 %v3168_v19, %v10277_v36  ;;  %v6786_v15 = vld [vmem:[#allocation19 + $0x1] ss:$0 sm:$0xff] }
 0xec5   :  { %8358 = vmatprep.subr.bf16.mxu0 %v11144_v12 }
 0xec7   :  { %v3171_v57 = vpop.xlane.xlu0 %3170 }
 0xec8   :  { %v3184_v7 = vmul.f32 %v3171_v57, %v10281_v27  ;;  %v8374_v27 = vpack.c.bf16 %v3337_v23, %v3336_v63 }
 0xeca   :  { %v8359_v34 = vpack.c.bf16 %v3184_v7, %v3183_v33 }
 0xecb   :  { %v3174_v16 = vpop.xlane.xlu0 %3173 }
 0xecc   :  { %8360 = vmatpush3.bf16.msra.mxu0 %v8359_v34  ;;  %v3185_v26 = vmul.f32 %v3174_v16, %v10287_v30  ;;  %v8377_v30 = vpack.c.bf16 %v3339_v62, %v3338_v14 }
 0xecd   :  { %8361 = vmatprep.subr.bf16.mxu0 %v11144_v12 }
 0xecf   :  { %v3177_v17 = vpop.xlane.xlu0 %3176 }
 0xed0   :  { %v3186_v47 = vmul.f32 %v3177_v17, %v10289_v35  ;;  %v3504_v35 = vld [vmem:[#allocation20 + $0x20] sm:$0xff] }
 0xed2   :  { %v8362_v13 = vpack.c.bf16 %v3186_v47, %v3185_v26 }
 0xed3   :  { %v3180_v58 = vpop.xlane.xlu0 %3179 }
 0xed4   :  { %8363 = vmatpush3.bf16.msra.mxu0 %v8362_v13  ;;  %v3187_v36 = vmul.f32 %v3180_v58, %v10293_v40  ;;  %v3505_v40 = vld [vmem:[#allocation20 + $0x28] sm:$0xff] }
 0xed5   :  { %7774 = vmatprep.subr.mxu0 %v11140_v24  ;;  %v8386_v1 = vpack.c.bf16 %v3505_v40, %v3504_v35  ;;  %v6805_v35 = vld [vmem:[%s11132_s18 + $0x48] sm:$0xff] }
 0xed7   :  { %v3484_v39 = vpop.permute.xlu0 %3483 }
 0xed8   :  { %7775 = vmatpush3.msra.mxu0 %v3187_v36 }
 0xed9   :  { %7777 = vmatmul.mubr.msk.f32.vlgmr.msra.gmra.mrb[96].mxu0 %vm1716_vm6, %v10147_v59  ;;  %8373 = vmatprep.subr.bf16.mxu0 %v11144_v12 }
 0xeda   :  { %8375 = vmatpush3.bf16.msra.mxu0 %v8374_v27  ;;  %7804 = vmatprep.mubr.msk.f32.mxu0 %vm9459_vm0, %v11140_v24 }
 0xedb   :  { %8376 = vmatprep.subr.bf16.mxu0 %v11144_v12 }
 0xede   :  { %8378 = vmatpush3.bf16.msra.mxu0 %v8377_v30  ;;  %v6804_v30 = vld [vmem:[%s11132_s18 + $0x40] sm:$0xff] }
 0xedf   :  { %8385 = vmatprep.subr.bf16.mxu0 %v11144_v12 }
 0xee1   :  { %7805 = vmatmul.mubr.msk.f32.vlgmr.msra.gmra.mrb[98].mxu0 %vm943_vm5, %v10469_v56 }
 0xee2   :  { %7826 = vmatprep.mubr.msk.f32.mxu0 %vm9459_vm0, %v11140_v24  ;;  %8387 = vmatpush3.bf16.msra.mxu0 %v8386_v1  ;;  %v8392_v1 = vpack.c.bf16 %v6805_v35, %v6804_v30 }
 0xee3   :  { %8388 = vmatprep.subr.bf16.mxu0 %v11144_v12 }
 0xee6   :  { %8390 = vmatpush3.bf16.msra.mxu0 %v8389_v9  ;;  %v8395_v9 = vpack.c.bf16 %v6807_v61, %v6806_v3 }
 0xee7   :  { %7852 = vmatprep.subr.mxu0 %v11140_v24 }
 0xfac   :  { %v3254_v52 = vpop.f32.mrb[96].mxu0 }
 0xfad   :  { %v3328_v53 = vmul.f32 %v3254_v52, %v10181_v25  ;;  %v7778_v18 = vpop.f32.mrb[97].mxu0 }
 0xfaf   :  { %v3329_v56 = vadd.f32 %v3328_v53, %v10190_v20  ;;  %v6789_v53 = vld [vmem:[#allocation22 + $0x1] ss:$0 sm:$0xff] }
 0xfb1   :  { %v3591_v0 = vsel %vm644_vm4, %v3329_v56, inf }
 0xfb2   :  { %v3592_v11 = vrot.slane %v3591_v0, 4 }
 0xfb4   :  { %v3593_v41 = vmin.f32 %v3591_v0, %v3592_v11  ;;  %v3409_v28 = vpop.f32.mrb[98].mxu0 }
 0xfb5   :  { %v3480_v29 = vadd.f32 %v10472_v5, %v3409_v28  ;;  %v7806_v22 = vpop.f32.mrb[99].mxu0 }
 0xfb6   :  { %v3594_v46 = vrot.slane %v3593_v41, 2 }
 0xfb7   :  { %v3486_v19 = vadd.f32 %v3484_v39, %v3480_v29 }
 0xfb8   :  { %v3595_v57 = vmin.f32 %v3593_v41, %v3594_v46 }
 0xfb9   :  { %v3495_v33 = vadd.f32 %v6786_v15, %v3486_v19 }
 0xfba   :  { %v3596_v7 = vrot.slane %v3595_v57, 1 }
 0xfbb   :  { %v6787_v34 = vmul.f32 -1.442695, %v3495_v33 }
 0xfbc   :  { %v3597_v16 = vmin.f32 %v3595_v57, %v3596_v7 }
 0xfbd   :  { %8753 = vpow2.f32 %v6787_v34 }
 0xfbe   :  { %v3598_v17 = vsub.f32 %v3329_v56, %v3597_v16 }
 0xfc0   :  { %v3599_v20 = vsel %vm644_vm4, %v3598_v17, -inf }
 0xfc1   :  { %v3600_v26 = vrot.slane %v3599_v20, 4 }
 0xfc3   :  { %v3601_v47 = vmax.f32 %v3599_v20, %v3600_v26 }
 0xfc5   :  { %v3602_v13 = vrot.slane %v3601_v47, 2 }
 0xfc7   :  { %v8754_v5 = vpop.eup %8753  ;;  %v3603_v58 = vmax.f32 %v3601_v47, %v3602_v13 }
 0xfc8   :  { %v3499_v63 = vadd.f32 1.0, %v8754_v5 }
 0xfc9   :  { %v3604_v23 = vrot.slane %v3603_v58, 1 }
 0xfca   :  { %8755 = vrcp.f32 %v3499_v63 }
 0xfcb   :  { %v3605_v36 = vmax.f32 %v3603_v58, %v3604_v23 }
 0xfcd   :  { %8757 = vrcp.f32 %v3605_v36 }
 0xfd4   :  { %v8756_v27 = vpop.eup %8755 }
 0xfd5   :  { %v3502_v14 = vmul.f32 %v8756_v27, %v3495_v33 }
 0xfd7   :  { %v8758_v62 = vpop.eup %8757  ;;  %7827 = vmatmul.mubr.msk.f32.vlgmr.msra.gmra.mrb[100].mxu0 %vm943_vm5, %v3502_v14 }
 0xfd8   :  { %v10513_v40 = vmul.f32 %v8758_v62, %v3598_v17  ;;  %7854 = vmatprep.mubr.msk.f32.mxu0 %vm9459_vm0, %v11140_v24 }
 0xfda   :  { %7830 = vmatpush3.msra.mxu1 %v10513_v40  ;;  %7853 = vmatpush3.msra.mxu0 %v10513_v40 }
 0xfdb   :  { %7832 = vmatmul.mubr.msk.f32.vlgmr.msra.gmra.mrb[106].mxu1 %vm427_vm2, %v9798_v31  ;;  %7855 = vmatmul.mubr.msk.f32.vlgmr.msra.gmra.mrb[102].mxu0 %vm427_vm2, %v9800_v32 }
 0xfdc   :  { %7834 = vmatprep.mubr.msk.f32.mxu1 %vm9459_vm0, %v11140_v24  ;;  %7857 = vmatprep.mubr.msk.f32.mxu0 %vm9459_vm0, %v11140_v24 }
 0xfdd   :  { %8391 = vmatprep.subr.bf16.mxu0 %v11144_v12  ;;  %7886 = vmatprep.subr.mxu1 %v11140_v24 }
 0xfde   :  { %8393 = vmatpush3.bf16.msra.mxu0 %v8392_v1 }
 0xfdf   :  { %7835 = vmatmul.mubr.msk.f32.gmra.mrb[108].mxu1 %vm427_vm2, %v9812_v37  ;;  %7858 = vmatmul.mubr.msk.f32.gmra.mrb[104].mxu0 %vm427_vm2, %v9814_v38 }
 0xfe0   :  { %7837 = vmatprep.mubr.msk.f32.mxu1 %vm9459_vm0, %v11140_v24  ;;  %7860 = vmatprep.mubr.msk.f32.mxu0 %vm9459_vm0, %v11140_v24 }
 0xfe1   :  { %8394 = vmatprep.subr.bf16.mxu0 %v11144_v12 }
 0xfe2   :  { %8396 = vmatpush3.bf16.msra.mxu0 %v8395_v9 }
 0xfe3   :  { %7838 = vmatmul.mubr.msk.f32.gmra.mrb[110].mxu1 %vm427_vm2, %v9828_v42  ;;  %7861 = vmatmul.mubr.msk.f32.gmra.mrb[106].mxu0 %vm427_vm2, %v9830_v43 }
 0xfe4   :  { %7840 = vmatprep.mubr.msk.f32.mxu1 %vm9459_vm0, %v11140_v24  ;;  %7863 = vmatprep.mubr.msk.f32.mxu0 %vm9459_vm0, %v11140_v24 }
 0xfe5   :  { %7909 = vmatprep.subr.mxu0 %v11140_v24 }
 0xfe7   :  { %7841 = vmatmul.mubr.msk.f32.gmra.mrb[112].mxu1 %vm427_vm2, %v9841_v44  ;;  %7864 = vmatmul.mubr.msk.f32.gmra.mrb[108].mxu0 %vm427_vm2, %v9843_v45 }
 0xfe8   :  { %7843 = vmatprep.mubr.msk.f32.mxu1 %vm9459_vm0, %v11140_v24  ;;  %7866 = vmatprep.mubr.msk.f32.mxu0 %vm9459_vm0, %v11140_v24 }
 0xfeb   :  { %7844 = vmatmul.mubr.msk.f32.gmra.mrb[114].mxu1 %vm427_vm2, %v9855_v48  ;;  %7867 = vmatmul.mubr.msk.f32.gmra.mrb[110].mxu0 %vm427_vm2, %v9857_v49 }
 0xfec   :  { %7846 = vmatprep.mubr.msk.f32.mxu1 %vm9459_vm0, %v11140_v24  ;;  %7869 = vmatprep.mubr.msk.f32.mxu0 %vm9459_vm0, %v11140_v24 }
 0xfef   :  { %7847 = vmatmul.mubr.msk.f32.gmra.mrb[116].mxu1 %vm427_vm2, %v9867_v50  ;;  %7870 = vmatmul.mubr.msk.f32.gmra.mrb[112].mxu0 %vm427_vm2, %v9869_v51 }
 0xff0   :  { %7872 = vmatprep.mubr.msk.f32.mxu0 %vm9459_vm0, %v11140_v24  ;;  %7849 = vmatprep.mubr.msk.f32.mxu1 %vm9459_vm0, %v11140_v24 }
 0xff3   :  { %7873 = vmatmul.mubr.msk.f32.gmra.mrb[114].mxu0 %vm427_vm2, %v9883_v55  ;;  %7850 = vmatmul.mubr.msk.f32.gmra.mrb[118].mxu1 %vm427_vm2, %v9881_v54 }
 0xff4   :  { %7883 = vmatprep.mubr.msk.f32.mxu0 %vm9459_vm0, %v11140_v24  ;;  %7888 = vmatprep.mubr.msk.f32.mxu1 %vm9459_vm0, %v11140_v24 }
0x10aa   :  { %v3577_v52 = vpop.f32.mrb[100].mxu0 }
0x10ab   :  { %v3581_v18 = vadd.f32 %v3577_v52, %v10264_v21  ;;  %v7828_v56 = vpop.f32.mrb[101].mxu0 }
0x10ad   :  { %v10582_v0 = vadd.f32 %v6789_v53, %v3581_v18 }
0x10ae   :  { %v3674_v11 = vpop.f32.mrb[106].mxu1  ;;  %v3774_v41 = vpop.f32.mrb[102].mxu0 }
0x10af   :  { %7884 = vmatmul.mubr.msk.f32.vlgmr.msra.gmra.mrb[116].mxu0 %vm943_vm5, %v10582_v0  ;;  %v10586_v28 = vsub.f32 %v3674_v11, %v3774_v41  ;;  %v7833_v29 = vpop.f32.mrb[107].mxu1  ;;  %v7856_v22 = vpop.f32.mrb[103].mxu0 }
0x10b0   :  { %7911 = vmatprep.mubr.msk.f32.mxu0 %vm9459_vm0, %v11140_v24 }
0x10b2   :  { %v3679_v39 = vpop.f32.mrb[108].mxu1  ;;  %v3779_v46 = vpop.f32.mrb[104].mxu0 }
0x10b3   :  { %v10590_v15 = vsub.f32 %v3679_v39, %v3779_v46  ;;  %v7836_v21 = vpop.f32.mrb[109].mxu1  ;;  %v7859_v19 = vpop.f32.mrb[105].mxu0  ;;  %v11145_v46 = vld [vmem:[#allocation64_spill] sm:$0xff] }
0x10b5   :  { %v3816_v57 = vmul.f32 %v10590_v15, %v10590_v15 }
0x10b6   :  { %v3684_v33 = vpop.f32.mrb[110].mxu1  ;;  %v3784_v7 = vpop.f32.mrb[106].mxu0 }
0x10b7   :  { %v10594_v34 = vsub.f32 %v3684_v33, %v3784_v7  ;;  %v7839_v16 = vpop.f32.mrb[111].mxu1  ;;  %v7862_v17 = vpop.f32.mrb[107].mxu0  ;;  %v3825_v20 = vsel %vm644_vm4, %v3816_v57, 0.0  ;;  %v3815_v57 = vmul.f32 %v10586_v28, %v10586_v28 }
0x10b8   :  { %3826 = vadd.xlane.f32.xlu0 %v3825_v20  ;;  %v11146_v17 = vld [vmem:[#allocation61_spill] sm:$0xff] }
0x10b9   :  { %v3817_v26 = vmul.f32 %v10594_v34, %v10594_v34  ;;  %v3822_v33 = vsel %vm644_vm4, %v3815_v57, 0.0 }
0x10ba   :  { %v3689_v47 = vpop.f32.mrb[112].mxu1  ;;  %v3789_v13 = vpop.f32.mrb[108].mxu0 }
0x10bb   :  { %v10599_v5 = vsub.f32 %v3689_v47, %v3789_v13  ;;  %v7842_v58 = vpop.f32.mrb[113].mxu1  ;;  %v7865_v63 = vpop.f32.mrb[109].mxu0  ;;  %v3828_v23 = vsel %vm644_vm4, %v3817_v26, 0.0 }
0x10bc   :  { %3829 = vadd.xlane.f32.xlu0 %v3828_v23 }
0x10bd   :  { %v3818_v7 = vmul.f32 %v10599_v5, %v10599_v5 }
0x10be   :  { %v3694_v36 = vpop.f32.mrb[114].mxu1  ;;  %v3794_v27 = vpop.f32.mrb[110].mxu0 }
0x10bf   :  { %v10602_v14 = vsub.f32 %v3694_v36, %v3794_v27  ;;  %v7845_v62 = vpop.f32.mrb[115].mxu1  ;;  %v7868_v30 = vpop.f32.mrb[111].mxu0  ;;  %v3831_v16 = vsel %vm644_vm4, %v3818_v7, 0.0 }
0x10c1   :  { %v3819_v35 = vmul.f32 %v10602_v14, %v10602_v14 }
0x10c2   :  { %v3699_v1 = vpop.f32.mrb[116].mxu1  ;;  %v3799_v3 = vpop.f32.mrb[112].mxu0 }
0x10c3   :  { %v10606_v61 = vsub.f32 %v3699_v1, %v3799_v3  ;;  %v3834_v9 = vsel %vm644_vm4, %v3819_v35, 0.0  ;;  %v7871_v52 = vpop.f32.mrb[113].mxu0  ;;  %v7848_v53 = vpop.f32.mrb[117].mxu1  ;;  %v6832_v35 = vld [vmem:[%s11137_s3 + $0x40] sm:$0xff]  ;;  %v6833_v1 = vld [vmem:[%s11137_s3 + $0x48] sm:$0xff] }
0x10c4   :  { %3835 = vadd.xlane.f32.xlu0 %v3834_v9  ;;  %v8398_v9 = vpack.c.bf16 %v6833_v1, %v6832_v35  ;;  %v6834_v53 = vld [vmem:[%s11137_s3 + $0x50] sm:$0xff] }
0x10c5   :  { %v3820_v18 = vmul.f32 %v10606_v61, %v10606_v61 }
0x10c6   :  { %v3804_v11 = vpop.f32.mrb[114].mxu0  ;;  %v3704_v41 = vpop.f32.mrb[118].mxu1 }
0x10c7   :  { %v3837_v56 = vsel %vm644_vm4, %v3820_v18, 0.0  ;;  %v10622_v29 = vsub.f32 %v3704_v41, %v3804_v11  ;;  %v7874_v22 = vpop.f32.mrb[115].mxu0  ;;  %v7851_v39 = vpop.f32.mrb[119].mxu1  ;;  %v6835_v18 = vld [vmem:[%s11137_s3 + $0x58] sm:$0xff] }
0x10c8   :  { %3838 = vadd.xlane.f32.xlu0 %v3837_v56  ;;  %v8401_v11 = vpack.c.bf16 %v6835_v18, %v6834_v53 }
0x10c9   :  { %v3821_v20 = vmul.f32 %v10622_v29, %v10622_v29 }
0x10cb   :  { %v3840_v26 = vsel %vm644_vm4, %v3821_v20, 0.0 }
0x10de   :  { %4149 = vrot.lane.b32.xlu0 %v9911_v2, %s9463_s8 }
0x10e2   :  { %4151 = vrot.lane.b32.xlu0 %v9915_v4, %s9463_s8 }
0x10e6   :  { %4153 = vrot.lane.b32.xlu0 %v9917_v6, %s9463_s8 }
0x10ea   :  { %4155 = vrot.lane.b32.xlu0 %v9919_v8, %s9463_s8 }
0x10ee   :  { %4157 = vrot.lane.b32.xlu0 %v9921_v10, %s9463_s8 }
0x10f2   :  { %4159 = vrot.lane.b32.xlu0 %v11145_v46, %s9463_s8 }
0x1182   :  { %v3917_v21 = vpop.f32.mrb[116].mxu0 }
0x1183   :  { %3922 = vrot.lane.b32.xlu1 %v3917_v21, %s9461_s30  ;;  %v7885_v19 = vpop.f32.mrb[117].mxu0  ;;  %7910 = vmatpush3.msra.mxu0 %v3917_v21  ;;  %v3827_v21 = vpop.xlane.xlu0 %3826 }
0x1184   :  { %7912 = vmatmul.mubr.msk.f32.vlgmr.msra.gmra.mrb[118].mxu0 %vm427_vm2, %v9798_v31  ;;  %8403 = vmatprep.subr.bf16.mxu0 %v11144_v12 }
0x1185   :  { %7914 = vmatprep.mubr.msk.f32.mxu0 %vm9459_vm0, %v11140_v24 }
0x1187   :  { %v3830_v19 = vpop.xlane.xlu0 %3829 }
0x1188   :  { %7915 = vmatmul.mubr.msk.f32.gmra.mrb[120].mxu0 %vm427_vm2, %v9812_v37 }
0x1189   :  { %7917 = vmatprep.mubr.msk.f32.mxu0 %vm9459_vm0, %v11140_v24 }
0x118b   :  { %v3836_v57 = vpop.xlane.xlu0 %3835 }
0x118c   :  { %7918 = vmatmul.mubr.msk.f32.gmra.mrb[122].mxu0 %vm427_vm2, %v9828_v42 }
0x118d   :  { %7920 = vmatprep.mubr.msk.f32.mxu0 %vm9459_vm0, %v11140_v24 }
0x1190   :  { %7921 = vmatmul.mubr.msk.f32.gmra.mrb[124].mxu0 %vm427_vm2, %v9841_v44 }
0x1191   :  { %7923 = vmatprep.mubr.msk.f32.mxu0 %vm9459_vm0, %v11140_v24 }
0x1194   :  { %7924 = vmatmul.mubr.msk.f32.gmra.mrb[126].mxu0 %vm427_vm2, %v9855_v48 }
0x1195   :  { %7926 = vmatprep.mubr.msk.f32.mxu0 %vm9459_vm0, %v11140_v24 }
0x1198   :  { %7927 = vmatmul.mubr.msk.f32.gmra.mrb[128].mxu0 %vm427_vm2, %v9867_v50 }
0x1199   :  { %7929 = vmatprep.mubr.msk.f32.mxu0 %vm9459_vm0, %v11140_v24 }
0x119c   :  { %7930 = vmatmul.mubr.msk.f32.gmra.mrb[130].mxu0 %vm427_vm2, %v9881_v54 }
0x119d   :  { %7969 = vmatprep.mubr.msk.f32.mxu0 %vm9459_vm0, %v11140_v24 }
0x11a7   :  { %3823 = vadd.xlane.f32.xlu1 %v3822_v33  ;;  %v3839_v33 = vpop.xlane.xlu0 %3838 }
0x11ab   :  { %3832 = vadd.xlane.f32.xlu1 %v3831_v16  ;;  %v4150_v16 = vpop.permute.xlu0 %4149 }
0x11bc   :  { %4147 = vrot.lane.b32.xlu1 %v11146_v17, %s9463_s8 }
0x11e0   :  { %3841 = vadd.xlane.f32.xlu1 %v3840_v26  ;;  %v6823_v26 = vld [vmem:[#allocation5 + $0x2] ss:$0 sm:$0xff] }
0x11e1   :  { %v4134_v53 = vmul.f32 %v6823_v26, %v3827_v21  ;;  %v4135_v10 = vmul.f32 %v6823_v26, %v3830_v19 }
0x11f5   :  { %v3923_v47 = vpop.permute.xlu1 %3922 }
0x11f6   :  { %7887 = vmatpush3.msra.mxu1 %v3923_v47 }
0x11f7   :  { %7889 = vmatmul.mubr.msk.f32.vlgmr.msra.gmra.mrb[120].mxu1 %vm427_vm2, %v9800_v32  ;;  %8397 = vmatprep.subr.bf16.mxu1 %v11144_v12 }
0x11f8   :  { %7891 = vmatprep.mubr.msk.f32.mxu1 %vm9459_vm0, %v11140_v24  ;;  %8399 = vmatpush3.bf16.msra.mxu1 %v8398_v9  ;;  %v10706_v9 = vld [vmem:[#allocation8 + $0x2] ss:$0 sm:$0xff] }
0x11f9   :  { %8400 = vmatprep.subr.bf16.mxu1 %v11144_v12 }
0x11fb   :  { %7892 = vmatmul.mubr.msk.f32.gmra.mrb[122].mxu1 %vm427_vm2, %v9814_v38 }
0x11fc   :  { %7894 = vmatprep.mubr.msk.f32.mxu1 %vm9459_vm0, %v11140_v24  ;;  %8402 = vmatpush3.bf16.msra.mxu1 %v8401_v11 }
0x11fd   :  { %8409 = vmatprep.subr.bf16.mxu1 %v11144_v12 }
0x11ff   :  { %7895 = vmatmul.mubr.msk.f32.gmra.mrb[124].mxu1 %vm427_vm2, %v9830_v43 }
0x1200   :  { %7897 = vmatprep.mubr.msk.f32.mxu1 %vm9459_vm0, %v11140_v24 }
0x1203   :  { %7898 = vmatmul.mubr.msk.f32.gmra.mrb[126].mxu1 %vm427_vm2, %v9843_v45 }
0x1204   :  { %7900 = vmatprep.mubr.msk.f32.mxu1 %vm9459_vm0, %v11140_v24 }
0x1207   :  { %7901 = vmatmul.mubr.msk.f32.gmra.mrb[128].mxu1 %vm427_vm2, %v9857_v49 }
0x1208   :  { %7903 = vmatprep.mubr.msk.f32.mxu1 %vm9459_vm0, %v11140_v24 }
0x120b   :  { %7904 = vmatmul.mubr.msk.f32.gmra.mrb[130].mxu1 %vm427_vm2, %v9869_v51 }
0x120c   :  { %7906 = vmatprep.mubr.msk.f32.mxu1 %vm9459_vm0, %v11140_v24 }
0x120f   :  { %7907 = vmatmul.mubr.msk.f32.gmra.mrb[132].mxu1 %vm427_vm2, %v9883_v55 }
0x1210   :  { %7940 = vmatprep.mubr.msk.f32.mxu1 %vm9459_vm0, %v11140_v24 }
0x1234   :  { %v3824_v7 = vpop.xlane.xlu1 %3823 }
0x1238   :  { %v3833_v20 = vpop.xlane.xlu1 %3832 }
0x123c   :  { %v4148_v1 = vpop.permute.xlu1 %4147 }
0x1257   :  { %v4091_v13 = vpop.f32.mrb[118].mxu0 }
0x1258   :  { %v7913_v58 = vpop.f32.mrb[119].mxu0 }
0x1259   :  { %v4133_v58 = vmul.f32 %v6823_v26, %v3824_v7 }
0x125b   :  { %v4096_v63 = vpop.f32.mrb[120].mxu0 }
0x125c   :  { %v7916_v23 = vpop.f32.mrb[121].mxu0 }
0x125f   :  { %v4101_v36 = vpop.f32.mrb[122].mxu0 }
0x1260   :  { %v7919_v27 = vpop.f32.mrb[123].mxu0 }
0x1263   :  { %v4106_v62 = vpop.f32.mrb[124].mxu0 }
0x1264   :  { %v7922_v30 = vpop.f32.mrb[125].mxu0 }
0x1265   :  { %v4152_v30 = vpop.permute.xlu0 %4151 }
0x1267   :  { %v4111_v3 = vpop.f32.mrb[126].mxu0 }
0x1268   :  { %v7925_v52 = vpop.f32.mrb[127].mxu0 }
0x126b   :  { %v10701_v56 = vpop.f32.mrb[128].mxu0 }
0x126c   :  { %v7928_v41 = vpop.f32.mrb[129].mxu0 }
0x126f   :  { %v10704_v22 = vpop.f32.mrb[130].mxu0 }
0x1270   :  { %v7931_v39 = vpop.f32.mrb[131].mxu0 }
0x12ca   :  { %v3991_v47 = vpop.f32.mrb[120].mxu1 }
0x12cb   :  { %v4092_v23 = vadd.f32 %v4091_v13, %v3991_v47  ;;  %v7890_v27 = vpop.f32.mrb[121].mxu1 }
0x12cd   :  { %v4140_v35 = vadd.f32 %v4133_v58, %v4092_v23  ;;  %v4154_v58 = vpop.permute.xlu0 %4153 }
0x12ce   :  { %v3996_v52 = vpop.f32.mrb[122].mxu1 }
0x12cf   :  { %v4168_v18 = vadd.f32 %v4148_v1, %v4140_v35  ;;  %v4097_v11 = vadd.f32 %v4096_v63, %v3996_v52  ;;  %v7893_v41 = vpop.f32.mrb[123].mxu1  ;;  %v4136_v63 = vmul.f32 %v6823_v26, %v3833_v20 }
0x12d1   :  { %v10709_v39 = vadd.f32 %v10706_v9, %v4168_v18  ;;  %v4141_v17 = vadd.f32 %v4134_v53, %v4097_v11 }
0x12d2   :  { %v4001_v46 = vpop.f32.mrb[124].mxu1 }
0x12d3   :  { %v6825_v7 = vmul.f32 -1.442695, %v10709_v39  ;;  %v4169_v13 = vadd.f32 %v4150_v16, %v4141_v17  ;;  %v4102_v47 = vadd.f32 %v4101_v36, %v4001_v46  ;;  %v7896_v27 = vpop.f32.mrb[125].mxu1  ;;  %v4156_v46 = vpop.permute.xlu0 %4155  ;;  %v4137_v16 = vmul.f32 %v6823_v26, %v3836_v57 }
0x12d5   :  { %8759 = vpow2.f32 %v6825_v7  ;;  %v10713_v23 = vadd.f32 %v10706_v9, %v4169_v13  ;;  %v4142_v21 = vadd.f32 %v4135_v10, %v4102_v47  ;;  %v4138_v47 = vmul.f32 %v6823_v26, %v3839_v33 }
0x12d6   :  { %v4006_v35 = vpop.f32.mrb[126].mxu1 }
0x12d7   :  { %v6826_v1 = vmul.f32 -1.442695, %v10713_v23  ;;  %v4170_v52 = vadd.f32 %v4152_v30, %v4142_v21  ;;  %v4107_v18 = vadd.f32 %v4106_v62, %v4006_v35  ;;  %v7899_v53 = vpop.f32.mrb[127].mxu1 }
0x12d9   :  { %8761 = vpow2.f32 %v6826_v1  ;;  %v10717_v19 = vadd.f32 %v10706_v9, %v4170_v52  ;;  %v4143_v17 = vadd.f32 %v4136_v63, %v4107_v18  ;;  %v4158_v1 = vpop.permute.xlu0 %4157  ;;  %v3842_v52 = vpop.xlane.xlu1 %3841 }
0x12da   :  { %v4011_v36 = vpop.f32.mrb[128].mxu1 }
0x12db   :  { %v6827_v11 = vmul.f32 -1.442695, %v10717_v19  ;;  %v4171_v41 = vadd.f32 %v4154_v58, %v4143_v17  ;;  %v4112_v7 = vadd.f32 %v4111_v3, %v4011_v36  ;;  %v7902_v10 = vpop.f32.mrb[129].mxu1  ;;  %v4139_v17 = vmul.f32 %v6823_v26, %v3842_v52 }
0x12dd   :  { %8763 = vpow2.f32 %v6827_v11  ;;  %v4186_v20 = vadd.f32 %v10706_v9, %v4171_v41  ;;  %v4144_v13 = vadd.f32 %v4137_v16, %v4112_v7  ;;  %v4160_v7 = vpop.permute.xlu0 %4159 }
0x12de   :  { %v4016_v30 = vpop.f32.mrb[130].mxu1 }
0x12df   :  { %v8760_v62 = vpop.eup %8759  ;;  %v6828_v27 = vmul.f32 -1.442695, %v4186_v20  ;;  %v4172_v21 = vadd.f32 %v4156_v46, %v4144_v13  ;;  %v4117_v35 = vadd.f32 %v10701_v56, %v4016_v30  ;;  %v7905_v63 = vpop.f32.mrb[131].mxu1 }
0x12e0   :  { %v4211_v57 = vadd.f32 1.0, %v8760_v62 }
0x12e1   :  { %8765 = vpow2.f32 %v6828_v27  ;;  %v4187_v58 = vadd.f32 %v10706_v9, %v4172_v21  ;;  %v4145_v3 = vadd.f32 %v4138_v47, %v4117_v35 }
0x12e2   :  { %8767 = vrcp.f32 %v4211_v57  ;;  %v4021_v18 = vpop.f32.mrb[132].mxu1 }
0x12e3   :  { %v8762_v53 = vpop.eup %8761  ;;  %v6829_v36 = vmul.f32 -1.442695, %v4187_v58  ;;  %v4173_v16 = vadd.f32 %v4158_v1, %v4145_v3  ;;  %v4122_v33 = vadd.f32 %v10704_v22, %v4021_v18  ;;  %v7908_v11 = vpop.f32.mrb[133].mxu1 }
0x12e4   :  { %v4212_v46 = vadd.f32 1.0, %v8762_v53 }
0x12e5   :  { %8769 = vpow2.f32 %v6829_v36  ;;  %v4188_v56 = vadd.f32 %v10706_v9, %v4173_v16  ;;  %v4146_v41 = vadd.f32 %v4139_v17, %v4122_v33 }
0x12e6   :  { %8771 = vrcp.f32 %v4212_v46 }
0x12e7   :  { %v8764_v10 = vpop.eup %8763  ;;  %v6830_v13 = vmul.f32 -1.442695, %v4188_v56  ;;  %v4174_v30 = vadd.f32 %v4160_v7, %v4146_v41  ;;  %v4424_v41 = vld [vmem:[#allocation11 + $0x48] sm:$0xff] }
0x12e8   :  { %v4213_v62 = vadd.f32 1.0, %v8764_v10  ;;  %v4425_v10 = vld [vmem:[#allocation11 + $0x50] sm:$0xff] }
0x12e9   :  { %8773 = vpow2.f32 %v6830_v13  ;;  %v4189_v47 = vadd.f32 %v10706_v9, %v4174_v30  ;;  %v6836_v30 = vld [vmem:[#allocation10 + $0x2] ss:$0 sm:$0xff] }
0x12ea   :  { %8775 = vrcp.f32 %v4213_v62 }
0x12eb   :  { %v8766_v26 = vpop.eup %8765  ;;  %v6831_v27 = vmul.f32 -1.442695, %v4189_v47 }
0x12ec   :  { %v8768_v21 = vpop.eup %8767  ;;  %v4214_v22 = vadd.f32 1.0, %v8766_v26 }
0x12ed   :  { %v4232_v35 = vmul.f32 %v8768_v21, %v10709_v39  ;;  %8777 = vpow2.f32 %v6831_v27 }
0x12ee   :  { %8779 = vrcp.f32 %v4214_v22 }
0x12ef   :  { %v8770_v63 = vpop.eup %8769  ;;  %7941 = vmatmul.mubr.msk.f32.vlgmr.msra.gmra.mrb[134].mxu1 %vm943_vm5, %v4232_v35 }
0x12f0   :  { %v8772_v1 = vpop.eup %8771  ;;  %v4215_v52 = vadd.f32 1.0, %v8770_v63  ;;  %7943 = vmatprep.mubr.msk.f32.mxu1 %vm9459_vm0, %v11140_v24 }
0x12f1   :  { %v4233_v57 = vmul.f32 %v8772_v1, %v10713_v23 }
0x12f2   :  { %8781 = vrcp.f32 %v4215_v52 }
0x12f3   :  { %v8774_v9 = vpop.eup %8773  ;;  %7944 = vmatmul.mubr.msk.f32.gmra.mrb[136].mxu1 %vm943_vm5, %v4233_v57 }
0x12f4   :  { %v8776_v3 = vpop.eup %8775  ;;  %v4216_v18 = vadd.f32 1.0, %v8774_v9  ;;  %7946 = vmatprep.mubr.msk.f32.mxu1 %vm9459_vm0, %v11140_v24 }
0x12f5   :  { %v4234_v39 = vmul.f32 %v8776_v3, %v10717_v19 }
0x12f6   :  { %8783 = vrcp.f32 %v4216_v18 }
0x12f7   :  { %v8778_v53 = vpop.eup %8777  ;;  %7947 = vmatmul.mubr.msk.f32.gmra.mrb[138].mxu1 %vm943_vm5, %v4234_v39 }
0x12f8   :  { %v8780_v17 = vpop.eup %8779  ;;  %v4217_v36 = vadd.f32 1.0, %v8778_v53  ;;  %7949 = vmatprep.mubr.msk.f32.mxu1 %vm9459_vm0, %v11140_v24 }
0x12f9   :  { %v4235_v23 = vmul.f32 %v8780_v17, %v4186_v20 }
0x12fa   :  { %8785 = vrcp.f32 %v4217_v36 }
0x12fb   :  { %7950 = vmatmul.mubr.msk.f32.gmra.mrb[140].mxu1 %vm943_vm5, %v4235_v23 }
0x12fc   :  { %v8782_v16 = vpop.eup %8781  ;;  %7952 = vmatprep.mubr.msk.f32.mxu1 %vm9459_vm0, %v11140_v24 }
0x12fd   :  { %v4236_v33 = vmul.f32 %v8782_v16, %v4187_v58  ;;  %v4423_v58 = vld [vmem:[#allocation11 + $0x40] sm:$0xff] }
0x12fe   :  { %v8404_v7 = vpack.c.bf16 %v4424_v41, %v4423_v58 }
0x12ff   :  { %7953 = vmatmul.mubr.msk.f32.gmra.mrb[142].mxu1 %vm943_vm5, %v4236_v33 }
0x1300   :  { %v8784_v19 = vpop.eup %8783  ;;  %7955 = vmatprep.mubr.msk.f32.mxu1 %vm9459_vm0, %v11140_v24  ;;  %8405 = vmatpush3.bf16.msra.mxu0 %v8404_v7 }
0x1301   :  { %v4237_v11 = vmul.f32 %v8784_v19, %v4188_v56  ;;  %8406 = vmatprep.subr.bf16.mxu0 %v11144_v12  ;;  %v4426_v56 = vld [vmem:[#allocation11 + $0x58] sm:$0xff] }
0x1302   :  { %v8407_v13 = vpack.c.bf16 %v4426_v56, %v4425_v10 }
0x1303   :  { %7956 = vmatmul.mubr.msk.f32.gmra.mrb[144].mxu1 %vm943_vm5, %v4237_v11 }
0x1304   :  { %v8786_v46 = vpop.eup %8785  ;;  %7958 = vmatprep.mubr.msk.f32.mxu1 %vm9459_vm0, %v11140_v24  ;;  %8408 = vmatpush3.bf16.msra.mxu0 %v8407_v13 }
0x1305   :  { %v4238_v20 = vmul.f32 %v8786_v46, %v4189_v47  ;;  %8418 = vmatprep.subr.bf16.mxu0 %v11144_v12 }
0x1307   :  { %7959 = vmatmul.mubr.msk.f32.gmra.mrb[146].mxu1 %vm943_vm5, %v4238_v20 }
0x1308   :  { %8004 = vmatprep.mubr.msk.f32.mxu1 %vm9459_vm0, %v11140_v24 }
0x13c2   :  { %v4339_v62 = vpop.f32.mrb[134].mxu1 }
0x13c3   :  { %v4340_v47 = vadd.f32 %v6836_v30, %v4339_v62  ;;  %v7942_v26 = vpop.f32.mrb[135].mxu1 }
0x13c5   :  { %v6844_v27 = vmul.f32 -1.442695, %v4340_v47 }
0x13c6   :  { %v4344_v21 = vpop.f32.mrb[136].mxu1 }
0x13c7   :  { %8787 = vpow2.f32 %v6844_v27  ;;  %v4345_v22 = vadd.f32 %v6836_v30, %v4344_v21  ;;  %v7945_v35 = vpop.f32.mrb[137].mxu1 }
0x13c9   :  { %v6845_v63 = vmul.f32 -1.442695, %v4345_v22 }
0x13ca   :  { %v4349_v1 = vpop.f32.mrb[138].mxu1 }
0x13cb   :  { %8789 = vpow2.f32 %v6845_v63  ;;  %v4350_v52 = vadd.f32 %v6836_v30, %v4349_v1  ;;  %v7948_v57 = vpop.f32.mrb[139].mxu1 }
0x13cd   :  { %v6846_v9 = vmul.f32 -1.442695, %v4350_v52 }
0x13ce   :  { %v4354_v3 = vpop.f32.mrb[140].mxu1 }
0x13cf   :  { %8791 = vpow2.f32 %v6846_v9  ;;  %v4355_v18 = vadd.f32 %v6836_v30, %v4354_v3  ;;  %v7951_v39 = vpop.f32.mrb[141].mxu1 }
0x13d1   :  { %v8788_v53 = vpop.eup %8787  ;;  %v6847_v17 = vmul.f32 -1.442695, %v4355_v18 }
0x13d2   :  { %v4394_v36 = vadd.f32 1.0, %v8788_v53  ;;  %v4359_v23 = vpop.f32.mrb[142].mxu1 }
0x13d3   :  { %8793 = vpow2.f32 %v6847_v17  ;;  %v4360_v16 = vadd.f32 %v6836_v30, %v4359_v23  ;;  %v7954_v33 = vpop.f32.mrb[143].mxu1 }
0x13d4   :  { %8795 = vrcp.f32 %v4394_v36 }
0x13d5   :  { %v8790_v19 = vpop.eup %8789  ;;  %v6848_v11 = vmul.f32 -1.442695, %v4360_v16 }
0x13d6   :  { %v4395_v46 = vadd.f32 1.0, %v8790_v19  ;;  %v4364_v20 = vpop.f32.mrb[144].mxu1 }
0x13d7   :  { %8797 = vpow2.f32 %v6848_v11  ;;  %v4365_v58 = vadd.f32 %v6836_v30, %v4364_v20  ;;  %v7957_v41 = vpop.f32.mrb[145].mxu1 }
0x13d8   :  { %8799 = vrcp.f32 %v4395_v46 }
0x13d9   :  { %v8792_v7 = vpop.eup %8791  ;;  %v6849_v10 = vmul.f32 -1.442695, %v4365_v58 }
0x13da   :  { %v4396_v56 = vadd.f32 1.0, %v8792_v7  ;;  %v4369_v13 = vpop.f32.mrb[146].mxu1 }
0x13db   :  { %8801 = vpow2.f32 %v6849_v10  ;;  %v4370_v62 = vadd.f32 %v6836_v30, %v4369_v13  ;;  %v7960_v26 = vpop.f32.mrb[147].mxu1 }
0x13dc   :  { %8803 = vrcp.f32 %v4396_v56  ;;  %v4792_v56 = vld [vmem:[#allocation16 + $0x48] sm:$0xff]  ;;  %v4794_v26 = vld [vmem:[#allocation16 + $0x58] sm:$0xff] }
0x13dd   :  { %v8794_v27 = vpop.eup %8793  ;;  %v6850_v21 = vmul.f32 -1.442695, %v4370_v62 }
0x13de   :  { %v8796_v35 = vpop.eup %8795  ;;  %v4397_v63 = vadd.f32 1.0, %v8794_v27  ;;  %v6851_v27 = vld [vmem:[#allocation13 + $0x2] ss:$0 sm:$0xff] }
0x13df   :  { %v4415_v1 = vmul.f32 %v8796_v35, %v4340_v47  ;;  %8805 = vpow2.f32 %v6850_v21 }
0x13e0   :  { %8807 = vrcp.f32 %v4397_v63 }
0x13e1   :  { %v8798_v57 = vpop.eup %8797  ;;  %7970 = vmatmul.mubr.msk.f32.vlgmr.msra.gmra.mrb[132].mxu0 %vm943_vm5, %v4415_v1 }
0x13e2   :  { %v8800_v9 = vpop.eup %8799  ;;  %v4398_v3 = vadd.f32 1.0, %v8798_v57  ;;  %7972 = vmatprep.mubr.msk.f32.mxu0 %vm9459_vm0, %v11140_v24 }
0x13e3   :  { %v4416_v39 = vmul.f32 %v8800_v9, %v4345_v22 }
0x13e4   :  { %8809 = vrcp.f32 %v4398_v3 }
0x13e5   :  { %v8802_v30 = vpop.eup %8801  ;;  %v8419_v53 = vpack.c.bf16 %v4416_v39, %v4415_v1  ;;  %7973 = vmatmul.mubr.msk.f32.gmra.mrb[134].mxu0 %vm943_vm5, %v4416_v39 }
0x13e6   :  { %v8804_v17 = vpop.eup %8803  ;;  %v4399_v36 = vadd.f32 1.0, %v8802_v30  ;;  %7975 = vmatprep.mubr.msk.f32.mxu0 %vm9459_vm0, %v11140_v24 }
0x13e7   :  { %v4417_v47 = vmul.f32 %v8804_v17, %v4350_v52  ;;  %8420 = vmatpush3.bf16.msra.mxu0 %v8419_v53 }
0x13e8   :  { %8811 = vrcp.f32 %v4399_v36  ;;  %8421 = vmatprep.subr.bf16.mxu0 %v11144_v12 }
0x13e9   :  { %v8806_v23 = vpop.eup %8805  ;;  %7976 = vmatmul.mubr.msk.f32.gmra.mrb[136].mxu0 %vm943_vm5, %v4417_v47 }
0x13ea   :  { %v8808_v33 = vpop.eup %8807  ;;  %v4400_v22 = vadd.f32 1.0, %v8806_v23  ;;  %7978 = vmatprep.mubr.msk.f32.mxu0 %vm9459_vm0, %v11140_v24 }
0x13eb   :  { %v4418_v19 = vmul.f32 %v8808_v33, %v4355_v18 }
0x13ec   :  { %8813 = vrcp.f32 %v4400_v22 }
0x13ed   :  { %v8422_v11 = vpack.c.bf16 %v4418_v19, %v4417_v47  ;;  %7979 = vmatmul.mubr.msk.f32.gmra.mrb[138].mxu0 %vm943_vm5, %v4418_v19 }
0x13ee   :  { %v8810_v46 = vpop.eup %8809  ;;  %7981 = vmatprep.mubr.msk.f32.mxu0 %vm9459_vm0, %v11140_v24 }
0x13ef   :  { %v4419_v52 = vmul.f32 %v8810_v46, %v4360_v16  ;;  %8423 = vmatpush3.bf16.msra.mxu0 %v8422_v11  ;;  %v4791_v16 = vld [vmem:[#allocation16 + $0x40] sm:$0xff] }
0x13f0   :  { %8424 = vmatprep.subr.bf16.mxu0 %v11144_v12  ;;  %v8434_v13 = vpack.c.bf16 %v4792_v56, %v4791_v16 }
0x13f1   :  { %7982 = vmatmul.mubr.msk.f32.gmra.mrb[140].mxu0 %vm943_vm5, %v4419_v52 }
0x13f2   :  { %v8812_v20 = vpop.eup %8811  ;;  %7984 = vmatprep.mubr.msk.f32.mxu0 %vm9459_vm0, %v11140_v24 }
0x13f3   :  { %v4420_v41 = vmul.f32 %v8812_v20, %v4365_v58  ;;  %v4793_v58 = vld [vmem:[#allocation16 + $0x50] sm:$0xff] }
0x13f5   :  { %v8425_v18 = vpack.c.bf16 %v4420_v41, %v4419_v52  ;;  %7985 = vmatmul.mubr.msk.f32.gmra.mrb[142].mxu0 %vm943_vm5, %v4420_v41 }
0x13f6   :  { %v8814_v7 = vpop.eup %8813  ;;  %7987 = vmatprep.mubr.msk.f32.mxu0 %vm9459_vm0, %v11140_v24 }
0x13f7   :  { %v4421_v10 = vmul.f32 %v8814_v7, %v4370_v62  ;;  %8426 = vmatpush3.bf16.msra.mxu0 %v8425_v18  ;;  %v8437_v62 = vpack.c.bf16 %v4794_v26, %v4793_v58 }
0x13f8   :  { %8019 = vmatprep.subr.mxu0 %v11140_v24 }
0x13f9   :  { %7988 = vmatmul.mubr.msk.f32.gmra.mrb[144].mxu0 %vm943_vm5, %v4421_v10 }
0x13fa   :  { %8021 = vmatprep.mubr.msk.f32.mxu0 %vm9459_vm0, %v11140_v24 }
0x13fb   :  { %8020 = vmatpush3.msra.mxu0 %v4421_v10 }
0x13fc   :  { %8433 = vmatprep.subr.bf16.mxu0 %v11144_v12 }
0x13fd   :  { %8022 = vmatmul.mubr.msk.f32.vlgmr.msra.gmra.mrb[146].mxu0 %vm1716_vm6, %v10147_v59 }
0x13fe   :  { %8435 = vmatpush3.bf16.msra.mxu0 %v8434_v13  ;;  %8043 = vmatprep.mubr.msk.f32.mxu0 %vm9459_vm0, %v11140_v24 }
0x13ff   :  { %8436 = vmatprep.subr.bf16.mxu0 %v11144_v12 }
0x1402   :  { %8438 = vmatpush3.bf16.msra.mxu0 %v8437_v62 }
0x1403   :  { %8057 = vmatprep.subr.mxu0 %v11140_v24 }
0x1405   :  { %8044 = vmatmul.mubr.msk.f32.vlgmr.msra.gmra.mrb[148].mxu0 %vm943_vm5, %v10582_v0 }
0x1406   :  { %8059 = vmatprep.mubr.msk.f32.mxu0 %vm9459_vm0, %v11140_v24 }
0x14b4   :  { %v4522_v21 = vpop.f32.mrb[132].mxu0 }
0x14b5   :  { %v4523_v35 = vadd.f32 %v6851_v27, %v4522_v21  ;;  %v7971_v63 = vpop.f32.mrb[133].mxu0 }
0x14b7   :  { %v6859_v1 = vmul.f32 -1.442695, %v4523_v35 }
0x14b8   :  { %v4527_v57 = vpop.f32.mrb[134].mxu0 }
0x14b9   :  { %8815 = vpow2.f32 %v6859_v1  ;;  %v4528_v9 = vadd.f32 %v6851_v27, %v4527_v57  ;;  %v7974_v3 = vpop.f32.mrb[135].mxu0 }
0x14bb   :  { %v6860_v39 = vmul.f32 -1.442695, %v4528_v9 }
0x14bc   :  { %v4532_v30 = vpop.f32.mrb[136].mxu0 }
0x14bd   :  { %8817 = vpow2.f32 %v6860_v39  ;;  %v4533_v53 = vadd.f32 %v6851_v27, %v4532_v30  ;;  %v7977_v17 = vpop.f32.mrb[137].mxu0 }
0x14be   :  { %v6866_v17 = vld [vmem:[#allocation14 + $0x2] ss:$0 sm:$0xff] }
0x14bf   :  { %v6861_v36 = vmul.f32 -1.442695, %v4533_v53 }
0x14c0   :  { %v4537_v47 = vpop.f32.mrb[138].mxu0 }
0x14c1   :  { %8819 = vpow2.f32 %v6861_v36  ;;  %v4538_v23 = vadd.f32 %v6851_v27, %v4537_v47  ;;  %v7980_v33 = vpop.f32.mrb[139].mxu0 }
0x14c3   :  { %v8816_v22 = vpop.eup %8815  ;;  %v6862_v19 = vmul.f32 -1.442695, %v4538_v23 }
0x14c4   :  { %v4577_v11 = vadd.f32 1.0, %v8816_v22  ;;  %v4542_v46 = vpop.f32.mrb[140].mxu0 }
0x14c5   :  { %8821 = vpow2.f32 %v6862_v19  ;;  %v4543_v52 = vadd.f32 %v6851_v27, %v4542_v46  ;;  %v7983_v20 = vpop.f32.mrb[141].mxu0 }
0x14c6   :  { %8823 = vrcp.f32 %v4577_v11 }
0x14c7   :  { %v8818_v41 = vpop.eup %8817  ;;  %v6863_v18 = vmul.f32 -1.442695, %v4543_v52 }
0x14c8   :  { %v4578_v7 = vadd.f32 1.0, %v8818_v41  ;;  %v4547_v10 = vpop.f32.mrb[142].mxu0 }
0x14c9   :  { %8825 = vpow2.f32 %v6863_v18  ;;  %v4548_v16 = vadd.f32 %v6851_v27, %v4547_v10  ;;  %v7986_v56 = vpop.f32.mrb[143].mxu0 }
0x14ca   :  { %8827 = vrcp.f32 %v4578_v7 }
0x14cb   :  { %v8820_v13 = vpop.eup %8819  ;;  %v6864_v58 = vmul.f32 -1.442695, %v4548_v16 }
0x14cc   :  { %v4579_v26 = vadd.f32 1.0, %v8820_v13  ;;  %v4552_v62 = vpop.f32.mrb[144].mxu0 }
0x14cd   :  { %8829 = vpow2.f32 %v6864_v58  ;;  %v4553_v21 = vadd.f32 %v6851_v27, %v4552_v62  ;;  %v7989_v63 = vpop.f32.mrb[145].mxu0 }
0x14ce   :  { %8831 = vrcp.f32 %v4579_v26 }
0x14cf   :  { %v8822_v1 = vpop.eup %8821  ;;  %v6865_v57 = vmul.f32 -1.442695, %v4553_v21 }
0x14d0   :  { %v8824_v3 = vpop.eup %8823  ;;  %v4580_v39 = vadd.f32 1.0, %v8822_v1  ;;  %v10787_v30 = vpop.f32.mrb[146].mxu0 }
0x14d1   :  { %v4598_v36 = vmul.f32 %v8824_v3, %v4523_v35  ;;  %8833 = vpow2.f32 %v6865_v57  ;;  %v8023_v47 = vpop.f32.mrb[147].mxu0 }
0x14d2   :  { %8835 = vrcp.f32 %v4580_v39 }
0x14d3   :  { %v8826_v33 = vpop.eup %8825  ;;  %v4613_v22 = vmul.f32 %v6866_v17, %v4598_v36 }
0x14d4   :  { %v8828_v19 = vpop.eup %8827  ;;  %v4581_v11 = vadd.f32 1.0, %v8826_v33 }
0x14d5   :  { %v4599_v46 = vmul.f32 %v8828_v19, %v4528_v9  ;;  %v4620_v27 = vsel %vm943_vm5, %v4613_v22, 0.0 }
0x14d6   :  { %8837 = vrcp.f32 %v4581_v11  ;;  %4621 = vadd.xlane.f32.xlu0 %v4620_v27 }
0x14d7   :  { %v8830_v20 = vpop.eup %8829  ;;  %v4614_v41 = vmul.f32 %v6866_v17, %v4599_v46 }
0x14d8   :  { %v8832_v18 = vpop.eup %8831  ;;  %v4582_v7 = vadd.f32 1.0, %v8830_v20  ;;  %v10790_v10 = vpop.f32.mrb[148].mxu0 }
0x14d9   :  { %v4600_v56 = vmul.f32 %v8832_v18, %v4533_v53  ;;  %v8045_v35 = vpop.f32.mrb[149].mxu0  ;;  %v4623_v13 = vsel %vm943_vm5, %v4614_v41, 0.0 }
0x14da   :  { %8839 = vrcp.f32 %v4582_v7  ;;  %4624 = vadd.xlane.f32.xlu1 %v4623_v13 }
0x14db   :  { %v8834_v58 = vpop.eup %8833  ;;  %v4615_v26 = vmul.f32 %v6866_v17, %v4600_v56 }
0x14dc   :  { %v8836_v62 = vpop.eup %8835  ;;  %v4583_v9 = vadd.f32 1.0, %v8834_v58 }
0x14dd   :  { %v4601_v63 = vmul.f32 %v8836_v62, %v4538_v23  ;;  %v4626_v1 = vsel %vm943_vm5, %v4615_v26, 0.0 }
0x14de   :  { %8841 = vrcp.f32 %v4583_v9  ;;  %4627 = vadd.xlane.f32.xlu1 %v4626_v1  ;;  %v4796_v9 = vld [vmem:[#allocation17 + $0x40] sm:$0xff]  ;;  %v4798_v1 = vld [vmem:[#allocation17 + $0x50] sm:$0xff] }
0x14df   :  { %v4616_v57 = vmul.f32 %v6866_v17, %v4601_v63  ;;  %v4797_v63 = vld [vmem:[#allocation17 + $0x48] sm:$0xff] }
0x14e0   :  { %v8838_v3 = vpop.eup %8837 }
0x14e1   :  { %v4602_v39 = vmul.f32 %v8838_v3, %v4543_v52  ;;  %v4629_v36 = vsel %vm943_vm5, %v4616_v57, 0.0  ;;  %v4799_v57 = vld [vmem:[#allocation17 + $0x58] sm:$0xff] }
0x14e2   :  { %4630 = vadd.xlane.f32.xlu1 %v4629_v36  ;;  %v4967_v36 = vld [vmem:[#allocation20 + $0x58] sm:$0xff] }
0x14e3   :  { %v4617_v53 = vmul.f32 %v6866_v17, %v4602_v39  ;;  %v4966_v39 = vld [vmem:[#allocation20 + $0x50] sm:$0xff] }
0x14e4   :  { %v8840_v47 = vpop.eup %8839 }
0x14e5   :  { %v4603_v33 = vmul.f32 %v8840_v47, %v4548_v16  ;;  %v4632_v22 = vsel %vm943_vm5, %v4617_v53, 0.0  ;;  %v8443_v53 = vpack.c.bf16 %v4967_v36, %v4966_v39  ;;  %v6874_v36 = vld [vmem:[#allocation22 + $0x2] ss:$0 sm:$0xff] }
0x14e6   :  { %4633 = vadd.xlane.f32.xlu1 %v4632_v22 }
0x14e7   :  { %v4618_v19 = vmul.f32 %v6866_v17, %v4603_v33 }
0x14e8   :  { %v8842_v11 = vpop.eup %8841 }
0x14e9   :  { %v4604_v46 = vmul.f32 %v8842_v11, %v4553_v21  ;;  %v4635_v23 = vsel %vm943_vm5, %v4618_v19, 0.0 }
0x14ea   :  { %4636 = vadd.xlane.f32.xlu1 %v4635_v23 }
0x14eb   :  { %v4619_v27 = vmul.f32 %v6866_v17, %v4604_v46 }
0x14ed   :  { %v4638_v20 = vsel %vm943_vm5, %v4619_v27, 0.0 }
0x14ee   :  { %4639 = vadd.xlane.f32.xlu1 %v4638_v20 }
0x14ff   :  { %4943 = vrot.lane.b32.xlu1 %v9900_v60, %s9464_s14 }
0x1563   :  { %v4622_v52 = vpop.xlane.xlu0 %4621 }
0x1564   :  { %v4641_v16 = vmul.f32 %v4622_v52, %v10586_v28 }
0x1567   :  { %v4625_v41 = vpop.xlane.xlu1 %4624 }
0x1568   :  { %v4642_v18 = vmul.f32 %v4625_v41, %v10590_v15 }
0x156a   :  { %v8410_v7 = vpack.c.bf16 %v4642_v18, %v4641_v16  ;;  %v6871_v16 = vld [vmem:[#allocation19 + $0x2] ss:$0 sm:$0xff] }
0x156b   :  { %v4628_v56 = vpop.xlane.xlu1 %4627 }
0x156c   :  { %8411 = vmatpush3.bf16.msra.mxu1 %v8410_v7  ;;  %v4643_v17 = vmul.f32 %v4628_v56, %v10594_v34 }
0x156d   :  { %8412 = vmatprep.subr.bf16.mxu1 %v11144_v12 }
0x156f   :  { %v4631_v21 = vpop.xlane.xlu1 %4630 }
0x1570   :  { %v4644_v35 = vmul.f32 %v4631_v21, %v10599_v5  ;;  %v8428_v5 = vpack.c.bf16 %v4797_v63, %v4796_v9 }
0x1572   :  { %v8413_v13 = vpack.c.bf16 %v4644_v35, %v4643_v17 }
0x1573   :  { %v4634_v58 = vpop.xlane.xlu1 %4633 }
0x1574   :  { %8414 = vmatpush3.bf16.msra.mxu1 %v8413_v13  ;;  %v4645_v28 = vmul.f32 %v4634_v58, %v10602_v14  ;;  %v8431_v14 = vpack.c.bf16 %v4799_v57, %v4798_v1  ;;  %v6890_v1 = vld [vmem:[%s11132_s18 + $0x68] sm:$0xff] }
0x1575   :  { %8415 = vmatprep.subr.bf16.mxu1 %v11144_v12 }
0x1577   :  { %v4637_v60 = vpop.xlane.xlu1 %4636 }
0x1578   :  { %v4646_v15 = vmul.f32 %v4637_v60, %v10606_v61  ;;  %v4964_v61 = vld [vmem:[#allocation20 + $0x40] sm:$0xff] }
0x157a   :  { %v8416_v26 = vpack.c.bf16 %v4646_v15, %v4645_v28 }
0x157b   :  { %v4640_v62 = vpop.xlane.xlu1 %4639 }
0x157c   :  { %8417 = vmatpush3.bf16.msra.mxu1 %v8416_v26  ;;  %v4647_v34 = vmul.f32 %v4640_v62, %v10622_v29  ;;  %v4965_v29 = vld [vmem:[#allocation20 + $0x48] sm:$0xff] }
0x157d   :  { %8002 = vmatprep.subr.mxu1 %v11140_v24  ;;  %v8440_v3 = vpack.c.bf16 %v4965_v29, %v4964_v61  ;;  %v6891_v61 = vld [vmem:[%s11132_s18 + $0x70] sm:$0xff]  ;;  %v6892_v29 = vld [vmem:[%s11132_s18 + $0x78] sm:$0xff] }
0x157f   :  { %v4944_v52 = vpop.permute.xlu1 %4943 }
0x1580   :  { %8003 = vmatpush3.msra.mxu1 %v4647_v34 }
0x1581   :  { %8005 = vmatmul.mubr.msk.f32.vlgmr.msra.gmra.mrb[148].mxu1 %vm1716_vm6, %v10147_v59  ;;  %8427 = vmatprep.subr.bf16.mxu1 %v11144_v12 }
0x1582   :  { %8429 = vmatpush3.bf16.msra.mxu1 %v8428_v5  ;;  %8032 = vmatprep.mubr.msk.f32.mxu1 %vm9459_vm0, %v11140_v24  ;;  %v6889_v5 = vld [vmem:[%s11132_s18 + $0x60] sm:$0xff] }
0x1583   :  { %8430 = vmatprep.subr.bf16.mxu1 %v11144_v12 }
0x1586   :  { %8432 = vmatpush3.bf16.msra.mxu1 %v8431_v14  ;;  %v8446_v14 = vpack.c.bf16 %v6890_v1, %v6889_v5 }
0x1587   :  { %8439 = vmatprep.subr.bf16.mxu1 %v11144_v12 }
0x1589   :  { %8033 = vmatmul.mubr.msk.f32.vlgmr.msra.gmra.mrb[150].mxu1 %vm943_vm5, %v10787_v30 }
0x158a   :  { %8054 = vmatprep.mubr.msk.f32.mxu1 %vm9459_vm0, %v11140_v24  ;;  %8441 = vmatpush3.bf16.msra.mxu1 %v8440_v3  ;;  %v8449_v3 = vpack.c.bf16 %v6892_v29, %v6891_v61 }
0x158b   :  { %8442 = vmatprep.subr.bf16.mxu1 %v11144_v12 }
0x158e   :  { %8444 = vmatpush3.bf16.msra.mxu1 %v8443_v53 }
0x158f   :  { %8080 = vmatprep.subr.mxu1 %v11140_v24 }
0x1654   :  { %v4714_v47 = vpop.f32.mrb[148].mxu1 }
0x1655   :  { %v4788_v33 = vmul.f32 %v4714_v47, %v10181_v25  ;;  %v8006_v22 = vpop.f32.mrb[149].mxu1 }
0x1657   :  { %v4789_v30 = vadd.f32 %v4788_v33, %v10513_v40 }
0x1659   :  { %v5051_v19 = vsel %vm644_vm4, %v4789_v30, inf }
0x165a   :  { %v5052_v11 = vrot.slane %v5051_v19, 4 }
0x165c   :  { %v5053_v46 = vmin.f32 %v5051_v19, %v5052_v11  ;;  %v4869_v23 = vpop.f32.mrb[150].mxu1 }
0x165d   :  { %v4940_v27 = vadd.f32 %v10790_v10, %v4869_v23  ;;  %v8034_v20 = vpop.f32.mrb[151].mxu1 }
0x165e   :  { %v5054_v41 = vrot.slane %v5053_v46, 2 }
0x165f   :  { %v4946_v18 = vadd.f32 %v4944_v52, %v4940_v27 }
0x1660   :  { %v5055_v7 = vmin.f32 %v5053_v46, %v5054_v41 }
0x1661   :  { %v4955_v56 = vadd.f32 %v6871_v16, %v4946_v18 }
0x1662   :  { %v5056_v21 = vrot.slane %v5055_v7, 1 }
0x1663   :  { %v6872_v17 = vmul.f32 -1.442695, %v4955_v56 }
0x1664   :  { %v5057_v25 = vmin.f32 %v5055_v7, %v5056_v21 }
0x1665   :  { %8843 = vpow2.f32 %v6872_v17 }
0x1666   :  { %v5058_v35 = vsub.f32 %v4789_v30, %v5057_v25 }
0x1668   :  { %v5059_v40 = vsel %vm644_vm4, %v5058_v35, -inf }
0x1669   :  { %v5060_v13 = vrot.slane %v5059_v40, 4 }
0x166b   :  { %v5061_v58 = vmax.f32 %v5059_v40, %v5060_v13 }
0x166d   :  { %v5062_v60 = vrot.slane %v5061_v58, 2 }
0x166f   :  { %v8844_v10 = vpop.eup %8843  ;;  %v5063_v28 = vmax.f32 %v5061_v58, %v5062_v60 }
0x1670   :  { %v4959_v15 = vadd.f32 1.0, %v8844_v10 }
0x1671   :  { %v5064_v26 = vrot.slane %v5063_v28, 1 }
0x1672   :  { %8845 = vrcp.f32 %v4959_v15 }
0x1673   :  { %v5065_v62 = vmax.f32 %v5063_v28, %v5064_v26 }
0x1675   :  { %8847 = vrcp.f32 %v5065_v62 }
0x167c   :  { %v8846_v9 = vpop.eup %8845 }
0x167d   :  { %v4962_v63 = vmul.f32 %v8846_v9, %v4955_v56 }
0x167f   :  { %v8848_v34 = vpop.eup %8847  ;;  %8055 = vmatmul.mubr.msk.f32.vlgmr.msra.gmra.mrb[152].mxu1 %vm943_vm5, %v4962_v63 }
0x1680   :  { %v5067_v57 = vmul.f32 %v8848_v34, %v5058_v35  ;;  %8082 = vmatprep.mubr.msk.f32.mxu1 %vm9459_vm0, %v11140_v24 }
0x1682   :  { %8058 = vmatpush3.msra.mxu0 %v5067_v57  ;;  %8081 = vmatpush3.msra.mxu1 %v5067_v57 }
0x1683   :  { %8060 = vmatmul.mubr.msk.f32.vlgmr.msra.gmra.mrb[150].mxu0 %vm427_vm2, %v9798_v31  ;;  %8083 = vmatmul.mubr.msk.f32.vlgmr.msra.gmra.mrb[154].mxu1 %vm427_vm2, %v9800_v32 }
0x1684   :  { %8062 = vmatprep.mubr.msk.f32.mxu0 %vm9459_vm0, %v11140_v24  ;;  %8085 = vmatprep.mubr.msk.f32.mxu1 %vm9459_vm0, %v11140_v24 }
0x1685   :  { %8445 = vmatprep.subr.bf16.mxu0 %v11144_v12  ;;  %8137 = vmatprep.subr.mxu1 %v11140_v24 }
0x1686   :  { %8447 = vmatpush3.bf16.msra.mxu0 %v8446_v14 }
0x1687   :  { %8063 = vmatmul.mubr.msk.f32.gmra.mrb[152].mxu0 %vm427_vm2, %v9812_v37  ;;  %8086 = vmatmul.mubr.msk.f32.gmra.mrb[156].mxu1 %vm427_vm2, %v9814_v38 }
0x1688   :  { %8065 = vmatprep.mubr.msk.f32.mxu0 %vm9459_vm0, %v11140_v24  ;;  %8088 = vmatprep.mubr.msk.f32.mxu1 %vm9459_vm0, %v11140_v24 }
0x1689   :  { %8448 = vmatprep.subr.bf16.mxu0 %v11144_v12 }
0x168a   :  { %8450 = vmatpush3.bf16.msra.mxu0 %v8449_v3 }
0x168b   :  { %8066 = vmatmul.mubr.msk.f32.gmra.mrb[154].mxu0 %vm427_vm2, %v9828_v42  ;;  %8089 = vmatmul.mubr.msk.f32.gmra.mrb[158].mxu1 %vm427_vm2, %v9830_v43 }
0x168c   :  { %8068 = vmatprep.mubr.msk.f32.mxu0 %vm9459_vm0, %v11140_v24  ;;  %8091 = vmatprep.mubr.msk.f32.mxu1 %vm9459_vm0, %v11140_v24 }
0x168d   :  { %8114 = vmatprep.subr.mxu0 %v11140_v24 }
0x168f   :  { %8069 = vmatmul.mubr.msk.f32.gmra.mrb[156].mxu0 %vm427_vm2, %v9841_v44  ;;  %8092 = vmatmul.mubr.msk.f32.gmra.mrb[160].mxu1 %vm427_vm2, %v9843_v45 }
0x1690   :  { %8071 = vmatprep.mubr.msk.f32.mxu0 %vm9459_vm0, %v11140_v24  ;;  %8094 = vmatprep.mubr.msk.f32.mxu1 %vm9459_vm0, %v11140_v24 }
0x1693   :  { %8072 = vmatmul.mubr.msk.f32.gmra.mrb[158].mxu0 %vm427_vm2, %v9855_v48  ;;  %8095 = vmatmul.mubr.msk.f32.gmra.mrb[162].mxu1 %vm427_vm2, %v9857_v49 }
0x1694   :  { %8074 = vmatprep.mubr.msk.f32.mxu0 %vm9459_vm0, %v11140_v24  ;;  %8097 = vmatprep.mubr.msk.f32.mxu1 %vm9459_vm0, %v11140_v24 }
0x1697   :  { %8075 = vmatmul.mubr.msk.f32.gmra.mrb[160].mxu0 %vm427_vm2, %v9867_v50  ;;  %8098 = vmatmul.mubr.msk.f32.gmra.mrb[164].mxu1 %vm427_vm2, %v9869_v51 }
0x1698   :  { %8077 = vmatprep.mubr.msk.f32.mxu0 %vm9459_vm0, %v11140_v24  ;;  %8100 = vmatprep.mubr.msk.f32.mxu1 %vm9459_vm0, %v11140_v24 }
0x169b   :  { %8078 = vmatmul.mubr.msk.f32.gmra.mrb[162].mxu0 %vm427_vm2, %v9881_v54  ;;  %8101 = vmatmul.mubr.msk.f32.gmra.mrb[166].mxu1 %vm427_vm2, %v9883_v55 }
0x169c   :  { %8111 = vmatprep.mubr.msk.f32.mxu0 %vm9459_vm0, %v11140_v24  ;;  %8139 = vmatprep.mubr.msk.f32.mxu1 %vm9459_vm0, %v11140_v24 }
0x1752   :  { %v5037_v39 = vpop.f32.mrb[152].mxu1 }
0x1753   :  { %v5041_v53 = vadd.f32 %v5037_v39, %v10582_v0  ;;  %v8056_v47 = vpop.f32.mrb[153].mxu1  ;;  %v11147_v39 = vld [vmem:[#allocation63_spill] sm:$0xff] }
0x1755   :  { %v10896_v33 = vadd.f32 %v6874_v36, %v5041_v53  ;;  %v11148_v36 = vld [vmem:[#allocation64_spill] sm:$0xff] }
0x1756   :  { %v5134_v22 = vpop.f32.mrb[150].mxu0  ;;  %v5234_v30 = vpop.f32.mrb[154].mxu1 }
0x1757   :  { %8112 = vmatmul.mubr.msk.f32.vlgmr.msra.gmra.mrb[164].mxu0 %vm943_vm5, %v10896_v33  ;;  %v5268_v19 = vsub.f32 %v5134_v22, %v5234_v30  ;;  %v8061_v11 = vpop.f32.mrb[151].mxu0  ;;  %v8084_v46 = vpop.f32.mrb[155].mxu1 }
0x1758   :  { %8116 = vmatprep.mubr.msk.f32.mxu0 %vm9459_vm0, %v11140_v24 }
0x1759   :  { %v5275_v23 = vmul.f32 %v5268_v19, %v5268_v19 }
0x175a   :  { %v5139_v27 = vpop.f32.mrb[152].mxu0  ;;  %v5239_v20 = vpop.f32.mrb[156].mxu1 }
0x175b   :  { %v10902_v52 = vsub.f32 %v5139_v27, %v5239_v20  ;;  %v8064_v0 = vpop.f32.mrb[153].mxu0  ;;  %v8087_v41 = vpop.f32.mrb[157].mxu1  ;;  %v5282_v16 = vsel %vm644_vm4, %v5275_v23, 0.0  ;;  %v6918_v23 = vld [vmem:[%s11137_s3 + $0x68] sm:$0xff] }
0x175c   :  { %5283 = vadd.xlane.f32.xlu1 %v5282_v16  ;;  %v6920_v0 = vld [vmem:[%s11137_s3 + $0x78] sm:$0xff] }
0x175e   :  { %v5144_v18 = vpop.f32.mrb[154].mxu0  ;;  %v5244_v7 = vpop.f32.mrb[158].mxu1 }
0x175f   :  { %v5270_v56 = vsub.f32 %v5144_v18, %v5244_v7  ;;  %v8067_v21 = vpop.f32.mrb[155].mxu0  ;;  %v8090_v17 = vpop.f32.mrb[159].mxu1 }
0x1761   :  { %v5277_v25 = vmul.f32 %v5270_v56, %v5270_v56 }
0x1762   :  { %v5249_v35 = vpop.f32.mrb[160].mxu1  ;;  %v5149_v40 = vpop.f32.mrb[156].mxu0 }
0x1763   :  { %v5271_v13 = vsub.f32 %v5149_v40, %v5249_v35  ;;  %v8070_v58 = vpop.f32.mrb[157].mxu0  ;;  %v8093_v60 = vpop.f32.mrb[161].mxu1  ;;  %v5288_v10 = vsel %vm644_vm4, %v5277_v25, 0.0 }
0x1764   :  { %5289 = vadd.xlane.f32.xlu1 %v5288_v10  ;;  %v6908_v58 = vld [vmem:[#allocation5 + $0x3] ss:$0 sm:$0xff] }
0x1766   :  { %v5154_v28 = vpop.f32.mrb[158].mxu0  ;;  %v5254_v15 = vpop.f32.mrb[162].mxu1 }
0x1767   :  { %v5272_v26 = vsub.f32 %v5154_v28, %v5254_v15  ;;  %v8073_v62 = vpop.f32.mrb[159].mxu0  ;;  %v8096_v9 = vpop.f32.mrb[163].mxu1 }
0x1769   :  { %v5279_v63 = vmul.f32 %v5272_v26, %v5272_v26 }
0x176a   :  { %v5159_v34 = vpop.f32.mrb[160].mxu0  ;;  %v5259_v5 = vpop.f32.mrb[164].mxu1 }
0x176b   :  { %v5273_v1 = vsub.f32 %v5159_v34, %v5259_v5  ;;  %v5294_v57 = vsel %vm644_vm4, %v5279_v63, 0.0  ;;  %v8076_v14 = vpop.f32.mrb[161].mxu0  ;;  %v8099_v61 = vpop.f32.mrb[165].mxu1  ;;  %v10996_v34 = vld [vmem:[#allocation8 + $0x3] ss:$0 sm:$0xff] }
0x176c   :  { %5295 = vadd.xlane.f32.xlu1 %v5294_v57 }
0x176d   :  { %v5280_v29 = vmul.f32 %v5273_v1, %v5273_v1 }
0x176e   :  { %v5164_v53 = vpop.f32.mrb[162].mxu0  ;;  %v5264_v22 = vpop.f32.mrb[166].mxu1 }
0x176f   :  { %v5297_v3 = vsel %vm644_vm4, %v5280_v29, 0.0  ;;  %v8079_v47 = vpop.f32.mrb[163].mxu0  ;;  %v5274_v30 = vsub.f32 %v5164_v53, %v5264_v22 }
0x1770   :  { %5298 = vadd.xlane.f32.xlu1 %v5297_v3 }
0x1781   :  { %5609 = vrot.lane.b32.xlu1 %v9911_v2, %s9464_s14  ;;  %v8102_v2 = vpop.f32.mrb[167].mxu1 }
0x1785   :  { %5611 = vrot.lane.b32.xlu1 %v9915_v4, %s9464_s14 }
0x1789   :  { %5613 = vrot.lane.b32.xlu1 %v9917_v6, %s9464_s14 }
0x178d   :  { %5615 = vrot.lane.b32.xlu1 %v9919_v8, %s9464_s14 }
0x1791   :  { %5617 = vrot.lane.b32.xlu1 %v11147_v39, %s9464_s14 }
0x1795   :  { %5619 = vrot.lane.b32.xlu1 %v11148_v36, %s9464_s14 }
0x17e9   :  { %v5284_v21 = vpop.xlane.xlu1 %5283 }
0x17ea   :  { %v5593_v28 = vmul.f32 %v6908_v58, %v5284_v21 }
0x17f1   :  { %v5290_v17 = vpop.xlane.xlu1 %5289 }
0x17f2   :  { %v5595_v36 = vmul.f32 %v6908_v58, %v5290_v17 }
0x17f9   :  { %v5296_v25 = vpop.xlane.xlu1 %5295 }
0x17fd   :  { %v5299_v35 = vpop.xlane.xlu1 %5298 }
0x182a   :  { %v5377_v19 = vpop.f32.mrb[164].mxu0 }
0x182b   :  { %5382 = vrot.lane.b32.xlu0 %v5377_v19, %s9461_s30  ;;  %v8113_v4 = vpop.f32.mrb[165].mxu0  ;;  %8138 = vmatpush3.msra.mxu1 %v5377_v19 }
0x182c   :  { %8140 = vmatmul.mubr.msk.f32.vlgmr.msra.gmra.mrb[168].mxu1 %vm427_vm2, %v9798_v31  ;;  %8457 = vmatprep.subr.bf16.mxu1 %v11144_v12  ;;  %v5276_v31 = vmul.f32 %v10902_v52, %v10902_v52 }
0x182d   :  { %8142 = vmatprep.mubr.msk.f32.mxu1 %vm9459_vm0, %v11140_v24 }
0x1830   :  { %8143 = vmatmul.mubr.msk.f32.gmra.mrb[170].mxu1 %vm427_vm2, %v9812_v37  ;;  %v5278_v37 = vmul.f32 %v5271_v13, %v5271_v13  ;;  %v5610_v13 = vpop.permute.xlu1 %5609 }
0x1831   :  { %8145 = vmatprep.mubr.msk.f32.mxu1 %vm9459_vm0, %v11140_v24 }
0x1834   :  { %8146 = vmatmul.mubr.msk.f32.gmra.mrb[172].mxu1 %vm427_vm2, %v9828_v42  ;;  %v5285_v42 = vsel %vm644_vm4, %v5276_v31, 0.0  ;;  %v5612_v62 = vpop.permute.xlu1 %5611 }
0x1835   :  { %8148 = vmatprep.mubr.msk.f32.mxu1 %vm9459_vm0, %v11140_v24 }
0x1838   :  { %8149 = vmatmul.mubr.msk.f32.gmra.mrb[174].mxu1 %vm427_vm2, %v9841_v44  ;;  %v5291_v44 = vsel %vm644_vm4, %v5278_v37, 0.0  ;;  %v5614_v2 = vpop.permute.xlu1 %5613 }
0x1839   :  { %8151 = vmatprep.mubr.msk.f32.mxu1 %vm9459_vm0, %v11140_v24 }
0x183c   :  { %8152 = vmatmul.mubr.msk.f32.gmra.mrb[176].mxu1 %vm427_vm2, %v9855_v48  ;;  %v11149_v48 = vld [vmem:[#allocation61_spill] sm:$0xff] }
0x183d   :  { %8154 = vmatprep.mubr.msk.f32.mxu1 %vm9459_vm0, %v11140_v24 }
0x1840   :  { %8155 = vmatmul.mubr.msk.f32.gmra.mrb[178].mxu1 %vm427_vm2, %v9867_v50  ;;  %v5281_v50 = vmul.f32 %v5274_v30, %v5274_v30 }
0x1841   :  { %8157 = vmatprep.mubr.msk.f32.mxu1 %vm9459_vm0, %v11140_v24 }
0x1842   :  { %v5300_v6 = vsel %vm644_vm4, %v5281_v50, 0.0 }
0x1844   :  { %8158 = vmatmul.mubr.msk.f32.gmra.mrb[180].mxu1 %vm427_vm2, %v9881_v54 }
0x1845   :  { %8203 = vmatprep.mubr.msk.f32.mxu1 %vm9459_vm0, %v11140_v24 }
0x184a   :  { %5286 = vadd.xlane.f32.xlu0 %v5285_v42 }
0x184e   :  { %5292 = vadd.xlane.f32.xlu0 %v5291_v44 }
0x1864   :  { %5607 = vrot.lane.b32.xlu0 %v11149_v48, %s9464_s14 }
0x1883   :  { %5301 = vadd.xlane.f32.xlu0 %v5300_v6 }
0x189d   :  { %v5383_v54 = vpop.permute.xlu0 %5382 }
0x189e   :  { %8115 = vmatpush3.msra.mxu0 %v5383_v54 }
0x189f   :  { %8117 = vmatmul.mubr.msk.f32.vlgmr.msra.gmra.mrb[166].mxu0 %vm427_vm2, %v9800_v32  ;;  %8451 = vmatprep.subr.bf16.mxu0 %v11144_v12 }
0x18a0   :  { %8119 = vmatprep.mubr.msk.f32.mxu0 %vm9459_vm0, %v11140_v24 }
0x18a3   :  { %8120 = vmatmul.mubr.msk.f32.gmra.mrb[168].mxu0 %vm427_vm2, %v9814_v38 }
0x18a4   :  { %8122 = vmatprep.mubr.msk.f32.mxu0 %vm9459_vm0, %v11140_v24 }
0x18a7   :  { %8123 = vmatmul.mubr.msk.f32.gmra.mrb[170].mxu0 %vm427_vm2, %v9830_v43 }
0x18a8   :  { %8125 = vmatprep.mubr.msk.f32.mxu0 %vm9459_vm0, %v11140_v24 }
0x18ab   :  { %8126 = vmatmul.mubr.msk.f32.gmra.mrb[172].mxu0 %vm427_vm2, %v9843_v45 }
0x18ac   :  { %8128 = vmatprep.mubr.msk.f32.mxu0 %vm9459_vm0, %v11140_v24 }
0x18af   :  { %8129 = vmatmul.mubr.msk.f32.gmra.mrb[174].mxu0 %vm427_vm2, %v9857_v49 }
0x18b0   :  { %8131 = vmatprep.mubr.msk.f32.mxu0 %vm9459_vm0, %v11140_v24 }
0x18b3   :  { %8132 = vmatmul.mubr.msk.f32.gmra.mrb[176].mxu0 %vm427_vm2, %v9869_v51  ;;  %v6917_v51 = vld [vmem:[%s11137_s3 + $0x60] sm:$0xff] }
0x18b4   :  { %8134 = vmatprep.mubr.msk.f32.mxu0 %vm9459_vm0, %v11140_v24  ;;  %v8452_v20 = vpack.c.bf16 %v6918_v23, %v6917_v51 }
0x18b6   :  { %8453 = vmatpush3.bf16.msra.mxu0 %v8452_v20 }
0x18b7   :  { %8135 = vmatmul.mubr.msk.f32.gmra.mrb[178].mxu0 %vm427_vm2, %v9883_v55  ;;  %8454 = vmatprep.subr.bf16.mxu0 %v11144_v12  ;;  %v6919_v55 = vld [vmem:[%s11137_s3 + $0x70] sm:$0xff] }
0x18b8   :  { %8168 = vmatprep.mubr.msk.f32.mxu0 %vm9459_vm0, %v11140_v24  ;;  %v8455_v16 = vpack.c.bf16 %v6920_v0, %v6919_v55 }
0x18ba   :  { %8456 = vmatpush3.bf16.msra.mxu0 %v8455_v16 }
0x18bb   :  { %8484 = vmatprep.subr.bf16.mxu0 %v11144_v12 }
0x18d7   :  { %v5287_v40 = vpop.xlane.xlu0 %5286 }
0x18d8   :  { %v5594_v1 = vmul.f32 %v6908_v58, %v5287_v40 }
0x18db   :  { %v5293_v60 = vpop.xlane.xlu0 %5292 }
0x18dc   :  { %v5596_v37 = vmul.f32 %v6908_v58, %v5293_v60 }
0x18df   :  { %v5608_v63 = vpop.permute.xlu0 %5607 }
0x18ff   :  { %v5551_v32 = vpop.f32.mrb[168].mxu1 }
0x1900   :  { %v8141_v38 = vpop.f32.mrb[169].mxu1 }
0x1903   :  { %v5556_v43 = vpop.f32.mrb[170].mxu1 }
0x1904   :  { %v8144_v45 = vpop.f32.mrb[171].mxu1 }
0x1907   :  { %v5561_v49 = vpop.f32.mrb[172].mxu1 }
0x1908   :  { %v8147_v8 = vpop.f32.mrb[173].mxu1 }
0x190b   :  { %v5566_v11 = vpop.f32.mrb[174].mxu1 }
0x190c   :  { %v8150_v46 = vpop.f32.mrb[175].mxu1 }
0x190f   :  { %v5571_v27 = vpop.f32.mrb[176].mxu1 }
0x1910   :  { %v8153_v52 = vpop.f32.mrb[177].mxu1  ;;  %v5302_v21 = vpop.xlane.xlu0 %5301 }
0x1911   :  { %v5598_v52 = vmul.f32 %v6908_v58, %v5299_v35  ;;  %v5599_v60 = vmul.f32 %v6908_v58, %v5302_v21 }
0x1913   :  { %v10991_v41 = vpop.f32.mrb[178].mxu1 }
0x1914   :  { %v8156_v18 = vpop.f32.mrb[179].mxu1 }
0x1917   :  { %v10994_v7 = vpop.f32.mrb[180].mxu1 }
0x1918   :  { %v8159_v56 = vpop.f32.mrb[181].mxu1 }
0x1972   :  { %v5451_v10 = vpop.f32.mrb[166].mxu0 }
0x1973   :  { %v5552_v15 = vadd.f32 %v5551_v32, %v5451_v10  ;;  %v8118_v26 = vpop.f32.mrb[167].mxu0  ;;  %v5616_v32 = vpop.permute.xlu1 %5615 }
0x1975   :  { %v5600_v9 = vadd.f32 %v5593_v28, %v5552_v15 }
0x1976   :  { %v5456_v5 = vpop.f32.mrb[168].mxu0 }
0x1977   :  { %v5628_v57 = vadd.f32 %v5608_v63, %v5600_v9  ;;  %v5557_v14 = vadd.f32 %v5556_v43, %v5456_v5  ;;  %v8121_v61 = vpop.f32.mrb[169].mxu0  ;;  %v5597_v43 = vmul.f32 %v6908_v58, %v5296_v25  ;;  %v5618_v56 = vpop.permute.xlu1 %5617 }
0x1979   :  { %v10999_v29 = vadd.f32 %v10996_v34, %v5628_v57  ;;  %v5601_v3 = vadd.f32 %v5594_v1, %v5557_v14 }
0x197a   :  { %v5461_v39 = vpop.f32.mrb[170].mxu0 }
0x197b   :  { %v6910_v53 = vmul.f32 -1.442695, %v10999_v29  ;;  %v5629_v47 = vadd.f32 %v5610_v13, %v5601_v3  ;;  %v5562_v22 = vadd.f32 %v5561_v49, %v5461_v39  ;;  %v8124_v30 = vpop.f32.mrb[171].mxu0  ;;  %v5620_v9 = vpop.permute.xlu1 %5619 }
0x197d   :  { %8849 = vpow2.f32 %v6910_v53  ;;  %v11003_v19 = vadd.f32 %v10996_v34, %v5629_v47  ;;  %v5602_v4 = vadd.f32 %v5595_v36, %v5562_v22 }
0x197e   :  { %v5466_v31 = vpop.f32.mrb[172].mxu0 }
0x197f   :  { %v6911_v42 = vmul.f32 -1.442695, %v11003_v19  ;;  %v5630_v44 = vadd.f32 %v5612_v62, %v5602_v4  ;;  %v5567_v48 = vadd.f32 %v5566_v11, %v5466_v31  ;;  %v8127_v50 = vpop.f32.mrb[173].mxu0 }
0x1981   :  { %8851 = vpow2.f32 %v6911_v42  ;;  %v11007_v6 = vadd.f32 %v10996_v34, %v5630_v44  ;;  %v5603_v54 = vadd.f32 %v5596_v37, %v5567_v48 }
0x1982   :  { %v5471_v38 = vpop.f32.mrb[174].mxu0 }
0x1983   :  { %v6912_v45 = vmul.f32 -1.442695, %v11007_v6  ;;  %v5631_v49 = vadd.f32 %v5614_v2, %v5603_v54  ;;  %v5572_v8 = vadd.f32 %v5571_v27, %v5471_v38  ;;  %v8130_v46 = vpop.f32.mrb[175].mxu0 }
0x1985   :  { %8853 = vpow2.f32 %v6912_v45  ;;  %v5646_v51 = vadd.f32 %v10996_v34, %v5631_v49  ;;  %v5604_v23 = vadd.f32 %v5597_v43, %v5572_v8 }
0x1986   :  { %v5476_v20 = vpop.f32.mrb[176].mxu0 }
0x1987   :  { %v8850_v11 = vpop.eup %8849  ;;  %v6913_v55 = vmul.f32 -1.442695, %v5646_v51  ;;  %v5632_v0 = vadd.f32 %v5616_v32, %v5604_v23  ;;  %v5577_v16 = vadd.f32 %v10991_v41, %v5476_v20  ;;  %v8133_v18 = vpop.f32.mrb[177].mxu0  ;;  %v6921_v32 = vld [vmem:[#allocation10 + $0x3] ss:$0 sm:$0xff] }
0x1988   :  { %v5671_v17 = vadd.f32 1.0, %v8850_v11 }
0x1989   :  { %8855 = vpow2.f32 %v6913_v55  ;;  %v5647_v25 = vadd.f32 %v10996_v34, %v5632_v0  ;;  %v5605_v27 = vadd.f32 %v5598_v52, %v5577_v16 }
0x198a   :  { %8857 = vrcp.f32 %v5671_v17  ;;  %v5481_v40 = vpop.f32.mrb[178].mxu0 }
0x198b   :  { %v8852_v13 = vpop.eup %8851  ;;  %v6914_v10 = vmul.f32 -1.442695, %v5647_v25  ;;  %v5633_v28 = vadd.f32 %v5618_v56, %v5605_v27  ;;  %v5582_v35 = vadd.f32 %v10994_v7, %v5481_v40  ;;  %v8136_v15 = vpop.f32.mrb[179].mxu0 }
0x198c   :  { %v5672_v26 = vadd.f32 1.0, %v8852_v13 }
0x198d   :  { %8859 = vpow2.f32 %v6914_v10  ;;  %v5648_v41 = vadd.f32 %v10996_v34, %v5633_v28  ;;  %v5606_v62 = vadd.f32 %v5599_v60, %v5582_v35 }
0x198e   :  { %8861 = vrcp.f32 %v5672_v26 }
0x198f   :  { %v8854_v63 = vpop.eup %8853  ;;  %v6915_v5 = vmul.f32 -1.442695, %v5648_v41  ;;  %v5634_v1 = vadd.f32 %v5620_v9, %v5606_v62 }
0x1990   :  { %v5673_v57 = vadd.f32 1.0, %v8854_v63 }
0x1991   :  { %8863 = vpow2.f32 %v6915_v5  ;;  %v5649_v14 = vadd.f32 %v10996_v34, %v5634_v1 }
0x1992   :  { %8865 = vrcp.f32 %v5673_v57 }
0x1993   :  { %v8856_v58 = vpop.eup %8855  ;;  %v6916_v61 = vmul.f32 -1.442695, %v5649_v14 }
0x1994   :  { %v8858_v3 = vpop.eup %8857  ;;  %v5674_v7 = vadd.f32 1.0, %v8856_v58 }
0x1995   :  { %v5692_v39 = vmul.f32 %v8858_v3, %v10999_v29  ;;  %8867 = vpow2.f32 %v6916_v61 }
0x1996   :  { %8869 = vrcp.f32 %v5674_v7 }
0x1997   :  { %v8860_v36 = vpop.eup %8859  ;;  %8169 = vmatmul.mubr.msk.f32.vlgmr.msra.gmra.mrb[180].mxu0 %vm943_vm5, %v5692_v39 }
0x1998   :  { %v8862_v53 = vpop.eup %8861  ;;  %v5675_v47 = vadd.f32 1.0, %v8860_v36  ;;  %8171 = vmatprep.mubr.msk.f32.mxu0 %vm9459_vm0, %v11140_v24 }
0x1999   :  { %v5693_v22 = vmul.f32 %v8862_v53, %v11003_v19 }
0x199a   :  { %8871 = vrcp.f32 %v5675_v47 }
0x199b   :  { %v8864_v34 = vpop.eup %8863  ;;  %8172 = vmatmul.mubr.msk.f32.gmra.mrb[182].mxu0 %vm943_vm5, %v5693_v22 }
0x199c   :  { %v8866_v30 = vpop.eup %8865  ;;  %v5676_v2 = vadd.f32 1.0, %v8864_v34  ;;  %8174 = vmatprep.mubr.msk.f32.mxu0 %vm9459_vm0, %v11140_v24 }
0x199d   :  { %v5694_v29 = vmul.f32 %v8866_v30, %v11007_v6 }
0x199e   :  { %8873 = vrcp.f32 %v5676_v2 }
0x199f   :  { %v8868_v4 = vpop.eup %8867  ;;  %8175 = vmatmul.mubr.msk.f32.gmra.mrb[184].mxu0 %vm943_vm5, %v5694_v29 }
0x19a0   :  { %v8870_v31 = vpop.eup %8869  ;;  %v5677_v37 = vadd.f32 1.0, %v8868_v4  ;;  %8177 = vmatprep.mubr.msk.f32.mxu0 %vm9459_vm0, %v11140_v24 }
0x19a1   :  { %v5695_v19 = vmul.f32 %v8870_v31, %v5646_v51 }
0x19a2   :  { %8875 = vrcp.f32 %v5677_v37 }
0x19a3   :  { %8178 = vmatmul.mubr.msk.f32.gmra.mrb[186].mxu0 %vm943_vm5, %v5695_v19 }
0x19a4   :  { %v8872_v42 = vpop.eup %8871  ;;  %8180 = vmatprep.mubr.msk.f32.mxu0 %vm9459_vm0, %v11140_v24 }
0x19a5   :  { %v5696_v44 = vmul.f32 %v8872_v42, %v5647_v25 }
0x19a7   :  { %8181 = vmatmul.mubr.msk.f32.gmra.mrb[188].mxu0 %vm943_vm5, %v5696_v44 }
0x19a8   :  { %v8874_v48 = vpop.eup %8873  ;;  %8183 = vmatprep.mubr.msk.f32.mxu0 %vm9459_vm0, %v11140_v24 }
0x19a9   :  { %v5697_v50 = vmul.f32 %v8874_v48, %v5648_v41 }
0x19ab   :  { %8184 = vmatmul.mubr.msk.f32.gmra.mrb[190].mxu0 %vm943_vm5, %v5697_v50 }
0x19ac   :  { %v8876_v6 = vpop.eup %8875  ;;  %8186 = vmatprep.mubr.msk.f32.mxu0 %vm9459_vm0, %v11140_v24 }
0x19ad   :  { %v5698_v54 = vmul.f32 %v8876_v6, %v5649_v14 }
0x19af   :  { %8187 = vmatmul.mubr.msk.f32.gmra.mrb[192].mxu0 %vm943_vm5, %v5698_v54  ;;  %v5958_v54 = vld [vmem:[#allocation17 + $0x60] sm:$0xff] }
0x19b0   :  { %8247 = vmatprep.mubr.msk.f32.mxu0 %vm9459_vm0, %v11140_v24 }
0x1a6a   :  { %v5799_v38 = vpop.f32.mrb[180].mxu0 }
0x1a6b   :  { %v5800_v43 = vadd.f32 %v6921_v32, %v5799_v38  ;;  %v8170_v45 = vpop.f32.mrb[181].mxu0 }
0x1a6c   :  { %v5960_v45 = vld [vmem:[#allocation17 + $0x70] sm:$0xff] }
0x1a6d   :  { %v6929_v49 = vmul.f32 -1.442695, %v5800_v43 }
0x1a6e   :  { %v5804_v8 = vpop.f32.mrb[182].mxu0 }
0x1a6f   :  { %8877 = vpow2.f32 %v6929_v49  ;;  %v5805_v46 = vadd.f32 %v6921_v32, %v5804_v8  ;;  %v8173_v51 = vpop.f32.mrb[183].mxu0  ;;  %v5961_v49 = vld [vmem:[#allocation17 + $0x78] sm:$0xff] }
0x1a70   :  { %v8470_v8 = vpack.c.bf16 %v5961_v49, %v5960_v45  ;;  %v5954_v51 = vld [vmem:[#allocation16 + $0x68] sm:$0xff] }
0x1a71   :  { %v6930_v23 = vmul.f32 -1.442695, %v5805_v46 }
0x1a72   :  { %v5809_v20 = vpop.f32.mrb[184].mxu0 }
0x1a73   :  { %8879 = vpow2.f32 %v6930_v23  ;;  %v5810_v11 = vadd.f32 %v6921_v32, %v5809_v20  ;;  %v8176_v52 = vpop.f32.mrb[185].mxu0  ;;  %v5955_v20 = vld [vmem:[#allocation16 + $0x70] sm:$0xff] }
0x1a75   :  { %v6931_v55 = vmul.f32 -1.442695, %v5810_v11 }
0x1a76   :  { %v5814_v0 = vpop.f32.mrb[186].mxu0 }
0x1a77   :  { %8881 = vpow2.f32 %v6931_v55  ;;  %v5815_v16 = vadd.f32 %v6921_v32, %v5814_v0  ;;  %v8179_v18 = vpop.f32.mrb[187].mxu0  ;;  %v6123_v0 = vld [vmem:[#allocation20 + $0x60] sm:$0xff] }
0x1a79   :  { %v8878_v56 = vpop.eup %8877  ;;  %v6932_v21 = vmul.f32 -1.442695, %v5815_v16 }
0x1a7a   :  { %v5854_v17 = vadd.f32 1.0, %v8878_v56  ;;  %v5819_v25 = vpop.f32.mrb[188].mxu0  ;;  %v6125_v56 = vld [vmem:[#allocation20 + $0x70] sm:$0xff] }
0x1a7b   :  { %8883 = vpow2.f32 %v6932_v21  ;;  %v5820_v27 = vadd.f32 %v6921_v32, %v5819_v25  ;;  %v8182_v40 = vpop.f32.mrb[189].mxu0  ;;  %v6126_v21 = vld [vmem:[#allocation20 + $0x78] sm:$0xff]  ;;  %v6210_v25 = vld [vmem:[#allocation23] sm:$0xff] }
0x1a7c   :  { %8885 = vrcp.f32 %v5854_v17  ;;  %v8482_v17 = vpack.c.bf16 %v6126_v21, %v6125_v56 }
0x1a7d   :  { %v8880_v13 = vpop.eup %8879  ;;  %v6933_v60 = vmul.f32 -1.442695, %v5820_v27 }
0x1a7e   :  { %v5855_v10 = vadd.f32 1.0, %v8880_v13  ;;  %v5824_v28 = vpop.f32.mrb[190].mxu0 }
0x1a7f   :  { %8887 = vpow2.f32 %v6933_v60  ;;  %v5825_v35 = vadd.f32 %v6921_v32, %v5824_v28  ;;  %v8185_v15 = vpop.f32.mrb[191].mxu0  ;;  %v6939_v60 = vld [vmem:[#allocation19 + $0x3] ss:$0 sm:$0xff] }
0x1a80   :  { %8889 = vrcp.f32 %v5855_v10  ;;  %v11150_v10 = vld [vmem:[#allocation62_spill] sm:$0xff] }
0x1a81   :  { %v8882_v26 = vpop.eup %8881  ;;  %v6934_v41 = vmul.f32 -1.442695, %v5825_v35 }
0x1a82   :  { %v5856_v62 = vadd.f32 1.0, %v8882_v26  ;;  %v5829_v9 = vpop.f32.mrb[192].mxu0 }
0x1a83   :  { %8891 = vpow2.f32 %v6934_v41  ;;  %v5830_v63 = vadd.f32 %v6921_v32, %v5829_v9  ;;  %v8188_v5 = vpop.f32.mrb[193].mxu0  ;;  %v5959_v32 = vld [vmem:[#allocation17 + $0x68] sm:$0xff] }
0x1a84   :  { %8893 = vrcp.f32 %v5856_v62  ;;  %v6212_v5 = vld [vmem:[#allocation23 + $0x10] sm:$0xff] }
0x1a85   :  { %v8884_v1 = vpop.eup %8883  ;;  %v6935_v57 = vmul.f32 -1.442695, %v5830_v63 }
0x1a86   :  { %v5857_v14 = vadd.f32 1.0, %v8884_v1  ;;  %v8886_v58 = vpop.eup %8885  ;;  %v6213_v1 = vld [vmem:[#allocation23 + $0x18] sm:$0xff] }
0x1a87   :  { %8895 = vpow2.f32 %v6935_v57  ;;  %v5875_v39 = vmul.f32 %v8886_v58, %v5800_v43  ;;  %v8467_v43 = vpack.c.bf16 %v5959_v32, %v5958_v54  ;;  %v8488_v57 = vpack.c.bf16 %v6213_v1, %v6212_v5  ;;  %v6942_v58 = vld [vmem:[#allocation22 + $0x3] ss:$0 sm:$0xff] }
0x1a88   :  { %8897 = vrcp.f32 %v5857_v14  ;;  %v6388_v54 = vld [vmem:[#allocation29 + $0x18] sm:$0xff] }
0x1a89   :  { %v8888_v61 = vpop.eup %8887 }
0x1a8a   :  { %v8890_v3 = vpop.eup %8889  ;;  %v5858_v7 = vadd.f32 1.0, %v8888_v61 }
0x1a8b   :  { %v5876_v36 = vmul.f32 %v8890_v3, %v5805_v46  ;;  %v5953_v46 = vld [vmem:[#allocation16 + $0x60] sm:$0xff] }
0x1a8c   :  { %8899 = vrcp.f32 %v5858_v7  ;;  %v8473_v23 = vpack.c.bf16 %v5954_v51, %v5953_v46  ;;  %v6477_v46 = vld [vmem:[%s9619_s25 + $0x8] sm:$0xff] }
0x1a8d   :  { %v8892_v53 = vpop.eup %8891  ;;  %v8458_v47 = vpack.c.bf16 %v5876_v36, %v5875_v39  ;;  %v6301_v39 = vld [vmem:[#allocation26] sm:$0xff]  ;;  %v6302_v36 = vld [vmem:[#allocation26 + $0x8] sm:$0xff] }
0x1a8e   :  { %v5859_v22 = vadd.f32 1.0, %v8892_v53  ;;  %v8894_v34 = vpop.eup %8893  ;;  %v8491_v53 = vpack.c.bf16 %v6302_v36, %v6301_v39 }
0x1a8f   :  { %8459 = vmatpush3.bf16.msra.mxu1 %v8458_v47  ;;  %v5877_v4 = vmul.f32 %v8894_v34, %v5810_v11  ;;  %v5956_v11 = vld [vmem:[#allocation16 + $0x78] sm:$0xff] }
0x1a90   :  { %8901 = vrcp.f32 %v5859_v22  ;;  %8460 = vmatprep.subr.bf16.mxu1 %v11144_v12  ;;  %v8476_v55 = vpack.c.bf16 %v5956_v11, %v5955_v20  ;;  %v6303_v47 = vld [vmem:[#allocation26 + $0x10] sm:$0xff]  ;;  %v6304_v22 = vld [vmem:[#allocation26 + $0x18] sm:$0xff]  ;;  %v6948_v11 = vld [vmem:[#allocation31] ss:$0 sm:$0xff] }
0x1a91   :  { %v8896_v30 = vpop.eup %8895  ;;  %v8494_v34 = vpack.c.bf16 %v6304_v22, %v6303_v47  ;;  %v6479_v20 = vld [vmem:[%s9619_s25 + $0x18] sm:$0xff] }
0x1a92   :  { %v8898_v2 = vpop.eup %8897  ;;  %v5860_v29 = vadd.f32 1.0, %v8896_v30  ;;  %v6386_v30 = vld [vmem:[#allocation29 + $0x8] sm:$0xff] }
0x1a93   :  { %v5878_v31 = vmul.f32 %v8898_v2, %v5815_v16  ;;  %v6124_v16 = vld [vmem:[#allocation20 + $0x68] sm:$0xff] }
0x1a94   :  { %8903 = vrcp.f32 %v5860_v29  ;;  %v8479_v18 = vpack.c.bf16 %v6124_v16, %v6123_v0  ;;  %v6943_v29 = vld [vmem:[#allocation25] ss:$0 sm:$0xff] }
0x1a95   :  { %v8461_v37 = vpack.c.bf16 %v5878_v31, %v5877_v4 }
0x1a96   :  { %v8900_v19 = vpop.eup %8899 }
0x1a97   :  { %8462 = vmatpush3.bf16.msra.mxu1 %v8461_v37  ;;  %v5879_v44 = vmul.f32 %v8900_v19, %v5820_v27  ;;  %v6211_v27 = vld [vmem:[#allocation23 + $0x8] sm:$0xff] }
0x1a98   :  { %8463 = vmatprep.subr.bf16.mxu1 %v11144_v12  ;;  %v8485_v40 = vpack.c.bf16 %v6211_v27, %v6210_v25 }
0x1a9a   :  { %v8902_v42 = vpop.eup %8901  ;;  %8486 = vmatpush3.bf16.msra.mxu0 %v8485_v40 }
0x1a9b   :  { %v5880_v48 = vmul.f32 %v8902_v42, %v5825_v35  ;;  %8487 = vmatprep.subr.bf16.mxu0 %v11144_v12 }
0x1a9d   :  { %v8464_v50 = vpack.c.bf16 %v5880_v48, %v5879_v44 }
0x1a9e   :  { %v8904_v6 = vpop.eup %8903  ;;  %8489 = vmatpush3.bf16.msra.mxu0 %v8488_v57 }
0x1a9f   :  { %8465 = vmatpush3.bf16.msra.mxu1 %v8464_v50  ;;  %v5881_v38 = vmul.f32 %v8904_v6, %v5830_v63  ;;  %8496 = vmatprep.subr.bf16.mxu0 %v11144_v12  ;;  %v6387_v6 = vld [vmem:[#allocation29 + $0x10] sm:$0xff] }
0x1aa0   :  { %8201 = vmatprep.subr.mxu1 %v11140_v24  ;;  %v8500_v32 = vpack.c.bf16 %v6388_v54, %v6387_v6 }
0x1aa3   :  { %8202 = vmatpush3.msra.mxu1 %v5881_v38  ;;  %v6946_v38 = vld [vmem:[#allocation28] ss:$0 sm:$0xff] }
0x1aa4   :  { %8204 = vmatmul.mubr.msk.f32.vlgmr.msra.gmra.mrb[182].mxu1 %vm1716_vm6, %v10147_v59  ;;  %8466 = vmatprep.subr.bf16.mxu1 %v11144_v12 }
0x1aa5   :  { %8468 = vmatpush3.bf16.msra.mxu1 %v8467_v43  ;;  %8214 = vmatprep.mubr.msk.f32.mxu1 %vm9459_vm0, %v11140_v24 }
0x1aa6   :  { %8469 = vmatprep.subr.bf16.mxu1 %v11144_v12 }
0x1aa9   :  { %8471 = vmatpush3.bf16.msra.mxu1 %v8470_v8  ;;  %v6476_v8 = vld [vmem:[%s9619_s25] sm:$0xff] }
0x1aaa   :  { %8472 = vmatprep.subr.bf16.mxu1 %v11144_v12  ;;  %v8503_v51 = vpack.c.bf16 %v6477_v46, %v6476_v8 }
0x1b77   :  { %v5948_v52 = vpop.f32.mrb[182].mxu1 }
0x1b78   :  { %8215 = vmatmul.mubr.msk.f32.vlgmr.msra.gmra.mrb[184].mxu1 %vm943_vm5, %v5948_v52  ;;  %v8205_v59 = vpop.f32.mrb[183].mxu1 }
0x1b79   :  { %8474 = vmatpush3.bf16.msra.mxu1 %v8473_v23  ;;  %8225 = vmatprep.mubr.msk.f32.mxu1 %vm9459_vm0, %v11140_v24  ;;  %v6478_v23 = vld [vmem:[%s9619_s25 + $0x10] sm:$0xff]  ;;  %s9357_s25 = scalar_lea.vmem %s6569_s28, 128 }
0x1b7a   :  { %8475 = vmatprep.subr.bf16.mxu1 %v11144_v12  ;;  %p9358_p6 = scmp.ne.s32.totalorder %s6569_s28, %s9357_s25  ;;  %p9363_p8 = scmp.lt.s32.totalorder %s9357_s25, %s9357_s25 }
0x1b7c   :  { %p9364_p9 = por %p9363_p8, %p9362_p7 }
0x1b7d   :  { %8477 = vmatpush3.bf16.msra.mxu1 %v8476_v55 }
0x1b7e   :  { %8478 = vmatprep.subr.bf16.mxu1 %v11144_v12  ;;  %p9365_p10 = pnand %p9364_p9, %p9358_p6 }
0x1b80   :  { %8226 = vmatmul.mubr.msk.f32.vlgmr.msra.gmra.mrb[184].mxu1 %vm943_vm5, %v10896_v33 }
0x1b81   :  { %8236 = vmatprep.mubr.msk.f32.mxu1 %vm9459_vm0, %v11140_v24  ;;  %8480 = vmatpush3.bf16.msra.mxu1 %v8479_v18 }
0x1b82   :  { %8481 = vmatprep.subr.bf16.mxu1 %v11144_v12 }
0x1b85   :  { %8483 = vmatpush3.bf16.msra.mxu1 %v8482_v17  ;;  %v6951_v17 = vld [vmem:[#allocation32] ss:$0 sm:$0xff] }
0x1b86   :  { %8490 = vmatprep.subr.bf16.mxu1 %v11144_v12 }
0x1c53   :  { %v6101_v13 = vpop.f32.mrb[184].mxu1 }
0x1c54   :  { %v6105_v28 = vadd.f32 %v6101_v13, %v11150_v10  ;;  %v8227_v35 = vpop.f32.mrb[185].mxu1 }
0x1c56   :  { %v6114_v15 = vadd.f32 %v6939_v60, %v6105_v28 }
0x1c58   :  { %v6940_v26 = vmul.f32 -1.442695, %v6114_v15 }
0x1c5a   :  { %8905 = vpow2.f32 %v6940_v26 }
0x1c64   :  { %v8906_v41 = vpop.eup %8905 }
0x1c65   :  { %v6118_v62 = vadd.f32 1.0, %v8906_v41 }
0x1c67   :  { %8907 = vrcp.f32 %v6118_v62 }
0x1c71   :  { %v8908_v9 = vpop.eup %8907 }
0x1c72   :  { %v6121_v63 = vmul.f32 %v8908_v9, %v6114_v15 }
0x1c74   :  { %8237 = vmatmul.mubr.msk.f32.vlgmr.msra.gmra.mrb[186].mxu1 %vm943_vm5, %v6121_v63 }
0x1c75   :  { %8258 = vmatprep.mubr.msk.f32.mxu1 %vm9459_vm0, %v11140_v24  ;;  %8492 = vmatpush3.bf16.msra.mxu1 %v8491_v53 }
0x1c76   :  { %8493 = vmatprep.subr.bf16.mxu1 %v11144_v12 }
0x1c79   :  { %8495 = vmatpush3.bf16.msra.mxu1 %v8494_v34 }
0x1c7a   :  { %8502 = vmatprep.subr.bf16.mxu1 %v11144_v12 }
0x1d47   :  { %v6196_v14 = vpop.f32.mrb[186].mxu1 }
0x1d48   :  { %v6200_v61 = vadd.f32 %v6196_v14, %v10896_v33  ;;  %v8238_v3 = vpop.f32.mrb[187].mxu1  ;;  %v6385_v33 = vld [vmem:[#allocation29] sm:$0xff] }
0x1d49   :  { %v8497_v2 = vpack.c.bf16 %v6386_v30, %v6385_v33 }
0x1d4a   :  { %v6209_v7 = vadd.f32 %v6942_v58, %v6200_v61 }
0x1d4c   :  { %8248 = vmatmul.mubr.msk.f32.vlgmr.msra.gmra.mrb[194].mxu0 %vm943_vm5, %v6209_v7 }
0x1d4d   :  { %8269 = vmatprep.mubr.msk.f32.mxu0 %vm9459_vm0, %v11140_v24  ;;  %8498 = vmatpush3.bf16.msra.mxu0 %v8497_v2 }
0x1d4e   :  { %8499 = vmatprep.subr.bf16.mxu0 %v11144_v12 }
0x1d51   :  { %8501 = vmatpush3.bf16.msra.mxu0 %v8500_v32 }
0x1e1f   :  { %v6290_v4 = vpop.f32.mrb[194].mxu0 }
0x1e20   :  { %v6291_v31 = vadd.f32 %v6943_v29, %v6290_v4  ;;  %v8249_v37 = vpop.f32.mrb[195].mxu0 }
0x1e22   :  { %v6945_v19 = vmul.f32 -1.442695, %v6291_v31 }
0x1e24   :  { %8909 = vpow2.f32 %v6945_v19 }
0x1e2e   :  { %v8910_v42 = vpop.eup %8909 }
0x1e2f   :  { %v6297_v44 = vadd.f32 1.0, %v8910_v42 }
0x1e31   :  { %8911 = vrcp.f32 %v6297_v44 }
0x1e3b   :  { %v8912_v48 = vpop.eup %8911 }
0x1e3c   :  { %v6300_v50 = vmul.f32 %v8912_v48, %v6291_v31 }
0x1e3e   :  { %8259 = vmatmul.mubr.msk.f32.vlgmr.msra.gmra.mrb[188].mxu1 %vm943_vm5, %v6300_v50 }
0x1e3f   :  { %8280 = vmatprep.mubr.msk.f32.mxu1 %vm9459_vm0, %v11140_v24  ;;  %8504 = vmatpush3.bf16.msra.mxu1 %v8503_v51  ;;  %v8506_v24 = vpack.c.bf16 %v6479_v20, %v6478_v23 }
0x1e40   :  { %8505 = vmatprep.subr.bf16.mxu1 %v11144_v12 }
0x1e43   :  { %8507 = vmatpush3.bf16.msra.mxu1 %v8506_v24 }
0x1f11   :  { %v6381_v43 = vpop.f32.mrb[188].mxu1 }
0x1f12   :  { %v6382_v45 = vadd.f32 %v6946_v38, %v6381_v43  ;;  %v8260_v49 = vpop.f32.mrb[189].mxu1 }
0x1f14   :  { %8270 = vmatmul.mubr.msk.f32.vlgmr.msra.gmra.mrb[196].mxu0 %vm943_vm5, %v6382_v45 }
0x1fe7   :  { %v6465_v52 = vpop.f32.mrb[196].mxu0 }
0x1fe8   :  { %v6466_v59 = vadd.f32 %v6948_v11, %v6465_v52  ;;  %v8271_v55 = vpop.f32.mrb[197].mxu0 }
0x1fea   :  { %v6950_v0 = vmul.f32 -1.442695, %v6466_v59 }
0x1fec   :  { %8913 = vpow2.f32 %v6950_v0 }
0x1ff6   :  { %v8914_v16 = vpop.eup %8913 }
0x1ff7   :  { %v6472_v18 = vadd.f32 1.0, %v8914_v16 }
0x1ff9   :  { %8915 = vrcp.f32 %v6472_v18 }
0x2003   :  { %v8916_v56 = vpop.eup %8915 }
0x2004   :  { %v6475_v21 = vmul.f32 %v8916_v56, %v6466_v59 }
0x2006   :  { %8281 = vmatmul.mubr.msk.f32.vlgmr.msra.gmra.mrb[190].mxu1 %vm943_vm5, %v6475_v21 }
0x20d9   :  { %v6556_v12 = vpop.f32.mrb[190].mxu1 }
0x20da   :  { %v6557_v25 = vadd.f32 %v6951_v17, %v6556_v12  ;;  %v8282_v27 = vpop.f32.mrb[191].mxu1 }
0x20dc   :  { %6561 = vst.msk [vmem:[#allocation34] sm:$0xff] %vm6560_vm7, %v6557_v25 }
0x20dd   :  { %9368 = shalt.err (!%p9365_p10)
}
0x20de   :  { %s9369_s1 = scalar_lea.hbm %s9629_s6, 128 }
0x20df   :  { %p9370_p11 = scmp.ne.s32.totalorder %s9629_s6, %s9369_s1  ;;  %p9373_p12 = scmp.lt.u32.totalorder %s9369_s1, %s9629_s6 }
0x20e1   :  { %p9375_p13 = pnand %p9373_p12, %p9370_p11 }
0x20e3   :  { %9378 = shalt.err (!%p9375_p13)
}
0x20e4   :  { %6571 = dma.vmem_to_hbm [thread:$0]  %s6569_s28, 128, %s9629_s6, [#allocation4]  }
0x20e5   :  { %9401 = dma.done.wait [#allocation4], 128  }
0x20e6   :  { %9402 = vsyncadd [#allocation4], 4294967168 }
0x20e7   :  { %6575 = vsyncpa [#allocation3], 1 }
0x20e8   :  { %6576 = vsyncpa [#allocation6], 1 }
0x20e9   :  { %6577 = vsyncpa [#allocation9], 1 }
0x20ea   :  { %6578 = vsyncpa [#allocation12], 1 }
0x20eb   :  { %6579 = vsyncpa [#allocation15], 1 }
0x20ec   :  { %6580 = vsyncpa [#allocation18], 1 }
0x20ed   :  { %6581 = vsyncpa [#allocation21], 1 }
0x20ee   :  { %6582 = vsyncpa [#allocation24], 1 }
0x20ef   :  { %6583 = vsyncpa [#allocation27], 1 }
0x20f0   :  { %6584 = vsyncpa [#allocation30], 1 }
0x20f1   :  { %6585 = vsyncpa [#allocation33], 1 }
0x20f2   :  { %6586 = vsyncpa [#allocation4], 1 }

</bundles_post_ra>
